<compile_context>
chip_gen: v7x
topology: tpu7x:2x2x1
jax: 0.10.0
libtpu: 0.0.40
codegen_flags: <defaults>
</compile_context>

<pallas_src>
import functools

import jax
import jax.numpy as jnp
from jax.experimental import pallas as pl
from jax.experimental.pallas import tpu as pltpu


def _round_up(x, m):
    return (x + m - 1) // m * m


def _tpu_budgets():
    """(M-tile target, vmem limit) derived from the chip's VMEM capacity."""
    vmem = 128 * 1024 * 1024
    try:
        info = pltpu.get_tpu_info()
        vmem = int(getattr(info, "vmem_capacity_bytes", vmem))
    except Exception:
        pass
    mt = 256 if vmem <= 64 * 1024 * 1024 else 512      # v7x (64 MiB) vs v5e/v6e
    return mt, min(48 * 1024 * 1024, int(vmem * 0.6))


_MT_TARGET, _VMEM_LIMIT = _tpu_budgets()


# ---------------------------------------------------------------------------
# GEMM kernels:  O = act(W @ P + bias), lane-dense output (pixels on lanes)
# ---------------------------------------------------------------------------
def _gemm_single_kernel(w_ref, p_ref, b_ref, o_ref, *, act):
    r = jnp.dot(w_ref[...], p_ref[...], preferred_element_type=jnp.float32)
    r = r + b_ref[...]
    if act == "tanh":
        r = jnp.tanh(r)              # fused epilogue -> EUP slot, no extra pass
    o_ref[...] = r


def _gemm_multi_kernel(w_ref, p_ref, b_ref, o_ref, acc_ref, *, act):
    @pl.when(pl.program_id(1) == 0)
    def _():
        acc_ref[...] = jnp.zeros_like(acc_ref)

    acc_ref[...] += jnp.dot(w_ref[...], p_ref[...],
                            preferred_element_type=jnp.float32)

    @pl.when(pl.program_id(1) == pl.num_programs(1) - 1)
    def _():
        r = acc_ref[...] + b_ref[...]
        if act == "tanh":
            r = jnp.tanh(r)
        o_ref[...] = r


def conv_gemm(w2d, p, bias, act=None):
    """w2d: (Cout, K) f32, p: (K, M) f32, bias: (Cout,). Returns (Cout, M) f32."""
    cout, k = w2d.shape
    _, m = p.shape

    mt = min(_MT_TARGET, _round_up(m, 128))
    mp = _round_up(m, mt)
    bias2 = bias.reshape(cout, 1).astype(jnp.float32)

    if k <= 1024:
        # single reduction block: no scratch accumulator, no K grid axis
        kp = _round_up(k, 8)
        w_pad = jnp.pad(w2d, ((0, 0), (0, kp - k))).astype(jnp.bfloat16)
        p_pad = jnp.pad(p, ((0, kp - k), (0, mp - m))).astype(jnp.bfloat16)
        out = pl.pallas_call(
            functools.partial(_gemm_single_kernel, act=act),
            out_shape=jax.ShapeDtypeStruct((cout, mp), jnp.float32),
            grid=(mp // mt,),
            in_specs=[
                pl.BlockSpec((cout, kp), lambda i: (0, 0)),
                pl.BlockSpec((kp, mt), lambda i: (0, i)),
                pl.BlockSpec((cout, 1), lambda i: (0, 0)),
            ],
            out_specs=pl.BlockSpec((cout, mt), lambda i: (0, i)),
            compiler_params=pltpu.CompilerParams(
                dimension_semantics=("parallel",),
                vmem_limit_bytes=_VMEM_LIMIT),
        )(w_pad, p_pad, bias2)
        return out[:, :m]

    kt = 512                          # tiled reduction, K-axis last in grid
    kp = _round_up(k, kt)
    w_pad = jnp.pad(w2d, ((0, 0), (0, kp - k))).astype(jnp.bfloat16)
    p_pad = jnp.pad(p, ((0, kp - k), (0, mp - m))).astype(jnp.bfloat16)
    out = pl.pallas_call(
        functools.partial(_gemm_multi_kernel, act=act),
        out_shape=jax.ShapeDtypeStruct((cout, mp), jnp.float32),
        grid=(mp // mt, kp // kt),
        in_specs=[
            pl.BlockSpec((cout, kt), lambda i, j: (0, j)),
            pl.BlockSpec((kt, mt), lambda i, j: (j, i)),
            pl.BlockSpec((cout, 1), lambda i, j: (0, 0)),
        ],
        out_specs=pl.BlockSpec((cout, mt), lambda i, j: (0, i)),
        scratch_shapes=[pltpu.VMEM((cout, mt), jnp.float32)],
        compiler_params=pltpu.CompilerParams(
            dimension_semantics=("parallel", "arbitrary"),
            vmem_limit_bytes=_VMEM_LIMIT),
    )(w_pad, p_pad, bias2)
    return out[:, :m]


# ---------------------------------------------------------------------------
# Convolution via transposed im2col (internal layout: C, B, H, W — no transpose)
# ---------------------------------------------------------------------------
def conv2d(xp, w, b, stride=1, act=None):
    """xp: already-padded (Cin, B, Hp, Wp). w: (Cout, Cin, kh, kw) PyTorch layout.
    Returns (Cout, B, Ho, Wo)."""
    cin, bsz, hp, wp = xp.shape
    cout, _, kh, kw = w.shape
    ho = (hp - kh) // stride + 1
    wo = (wp - kw) // stride + 1
    cols = []
    for dy in range(kh):
        for dx in range(kw):
            cols.append(xp[:, :, dy:dy + (ho - 1) * stride + 1:stride,
                               dx:dx + (wo - 1) * stride + 1:stride])
    # (Cin, kh*kw, B, Ho, Wo) -> (K, M): row order matches PyTorch's
    # (Cin, kh, kw) weight flattening; columns are (b, ho, wo) pixels.
    patches = jnp.stack(cols, axis=1).reshape(cin * kh * kw, bsz * ho * wo)
    out = conv_gemm(w.reshape(cout, cin * kh * kw), patches, b, act=act)
    return out.reshape(cout, bsz, ho, wo)


def conv_transpose2d(x, w_t, b):
    """ConvTranspose2d(k=3, s=2, p=1, op=1) via sub-pixel decomposition:
    four stride-1 convs on the original-resolution map, interleaved.
    x: (Cin, B, H, W);  w_t follows PyTorch layout (Cin, Cout, 3, 3)."""
    cin, bsz, h, w = x.shape
    cout = w_t.shape[1]
    wt = jnp.transpose(w_t, (1, 0, 2, 3))                      # (Cout, Cin, 3, 3)
    xe = jnp.pad(x, ((0, 0), (0, 0), (0, 1), (0, 1)))          # bottom/right zero

    w00 = wt[:, :, 1:2, 1:2]                                               # (·,·,1,1)
    w01 = jnp.stack([wt[:, :, 1, 2], wt[:, :, 1, 0]], axis=-1)[:, :, None, :]  # (·,·,1,2)
    w10 = jnp.stack([wt[:, :, 2, 1], wt[:, :, 0, 1]], axis=-1)[:, :, :, None]  # (·,·,2,1)
    w11 = jnp.stack([jnp.stack([wt[:, :, 2, 2], wt[:, :, 2, 0]], axis=-1),
                     jnp.stack([wt[:, :, 0, 2], wt[:, :, 0, 0]], axis=-1)],
                    axis=-2)                                               # (·,·,2,2)

    o00 = conv2d(x, w00, b, stride=1)
    o01 = conv2d(xe[:, :, :h, :], w01, b, stride=1)
    o10 = conv2d(xe[:, :, :, :w], w10, b, stride=1)
    o11 = conv2d(xe, w11, b, stride=1)

    row0 = jnp.stack([o00, o01], axis=-1).reshape(cout, bsz, h, 2 * w)
    row1 = jnp.stack([o10, o11], axis=-1).reshape(cout, bsz, h, 2 * w)
    return jnp.stack([row0, row1], axis=-2).reshape(cout, bsz, 2 * h, 2 * w)


# ---------------------------------------------------------------------------
# Elementwise / normalization / pooling kernels
# ---------------------------------------------------------------------------
def _channel_tile(c, cols, budget):
    ct = c
    while ct % 2 == 0 and ct * cols * 4 > budget:
        ct //= 2
    return ct


def _inorm_relu_kernel(x_ref, o_ref):
    # InstanceNorm2d (affine=False, eps=1e-5, biased variance) + ReLU.
    x = x_ref[...]                                       # (ct, B, HW)
    mean = jnp.mean(x, axis=-1, keepdims=True)
    var = jnp.mean(jnp.square(x - mean), axis=-1, keepdims=True)
    o_ref[...] = jnp.maximum((x - mean) * jax.lax.rsqrt(var + 1e-5), 0.0)


def instance_norm_relu(x):
    """x: (C, B, H, W) -> normalized+ReLU, same layout."""
    c, bsz, h, w = x.shape
    hw = h * w
    ct = _channel_tile(c, bsz * hw, max(2 << 20, _VMEM_LIMIT // 8))
    y = pl.pallas_call(
        _inorm_relu_kernel,
        out_shape=jax.ShapeDtypeStruct((c, bsz, hw), jnp.float32),
        grid=(c // ct,),
        in_specs=[pl.BlockSpec((ct, bsz, hw), lambda i: (i, 0, 0))],
        out_specs=pl.BlockSpec((ct, bsz, hw), lambda i: (i, 0, 0)),
        compiler_params=pltpu.CompilerParams(
            dimension_semantics=("parallel",),
            vmem_limit_bytes=_VMEM_LIMIT),
    )(x.reshape(c, bsz, hw))
    return y.reshape(c, bsz, h, w)


def _inst_pool_kernel(x_ref, inst_ref, o_ref):
    # Per (batch, channel): mean of x over positions where inst == 1, scattered
    # back onto those positions; all other positions stay zero.  This matches
    # Encoder.instancewise_average_pooling (its class loop is idempotent since
    # the body always compares `inst == 1`); an all-empty mask yields zeros,
    # which is also what the PyTorch code produces (no indexes -> no writes).
    x = x_ref[...]                                        # (1, C, HW)
    maskf = (inst_ref[...] == 1).astype(jnp.float32)      # (1, 1, HW)
    cnt = jnp.sum(maskf, axis=-1, keepdims=True)
    ssum = jnp.sum(x * maskf, axis=-1, keepdims=True)
    mean = ssum / jnp.maximum(cnt, 1.0)
    o_ref[...] = mean * maskf


def instance_pool(x, inst):
    """x: (B, C, H, W) NCHW, inst: (B, 1, H, W) int."""
    bsz, c, h, w = x.shape
    hw = h * w
    y = pl.pallas_call(
        _inst_pool_kernel,
        out_shape=jax.ShapeDtypeStruct((bsz, c, hw), jnp.float32),
        grid=(bsz,),
        in_specs=[pl.BlockSpec((1, c, hw), lambda b: (b, 0, 0)),
                  pl.BlockSpec((1, 1, hw), lambda b: (b, 0, 0))],
        out_specs=pl.BlockSpec((1, c, hw), lambda b: (b, 0, 0)),
        compiler_params=pltpu.CompilerParams(
            dimension_semantics=("parallel",),
            vmem_limit_bytes=_VMEM_LIMIT),
    )(x.reshape(bsz, c, hw), inst.reshape(bsz, 1, hw))
    return y.reshape(bsz, c, h, w)


# ---------------------------------------------------------------------------
# Encoder forward (hot path is the Pallas GEMM / norm / pool kernels)
# ---------------------------------------------------------------------------
def encoder_forward(x, inst, params, base, n_layers):
    # one small transpose to the internal (C, B, H, W) layout
    h = jnp.transpose(x, (1, 0, 2, 3))
    # ReflectionPad2d(3) -> Conv7 -> IN -> ReLU
    w, b = params["conv0"]
    h = jnp.pad(h, ((0, 0), (0, 0), (3, 3), (3, 3)), mode="reflect")
    h = conv2d(h, w, b, stride=1)
    h = instance_norm_relu(h)
    # downsampling: Conv3 s2 p1 -> IN -> ReLU
    for i in range(n_layers):
        w, b = params[f"down{i}"]
        hp = jnp.pad(h, ((0, 0), (0, 0), (1, 1), (1, 1)))
        h = conv2d(hp, w, b, stride=2)
        h = instance_norm_relu(h)
    # upsampling: ConvT3 s2 p1 op1 -> IN -> ReLU  (sub-pixel decomposition)
    for i in range(n_layers):
        w, b = params[f"up{i}"]
        h = conv_transpose2d(h, w, b)
        h = instance_norm_relu(h)
    # ReflectionPad2d(3) -> Conv7 -> Tanh (tanh fused into the GEMM epilogue)
    w, b = params["convf"]
    h = jnp.pad(h, ((0, 0), (0, 0), (3, 3), (3, 3)), mode="reflect")
    h = conv2d(h, w, b, stride=1, act="tanh")
    # back to NCHW (cheap: out_channels is small), then instance-wise pooling
    h = jnp.transpose(h, (1, 0, 2, 3))
    return instance_pool(h, inst)


# ---------------------------------------------------------------------------
# Deterministic parameter init (shapes follow Encoder.__init__)
# ---------------------------------------------------------------------------
def init_params(key, in_ch, out_ch, base, n_layers):
    params = {}
    keys = iter(jax.random.split(key, 2 * (2 + 2 * n_layers)))

    def conv_p(cout, cin, k):
        kw, kb = next(keys), next(keys)
        fan = cin * k * k
        w = jax.random.normal(kw, (cout, cin, k, k), jnp.float32) / jnp.sqrt(fan)
        b = 0.1 * jax.random.normal(kb, (cout,), jnp.float32)
        return w, b

    params["conv0"] = conv_p(base, in_ch, 7)
    ch = base
    for i in range(n_layers):
        params[f"down{i}"] = conv_p(2 * ch, ch, 3)
        ch *= 2
    for i in range(n_layers):
        kw, kb = next(keys), next(keys)
        fan = ch * 3 * 3
        w = jax.random.normal(kw, (ch, ch // 2, 3, 3), jnp.float32) / jnp.sqrt(fan)
        b = 0.1 * jax.random.normal(kb, (ch // 2,), jnp.float32)
        params[f"up{i}"] = (w, b)   # PyTorch ConvTranspose2d layout (Cin, Cout, k, k)
        ch //= 2
    params["convf"] = conv_p(out_ch, base, 7)
    return params


if __name__ == "__main__":
    B, Cin, H, W = 2, 3, 16, 16
    Cout = 4
    base_channels, n_layers = 8, 2   # small synthetic config of Encoder(3, 4, 8, 2)

    key = jax.random.PRNGKey(0)
    kx, ki, kp = jax.random.split(key, 3)
    x = jax.random.normal(kx, (B, Cin, H, W), jnp.float32)
    # integer instance map; the module's pooling keys on label == 1
    inst = jax.random.randint(ki, (B, 1, H, W), 0, 3, dtype=jnp.int32)
    params = init_params(kp, Cin, Cout, base_channels, n_layers)

    fwd = jax.jit(functools.partial(encoder_forward,
                                    base=base_channels, n_layers=n_layers))
    out = fwd(x, inst, params)
    out = jax.block_until_ready(out)

    assert out.shape == (B, Cout, H, W), out.shape
    assert bool(jnp.all(jnp.isfinite(out)))
    print("KERNEL_OK")
</pallas_src>

<mosaic_0001>
module attributes {stable_mosaic.version = 11 : i64} {
  func.func @_gemm_single_kernel(%arg0: i32, %arg1: memref<8x152xbf16, #tpu.memory_space<vmem>>, %arg2: memref<152x512xbf16, #tpu.memory_space<vmem>>, %arg3: memref<8x1xf32, #tpu.memory_space<vmem>>, %arg4: memref<8x512xf32, #tpu.memory_space<vmem>>) attributes {dimension_semantics = [#tpu.dimension_semantics<parallel>], iteration_bounds = array<i64: 1>, scalar_prefetch = 0 : i64, scratch_operands = 0 : i64, tpu.core_type = #tpu.core_type<tc>, window_params = [{pipeline_mode = #tpu.pipeline_mode<synchronous>, transform_indices = @transform_0, window_bounds = array<i64: 8, 152>}, {transform_indices = @transform_1, window_bounds = array<i64: 152, 512>}, {pipeline_mode = #tpu.pipeline_mode<synchronous>, transform_indices = @transform_2, window_bounds = array<i64: 8, 1>}, {transform_indices = @transform_3, window_bounds = array<i64: 8, 512>}]} {
    %c0 = arith.constant 0 : index
    %c0_0 = arith.constant 0 : index
    %0 = vector.load %arg1[%c0, %c0_0] : memref<8x152xbf16, #tpu.memory_space<vmem>>, vector<8x152xbf16>
    %c0_1 = arith.constant 0 : index
    %c0_2 = arith.constant 0 : index
    %1 = vector.load %arg2[%c0_1, %c0_2] : memref<152x512xbf16, #tpu.memory_space<vmem>>, vector<152x512xbf16>
    %cst = arith.constant dense<0.000000e+00> : vector<8x512xf32>
    %2 = tpu.matmul %0, %1, %cst {dimension_numbers = #tpu.dot_dimension_numbers<[1], [0], [0], [1], [0, 0, 1, 1], [], []>} : vector<8x152xbf16>, vector<152x512xbf16>, vector<8x512xf32> -> vector<8x512xf32>
    %c0_3 = arith.constant 0 : index
    %c0_4 = arith.constant 0 : index
    %3 = vector.load %arg3[%c0_3, %c0_4] : memref<8x1xf32, #tpu.memory_space<vmem>>, vector<8x1xf32>
    %4 = vector.broadcast %3 : vector<8x1xf32> to vector<8x512xf32>
    %5 = arith.addf %2, %4 : vector<8x512xf32>
    %c0_5 = arith.constant 0 : index
    %c0_6 = arith.constant 0 : index
    %6 = vector.load %arg4[%c0_5, %c0_6] : memref<8x512xf32, #tpu.memory_space<vmem>>, vector<8x512xf32>
    tpu.vector_store %arg4[%c0_5, %c0_6], %5 {strides = array<i32>} : memref<8x512xf32, #tpu.memory_space<vmem>>, vector<8x512xf32>,
    return
  }
  func.func @transform_0(%arg0: i32) -> (i32, i32) {
    %c0_i32 = arith.constant 0 : i32
    %c0_i32_0 = arith.constant 0 : i32
    %c0_i32_1 = arith.constant 0 : i32
    return %c0_i32, %c0_i32_0 : i32, i32
  }
  func.func @transform_1(%arg0: i32) -> (i32, i32) {
    %c0_i32 = arith.constant 0 : i32
    %c0_i32_0 = arith.constant 0 : i32
    return %c0_i32, %arg0 : i32, i32
  }
  func.func @transform_2(%arg0: i32) -> (i32, i32) {
    %c0_i32 = arith.constant 0 : i32
    %c0_i32_0 = arith.constant 0 : i32
    %c0_i32_1 = arith.constant 0 : i32
    return %c0_i32, %c0_i32_0 : i32, i32
  }
  func.func @transform_3(%arg0: i32) -> (i32, i32) {
    %c0_i32 = arith.constant 0 : i32
    %c0_i32_0 = arith.constant 0 : i32
    return %c0_i32, %arg0 : i32, i32
  }
}

module attributes {stable_mosaic.version = 11 : i64} {
  func.func @_inorm_relu_kernel(%arg0: i32, %arg1: memref<8x2x256xf32, #tpu.memory_space<vmem>>, %arg2: memref<8x2x256xf32, #tpu.memory_space<vmem>>) attributes {dimension_semantics = [#tpu.dimension_semantics<parallel>], iteration_bounds = array<i64: 1>, scalar_prefetch = 0 : i64, scratch_operands = 0 : i64, tpu.core_type = #tpu.core_type<tc>, window_params = [{transform_indices = @transform_0, window_bounds = array<i64: 8, 2, 256>}, {transform_indices = @transform_1, window_bounds = array<i64: 8, 2, 256>}]} {
    %c0 = arith.constant 0 : index
    %c0_0 = arith.constant 0 : index
    %c0_1 = arith.constant 0 : index
    %0 = vector.load %arg1[%c0, %c0_0, %c0_1] : memref<8x2x256xf32, #tpu.memory_space<vmem>>, vector<8x2x256xf32>
    %cst = arith.constant dense<0.000000e+00> : vector<8x2xf32>
    %1 = vector.multi_reduction <add>, %0, %cst [2] : vector<8x2x256xf32> to vector<8x2xf32>
    %2 = vector.shape_cast %1 : vector<8x2xf32> to vector<8x2x1xf32>
    %cst_2 = arith.constant 2.560000e+02 : f32
    %3 = vector.broadcast %cst_2 : f32 to vector<8x2x1xf32>
    %4 = arith.divf %2, %3 : vector<8x2x1xf32>
    %5 = vector.broadcast %4 : vector<8x2x1xf32> to vector<8x2x256xf32>
    %6 = arith.subf %0, %5 : vector<8x2x256xf32>
    %7 = arith.mulf %6, %6 : vector<8x2x256xf32>
    %cst_3 = arith.constant dense<0.000000e+00> : vector<8x2xf32>
    %8 = vector.multi_reduction <add>, %7, %cst_3 [2] : vector<8x2x256xf32> to vector<8x2xf32>
    %9 = vector.shape_cast %8 : vector<8x2xf32> to vector<8x2x1xf32>
    %cst_4 = arith.constant 2.560000e+02 : f32
    %10 = vector.broadcast %cst_4 : f32 to vector<8x2x1xf32>
    %11 = arith.divf %9, %10 : vector<8x2x1xf32>
    %12 = vector.broadcast %4 : vector<8x2x1xf32> to vector<8x2x256xf32>
    %13 = arith.subf %0, %12 : vector<8x2x256xf32>
    %cst_5 = arith.constant 9.99999974E-6 : f32
    %14 = vector.broadcast %cst_5 : f32 to vector<8x2x1xf32>
    %15 = arith.addf %11, %14 : vector<8x2x1xf32>
    %16 = math.rsqrt %15 : vector<8x2x1xf32>
    %17 = vector.broadcast %16 : vector<8x2x1xf32> to vector<8x2x256xf32>
    %18 = arith.mulf %13, %17 : vector<8x2x256xf32>
    %cst_6 = arith.constant 0.000000e+00 : f32
    %19 = vector.broadcast %cst_6 : f32 to vector<8x2x256xf32>
    %20 = arith.maximumf %18, %19 : vector<8x2x256xf32>
    %c0_7 = arith.constant 0 : index
    %c0_8 = arith.constant 0 : index
    %c0_9 = arith.constant 0 : index
    %21 = vector.load %arg2[%c0_7, %c0_8, %c0_9] : memref<8x2x256xf32, #tpu.memory_space<vmem>>, vector<8x2x256xf32>
    tpu.vector_store %arg2[%c0_7, %c0_8, %c0_9], %20 {strides = array<i32>} : memref<8x2x256xf32, #tpu.memory_space<vmem>>, vector<8x2x256xf32>,
    return
  }
  func.func @transform_0(%arg0: i32) -> (i32, i32, i32) {
    %c0_i32 = arith.constant 0 : i32
    %c0_i32_0 = arith.constant 0 : i32
    %c0_i32_1 = arith.constant 0 : i32
    return %arg0, %c0_i32, %c0_i32_0 : i32, i32, i32
  }
  func.func @transform_1(%arg0: i32) -> (i32, i32, i32) {
    %c0_i32 = arith.constant 0 : i32
    %c0_i32_0 = arith.constant 0 : i32
    %c0_i32_1 = arith.constant 0 : i32
    return %arg0, %c0_i32, %c0_i32_0 : i32, i32, i32
  }
}

module attributes {stable_mosaic.version = 11 : i64} {
  func.func @_gemm_single_kernel(%arg0: i32, %arg1: memref<16x72xbf16, #tpu.memory_space<vmem>>, %arg2: memref<72x128xbf16, #tpu.memory_space<vmem>>, %arg3: memref<16x1xf32, #tpu.memory_space<vmem>>, %arg4: memref<16x128xf32, #tpu.memory_space<vmem>>) attributes {dimension_semantics = [#tpu.dimension_semantics<parallel>], iteration_bounds = array<i64: 1>, scalar_prefetch = 0 : i64, scratch_operands = 0 : i64, tpu.core_type = #tpu.core_type<tc>, window_params = [{pipeline_mode = #tpu.pipeline_mode<synchronous>, transform_indices = @transform_0, window_bounds = array<i64: 16, 72>}, {transform_indices = @transform_1, window_bounds = array<i64: 72, 128>}, {pipeline_mode = #tpu.pipeline_mode<synchronous>, transform_indices = @transform_2, window_bounds = array<i64: 16, 1>}, {transform_indices = @transform_3, window_bounds = array<i64: 16, 128>}]} {
    %c0 = arith.constant 0 : index
    %c0_0 = arith.constant 0 : index
    %0 = vector.load %arg1[%c0, %c0_0] : memref<16x72xbf16, #tpu.memory_space<vmem>>, vector<16x72xbf16>
    %c0_1 = arith.constant 0 : index
    %c0_2 = arith.constant 0 : index
    %1 = vector.load %arg2[%c0_1, %c0_2] : memref<72x128xbf16, #tpu.memory_space<vmem>>, vector<72x128xbf16>
    %cst = arith.constant dense<0.000000e+00> : vector<16x128xf32>
    %2 = tpu.matmul %0, %1, %cst {dimension_numbers = #tpu.dot_dimension_numbers<[1], [0], [0], [1], [0, 0, 1, 1], [], []>} : vector<16x72xbf16>, vector<72x128xbf16>, vector<16x128xf32> -> vector<16x128xf32>
    %c0_3 = arith.constant 0 : index
    %c0_4 = arith.constant 0 : index
    %3 = vector.load %arg3[%c0_3, %c0_4] : memref<16x1xf32, #tpu.memory_space<vmem>>, vector<16x1xf32>
    %4 = vector.broadcast %3 : vector<16x1xf32> to vector<16x128xf32>
    %5 = arith.addf %2, %4 : vector<16x128xf32>
    %c0_5 = arith.constant 0 : index
    %c0_6 = arith.constant 0 : index
    %6 = vector.load %arg4[%c0_5, %c0_6] : memref<16x128xf32, #tpu.memory_space<vmem>>, vector<16x128xf32>
    tpu.vector_store %arg4[%c0_5, %c0_6], %5 {strides = array<i32>} : memref<16x128xf32, #tpu.memory_space<vmem>>, vector<16x128xf32>,
    return
  }
  func.func @transform_0(%arg0: i32) -> (i32, i32) {
    %c0_i32 = arith.constant 0 : i32
    %c0_i32_0 = arith.constant 0 : i32
    %c0_i32_1 = arith.constant 0 : i32
    return %c0_i32, %c0_i32_0 : i32, i32
  }
  func.func @transform_1(%arg0: i32) -> (i32, i32) {
    %c0_i32 = arith.constant 0 : i32
    %c0_i32_0 = arith.constant 0 : i32
    return %c0_i32, %arg0 : i32, i32
  }
  func.func @transform_2(%arg0: i32) -> (i32, i32) {
    %c0_i32 = arith.constant 0 : i32
    %c0_i32_0 = arith.constant 0 : i32
    %c0_i32_1 = arith.constant 0 : i32
    return %c0_i32, %c0_i32_0 : i32, i32
  }
  func.func @transform_3(%arg0: i32) -> (i32, i32) {
    %c0_i32 = arith.constant 0 : i32
    %c0_i32_0 = arith.constant 0 : i32
    return %c0_i32, %arg0 : i32, i32
  }
}

module attributes {stable_mosaic.version = 11 : i64} {
  func.func @_inorm_relu_kernel(%arg0: i32, %arg1: memref<16x2x64xf32, #tpu.memory_space<vmem>>, %arg2: memref<16x2x64xf32, #tpu.memory_space<vmem>>) attributes {dimension_semantics = [#tpu.dimension_semantics<parallel>], iteration_bounds = array<i64: 1>, scalar_prefetch = 0 : i64, scratch_operands = 0 : i64, tpu.core_type = #tpu.core_type<tc>, window_params = [{transform_indices = @transform_0, window_bounds = array<i64: 16, 2, 64>}, {transform_indices = @transform_1, window_bounds = array<i64: 16, 2, 64>}]} {
    %c0 = arith.constant 0 : index
    %c0_0 = arith.constant 0 : index
    %c0_1 = arith.constant 0 : index
    %0 = vector.load %arg1[%c0, %c0_0, %c0_1] : memref<16x2x64xf32, #tpu.memory_space<vmem>>, vector<16x2x64xf32>
    %cst = arith.constant dense<0.000000e+00> : vector<16x2xf32>
    %1 = vector.multi_reduction <add>, %0, %cst [2] : vector<16x2x64xf32> to vector<16x2xf32>
    %2 = vector.shape_cast %1 : vector<16x2xf32> to vector<16x2x1xf32>
    %cst_2 = arith.constant 6.400000e+01 : f32
    %3 = vector.broadcast %cst_2 : f32 to vector<16x2x1xf32>
    %4 = arith.divf %2, %3 : vector<16x2x1xf32>
    %5 = vector.broadcast %4 : vector<16x2x1xf32> to vector<16x2x64xf32>
    %6 = arith.subf %0, %5 : vector<16x2x64xf32>
    %7 = arith.mulf %6, %6 : vector<16x2x64xf32>
    %cst_3 = arith.constant dense<0.000000e+00> : vector<16x2xf32>
    %8 = vector.multi_reduction <add>, %7, %cst_3 [2] : vector<16x2x64xf32> to vector<16x2xf32>
    %9 = vector.shape_cast %8 : vector<16x2xf32> to vector<16x2x1xf32>
    %cst_4 = arith.constant 6.400000e+01 : f32
    %10 = vector.broadcast %cst_4 : f32 to vector<16x2x1xf32>
    %11 = arith.divf %9, %10 : vector<16x2x1xf32>
    %12 = vector.broadcast %4 : vector<16x2x1xf32> to vector<16x2x64xf32>
    %13 = arith.subf %0, %12 : vector<16x2x64xf32>
    %cst_5 = arith.constant 9.99999974E-6 : f32
    %14 = vector.broadcast %cst_5 : f32 to vector<16x2x1xf32>
    %15 = arith.addf %11, %14 : vector<16x2x1xf32>
    %16 = math.rsqrt %15 : vector<16x2x1xf32>
    %17 = vector.broadcast %16 : vector<16x2x1xf32> to vector<16x2x64xf32>
    %18 = arith.mulf %13, %17 : vector<16x2x64xf32>
    %cst_6 = arith.constant 0.000000e+00 : f32
    %19 = vector.broadcast %cst_6 : f32 to vector<16x2x64xf32>
    %20 = arith.maximumf %18, %19 : vector<16x2x64xf32>
    %c0_7 = arith.constant 0 : index
    %c0_8 = arith.constant 0 : index
    %c0_9 = arith.constant 0 : index
    %21 = vector.load %arg2[%c0_7, %c0_8, %c0_9] : memref<16x2x64xf32, #tpu.memory_space<vmem>>, vector<16x2x64xf32>
    tpu.vector_store %arg2[%c0_7, %c0_8, %c0_9], %20 {strides = array<i32>} : memref<16x2x64xf32, #tpu.memory_space<vmem>>, vector<16x2x64xf32>,
    return
  }
  func.func @transform_0(%arg0: i32) -> (i32, i32, i32) {
    %c0_i32 = arith.constant 0 : i32
    %c0_i32_0 = arith.constant 0 : i32
    %c0_i32_1 = arith.constant 0 : i32
    return %arg0, %c0_i32, %c0_i32_0 : i32, i32, i32
  }
  func.func @transform_1(%arg0: i32) -> (i32, i32, i32) {
    %c0_i32 = arith.constant 0 : i32
    %c0_i32_0 = arith.constant 0 : i32
    %c0_i32_1 = arith.constant 0 : i32
    return %arg0, %c0_i32, %c0_i32_0 : i32, i32, i32
  }
}

module attributes {stable_mosaic.version = 11 : i64} {
  func.func @_gemm_single_kernel(%arg0: i32, %arg1: memref<32x144xbf16, #tpu.memory_space<vmem>>, %arg2: memref<144x128xbf16, #tpu.memory_space<vmem>>, %arg3: memref<32x1xf32, #tpu.memory_space<vmem>>, %arg4: memref<32x128xf32, #tpu.memory_space<vmem>>) attributes {dimension_semantics = [#tpu.dimension_semantics<parallel>], iteration_bounds = array<i64: 1>, scalar_prefetch = 0 : i64, scratch_operands = 0 : i64, tpu.core_type = #tpu.core_type<tc>, window_params = [{pipeline_mode = #tpu.pipeline_mode<synchronous>, transform_indices = @transform_0, window_bounds = array<i64: 32, 144>}, {transform_indices = @transform_1, window_bounds = array<i64: 144, 128>}, {pipeline_mode = #tpu.pipeline_mode<synchronous>, transform_indices = @transform_2, window_bounds = array<i64: 32, 1>}, {transform_indices = @transform_3, window_bounds = array<i64: 32, 128>}]} {
    %c0 = arith.constant 0 : index
    %c0_0 = arith.constant 0 : index
    %0 = vector.load %arg1[%c0, %c0_0] : memref<32x144xbf16, #tpu.memory_space<vmem>>, vector<32x144xbf16>
    %c0_1 = arith.constant 0 : index
    %c0_2 = arith.constant 0 : index
    %1 = vector.load %arg2[%c0_1, %c0_2] : memref<144x128xbf16, #tpu.memory_space<vmem>>, vector<144x128xbf16>
    %cst = arith.constant dense<0.000000e+00> : vector<32x128xf32>
    %2 = tpu.matmul %0, %1, %cst {dimension_numbers = #tpu.dot_dimension_numbers<[1], [0], [0], [1], [0, 0, 1, 1], [], []>} : vector<32x144xbf16>, vector<144x128xbf16>, vector<32x128xf32> -> vector<32x128xf32>
    %c0_3 = arith.constant 0 : index
    %c0_4 = arith.constant 0 : index
    %3 = vector.load %arg3[%c0_3, %c0_4] : memref<32x1xf32, #tpu.memory_space<vmem>>, vector<32x1xf32>
    %4 = vector.broadcast %3 : vector<32x1xf32> to vector<32x128xf32>
    %5 = arith.addf %2, %4 : vector<32x128xf32>
    %c0_5 = arith.constant 0 : index
    %c0_6 = arith.constant 0 : index
    %6 = vector.load %arg4[%c0_5, %c0_6] : memref<32x128xf32, #tpu.memory_space<vmem>>, vector<32x128xf32>
    tpu.vector_store %arg4[%c0_5, %c0_6], %5 {strides = array<i32>} : memref<32x128xf32, #tpu.memory_space<vmem>>, vector<32x128xf32>,
    return
  }
  func.func @transform_0(%arg0: i32) -> (i32, i32) {
    %c0_i32 = arith.constant 0 : i32
    %c0_i32_0 = arith.constant 0 : i32
    %c0_i32_1 = arith.constant 0 : i32
    return %c0_i32, %c0_i32_0 : i32, i32
  }
  func.func @transform_1(%arg0: i32) -> (i32, i32) {
    %c0_i32 = arith.constant 0 : i32
    %c0_i32_0 = arith.constant 0 : i32
    return %c0_i32, %arg0 : i32, i32
  }
  func.func @transform_2(%arg0: i32) -> (i32, i32) {
    %c0_i32 = arith.constant 0 : i32
    %c0_i32_0 = arith.constant 0 : i32
    %c0_i32_1 = arith.constant 0 : i32
    return %c0_i32, %c0_i32_0 : i32, i32
  }
  func.func @transform_3(%arg0: i32) -> (i32, i32) {
    %c0_i32 = arith.constant 0 : i32
    %c0_i32_0 = arith.constant 0 : i32
    return %c0_i32, %arg0 : i32, i32
  }
}

module attributes {stable_mosaic.version = 11 : i64} {
  func.func @_inorm_relu_kernel(%arg0: i32, %arg1: memref<32x2x16xf32, #tpu.memory_space<vmem>>, %arg2: memref<32x2x16xf32, #tpu.memory_space<vmem>>) attributes {dimension_semantics = [#tpu.dimension_semantics<parallel>], iteration_bounds = array<i64: 1>, scalar_prefetch = 0 : i64, scratch_operands = 0 : i64, tpu.core_type = #tpu.core_type<tc>, window_params = [{transform_indices = @transform_0, window_bounds = array<i64: 32, 2, 16>}, {transform_indices = @transform_1, window_bounds = array<i64: 32, 2, 16>}]} {
    %c0 = arith.constant 0 : index
    %c0_0 = arith.constant 0 : index
    %c0_1 = arith.constant 0 : index
    %0 = vector.load %arg1[%c0, %c0_0, %c0_1] : memref<32x2x16xf32, #tpu.memory_space<vmem>>, vector<32x2x16xf32>
    %cst = arith.constant dense<0.000000e+00> : vector<32x2xf32>
    %1 = vector.multi_reduction <add>, %0, %cst [2] : vector<32x2x16xf32> to vector<32x2xf32>
    %2 = vector.shape_cast %1 : vector<32x2xf32> to vector<32x2x1xf32>
    %cst_2 = arith.constant 1.600000e+01 : f32
    %3 = vector.broadcast %cst_2 : f32 to vector<32x2x1xf32>
    %4 = arith.divf %2, %3 : vector<32x2x1xf32>
    %5 = vector.broadcast %4 : vector<32x2x1xf32> to vector<32x2x16xf32>
    %6 = arith.subf %0, %5 : vector<32x2x16xf32>
    %7 = arith.mulf %6, %6 : vector<32x2x16xf32>
    %cst_3 = arith.constant dense<0.000000e+00> : vector<32x2xf32>
    %8 = vector.multi_reduction <add>, %7, %cst_3 [2] : vector<32x2x16xf32> to vector<32x2xf32>
    %9 = vector.shape_cast %8 : vector<32x2xf32> to vector<32x2x1xf32>
    %cst_4 = arith.constant 1.600000e+01 : f32
    %10 = vector.broadcast %cst_4 : f32 to vector<32x2x1xf32>
    %11 = arith.divf %9, %10 : vector<32x2x1xf32>
    %12 = vector.broadcast %4 : vector<32x2x1xf32> to vector<32x2x16xf32>
    %13 = arith.subf %0, %12 : vector<32x2x16xf32>
    %cst_5 = arith.constant 9.99999974E-6 : f32
    %14 = vector.broadcast %cst_5 : f32 to vector<32x2x1xf32>
    %15 = arith.addf %11, %14 : vector<32x2x1xf32>
    %16 = math.rsqrt %15 : vector<32x2x1xf32>
    %17 = vector.broadcast %16 : vector<32x2x1xf32> to vector<32x2x16xf32>
    %18 = arith.mulf %13, %17 : vector<32x2x16xf32>
    %cst_6 = arith.constant 0.000000e+00 : f32
    %19 = vector.broadcast %cst_6 : f32 to vector<32x2x16xf32>
    %20 = arith.maximumf %18, %19 : vector<32x2x16xf32>
    %c0_7 = arith.constant 0 : index
    %c0_8 = arith.constant 0 : index
    %c0_9 = arith.constant 0 : index
    %21 = vector.load %arg2[%c0_7, %c0_8, %c0_9] : memref<32x2x16xf32, #tpu.memory_space<vmem>>, vector<32x2x16xf32>
    tpu.vector_store %arg2[%c0_7, %c0_8, %c0_9], %20 {strides = array<i32>} : memref<32x2x16xf32, #tpu.memory_space<vmem>>, vector<32x2x16xf32>,
    return
  }
  func.func @transform_0(%arg0: i32) -> (i32, i32, i32) {
    %c0_i32 = arith.constant 0 : i32
    %c0_i32_0 = arith.constant 0 : i32
    %c0_i32_1 = arith.constant 0 : i32
    return %arg0, %c0_i32, %c0_i32_0 : i32, i32, i32
  }
  func.func @transform_1(%arg0: i32) -> (i32, i32, i32) {
    %c0_i32 = arith.constant 0 : i32
    %c0_i32_0 = arith.constant 0 : i32
    %c0_i32_1 = arith.constant 0 : i32
    return %arg0, %c0_i32, %c0_i32_0 : i32, i32, i32
  }
}

module attributes {stable_mosaic.version = 11 : i64} {
  func.func @_gemm_single_kernel(%arg0: i32, %arg1: memref<16x32xbf16, #tpu.memory_space<vmem>>, %arg2: memref<32x128xbf16, #tpu.memory_space<vmem>>, %arg3: memref<16x1xf32, #tpu.memory_space<vmem>>, %arg4: memref<16x128xf32, #tpu.memory_space<vmem>>) attributes {dimension_semantics = [#tpu.dimension_semantics<parallel>], iteration_bounds = array<i64: 1>, scalar_prefetch = 0 : i64, scratch_operands = 0 : i64, tpu.core_type = #tpu.core_type<tc>, window_params = [{pipeline_mode = #tpu.pipeline_mode<synchronous>, transform_indices = @transform_0, window_bounds = array<i64: 16, 32>}, {transform_indices = @transform_1, window_bounds = array<i64: 32, 128>}, {pipeline_mode = #tpu.pipeline_mode<synchronous>, transform_indices = @transform_2, window_bounds = array<i64: 16, 1>}, {transform_indices = @transform_3, window_bounds = array<i64: 16, 128>}]} {
    %c0 = arith.constant 0 : index
    %c0_0 = arith.constant 0 : index
    %0 = vector.load %arg1[%c0, %c0_0] : memref<16x32xbf16, #tpu.memory_space<vmem>>, vector<16x32xbf16>
    %c0_1 = arith.constant 0 : index
    %c0_2 = arith.constant 0 : index
    %1 = vector.load %arg2[%c0_1, %c0_2] : memref<32x128xbf16, #tpu.memory_space<vmem>>, vector<32x128xbf16>
    %cst = arith.constant dense<0.000000e+00> : vector<16x128xf32>
    %2 = tpu.matmul %0, %1, %cst {dimension_numbers = #tpu.dot_dimension_numbers<[1], [0], [0], [1], [0, 0, 1, 1], [], []>} : vector<16x32xbf16>, vector<32x128xbf16>, vector<16x128xf32> -> vector<16x128xf32>
    %c0_3 = arith.constant 0 : index
    %c0_4 = arith.constant 0 : index
    %3 = vector.load %arg3[%c0_3, %c0_4] : memref<16x1xf32, #tpu.memory_space<vmem>>, vector<16x1xf32>
    %4 = vector.broadcast %3 : vector<16x1xf32> to vector<16x128xf32>
    %5 = arith.addf %2, %4 : vector<16x128xf32>
    %c0_5 = arith.constant 0 : index
    %c0_6 = arith.constant 0 : index
    %6 = vector.load %arg4[%c0_5, %c0_6] : memref<16x128xf32, #tpu.memory_space<vmem>>, vector<16x128xf32>
    tpu.vector_store %arg4[%c0_5, %c0_6], %5 {strides = array<i32>} : memref<16x128xf32, #tpu.memory_space<vmem>>, vector<16x128xf32>,
    return
  }
  func.func @transform_0(%arg0: i32) -> (i32, i32) {
    %c0_i32 = arith.constant 0 : i32
    %c0_i32_0 = arith.constant 0 : i32
    %c0_i32_1 = arith.constant 0 : i32
    return %c0_i32, %c0_i32_0 : i32, i32
  }
  func.func @transform_1(%arg0: i32) -> (i32, i32) {
    %c0_i32 = arith.constant 0 : i32
    %c0_i32_0 = arith.constant 0 : i32
    return %c0_i32, %arg0 : i32, i32
  }
  func.func @transform_2(%arg0: i32) -> (i32, i32) {
    %c0_i32 = arith.constant 0 : i32
    %c0_i32_0 = arith.constant 0 : i32
    %c0_i32_1 = arith.constant 0 : i32
    return %c0_i32, %c0_i32_0 : i32, i32
  }
  func.func @transform_3(%arg0: i32) -> (i32, i32) {
    %c0_i32 = arith.constant 0 : i32
    %c0_i32_0 = arith.constant 0 : i32
    return %c0_i32, %arg0 : i32, i32
  }
}

module attributes {stable_mosaic.version = 11 : i64} {
  func.func @_gemm_single_kernel(%arg0: i32, %arg1: memref<16x64xbf16, #tpu.memory_space<vmem>>, %arg2: memref<64x128xbf16, #tpu.memory_space<vmem>>, %arg3: memref<16x1xf32, #tpu.memory_space<vmem>>, %arg4: memref<16x128xf32, #tpu.memory_space<vmem>>) attributes {dimension_semantics = [#tpu.dimension_semantics<parallel>], iteration_bounds = array<i64: 1>, scalar_prefetch = 0 : i64, scratch_operands = 0 : i64, tpu.core_type = #tpu.core_type<tc>, window_params = [{pipeline_mode = #tpu.pipeline_mode<synchronous>, transform_indices = @transform_0, window_bounds = array<i64: 16, 64>}, {transform_indices = @transform_1, window_bounds = array<i64: 64, 128>}, {pipeline_mode = #tpu.pipeline_mode<synchronous>, transform_indices = @transform_2, window_bounds = array<i64: 16, 1>}, {transform_indices = @transform_3, window_bounds = array<i64: 16, 128>}]} {
    %c0 = arith.constant 0 : index
    %c0_0 = arith.constant 0 : index
    %0 = vector.load %arg1[%c0, %c0_0] : memref<16x64xbf16, #tpu.memory_space<vmem>>, vector<16x64xbf16>
    %c0_1 = arith.constant 0 : index
    %c0_2 = arith.constant 0 : index
    %1 = vector.load %arg2[%c0_1, %c0_2] : memref<64x128xbf16, #tpu.memory_space<vmem>>, vector<64x128xbf16>
    %cst = arith.constant dense<0.000000e+00> : vector<16x128xf32>
    %2 = tpu.matmul %0, %1, %cst {dimension_numbers = #tpu.dot_dimension_numbers<[1], [0], [0], [1], [0, 0, 1, 1], [], []>} : vector<16x64xbf16>, vector<64x128xbf16>, vector<16x128xf32> -> vector<16x128xf32>
    %c0_3 = arith.constant 0 : index
    %c0_4 = arith.constant 0 : index
    %3 = vector.load %arg3[%c0_3, %c0_4] : memref<16x1xf32, #tpu.memory_space<vmem>>, vector<16x1xf32>
    %4 = vector.broadcast %3 : vector<16x1xf32> to vector<16x128xf32>
    %5 = arith.addf %2, %4 : vector<16x128xf32>
    %c0_5 = arith.constant 0 : index
    %c0_6 = arith.constant 0 : index
    %6 = vector.load %arg4[%c0_5, %c0_6] : memref<16x128xf32, #tpu.memory_space<vmem>>, vector<16x128xf32>
    tpu.vector_store %arg4[%c0_5, %c0_6], %5 {strides = array<i32>} : memref<16x128xf32, #tpu.memory_space<vmem>>, vector<16x128xf32>,
    return
  }
  func.func @transform_0(%arg0: i32) -> (i32, i32) {
    %c0_i32 = arith.constant 0 : i32
    %c0_i32_0 = arith.constant 0 : i32
    %c0_i32_1 = arith.constant 0 : i32
    return %c0_i32, %c0_i32_0 : i32, i32
  }
  func.func @transform_1(%arg0: i32) -> (i32, i32) {
    %c0_i32 = arith.constant 0 : i32
    %c0_i32_0 = arith.constant 0 : i32
    return %c0_i32, %arg0 : i32, i32
  }
  func.func @transform_2(%arg0: i32) -> (i32, i32) {
    %c0_i32 = arith.constant 0 : i32
    %c0_i32_0 = arith.constant 0 : i32
    %c0_i32_1 = arith.constant 0 : i32
    return %c0_i32, %c0_i32_0 : i32, i32
  }
  func.func @transform_3(%arg0: i32) -> (i32, i32) {
    %c0_i32 = arith.constant 0 : i32
    %c0_i32_0 = arith.constant 0 : i32
    return %c0_i32, %arg0 : i32, i32
  }
}

module attributes {stable_mosaic.version = 11 : i64} {
  func.func @_gemm_single_kernel(%arg0: i32, %arg1: memref<16x128xbf16, #tpu.memory_space<vmem>>, %arg2: memref<128x128xbf16, #tpu.memory_space<vmem>>, %arg3: memref<16x1xf32, #tpu.memory_space<vmem>>, %arg4: memref<16x128xf32, #tpu.memory_space<vmem>>) attributes {dimension_semantics = [#tpu.dimension_semantics<parallel>], iteration_bounds = array<i64: 1>, scalar_prefetch = 0 : i64, scratch_operands = 0 : i64, tpu.core_type = #tpu.core_type<tc>, window_params = [{pipeline_mode = #tpu.pipeline_mode<synchronous>, transform_indices = @transform_0, window_bounds = array<i64: 16, 128>}, {transform_indices = @transform_1, window_bounds = array<i64: 128, 128>}, {pipeline_mode = #tpu.pipeline_mode<synchronous>, transform_indices = @transform_2, window_bounds = array<i64: 16, 1>}, {transform_indices = @transform_3, window_bounds = array<i64: 16, 128>}]} {
    %c0 = arith.constant 0 : index
    %c0_0 = arith.constant 0 : index
    %0 = vector.load %arg1[%c0, %c0_0] : memref<16x128xbf16, #tpu.memory_space<vmem>>, vector<16x128xbf16>
    %c0_1 = arith.constant 0 : index
    %c0_2 = arith.constant 0 : index
    %1 = vector.load %arg2[%c0_1, %c0_2] : memref<128x128xbf16, #tpu.memory_space<vmem>>, vector<128x128xbf16>
    %cst = arith.constant dense<0.000000e+00> : vector<16x128xf32>
    %2 = tpu.matmul %0, %1, %cst {dimension_numbers = #tpu.dot_dimension_numbers<[1], [0], [0], [1], [0, 0, 1, 1], [], []>} : vector<16x128xbf16>, vector<128x128xbf16>, vector<16x128xf32> -> vector<16x128xf32>
    %c0_3 = arith.constant 0 : index
    %c0_4 = arith.constant 0 : index
    %3 = vector.load %arg3[%c0_3, %c0_4] : memref<16x1xf32, #tpu.memory_space<vmem>>, vector<16x1xf32>
    %4 = vector.broadcast %3 : vector<16x1xf32> to vector<16x128xf32>
    %5 = arith.addf %2, %4 : vector<16x128xf32>
    %c0_5 = arith.constant 0 : index
    %c0_6 = arith.constant 0 : index
    %6 = vector.load %arg4[%c0_5, %c0_6] : memref<16x128xf32, #tpu.memory_space<vmem>>, vector<16x128xf32>
    tpu.vector_store %arg4[%c0_5, %c0_6], %5 {strides = array<i32>} : memref<16x128xf32, #tpu.memory_space<vmem>>, vector<16x128xf32>,
    return
  }
  func.func @transform_0(%arg0: i32) -> (i32, i32) {
    %c0_i32 = arith.constant 0 : i32
    %c0_i32_0 = arith.constant 0 : i32
    %c0_i32_1 = arith.constant 0 : i32
    return %c0_i32, %c0_i32_0 : i32, i32
  }
  func.func @transform_1(%arg0: i32) -> (i32, i32) {
    %c0_i32 = arith.constant 0 : i32
    %c0_i32_0 = arith.constant 0 : i32
    return %c0_i32, %arg0 : i32, i32
  }
  func.func @transform_2(%arg0: i32) -> (i32, i32) {
    %c0_i32 = arith.constant 0 : i32
    %c0_i32_0 = arith.constant 0 : i32
    %c0_i32_1 = arith.constant 0 : i32
    return %c0_i32, %c0_i32_0 : i32, i32
  }
  func.func @transform_3(%arg0: i32) -> (i32, i32) {
    %c0_i32 = arith.constant 0 : i32
    %c0_i32_0 = arith.constant 0 : i32
    return %c0_i32, %arg0 : i32, i32
  }
}

module attributes {stable_mosaic.version = 11 : i64} {
  func.func @_gemm_single_kernel(%arg0: i32, %arg1: memref<8x32xbf16, #tpu.memory_space<vmem>>, %arg2: memref<32x128xbf16, #tpu.memory_space<vmem>>, %arg3: memref<8x1xf32, #tpu.memory_space<vmem>>, %arg4: memref<8x128xf32, #tpu.memory_space<vmem>>) attributes {dimension_semantics = [#tpu.dimension_semantics<parallel>], iteration_bounds = array<i64: 1>, scalar_prefetch = 0 : i64, scratch_operands = 0 : i64, tpu.core_type = #tpu.core_type<tc>, window_params = [{pipeline_mode = #tpu.pipeline_mode<synchronous>, transform_indices = @transform_0, window_bounds = array<i64: 8, 32>}, {transform_indices = @transform_1, window_bounds = array<i64: 32, 128>}, {pipeline_mode = #tpu.pipeline_mode<synchronous>, transform_indices = @transform_2, window_bounds = array<i64: 8, 1>}, {transform_indices = @transform_3, window_bounds = array<i64: 8, 128>}]} {
    %c0 = arith.constant 0 : index
    %c0_0 = arith.constant 0 : index
    %0 = vector.load %arg1[%c0, %c0_0] : memref<8x32xbf16, #tpu.memory_space<vmem>>, vector<8x32xbf16>
    %c0_1 = arith.constant 0 : index
    %c0_2 = arith.constant 0 : index
    %1 = vector.load %arg2[%c0_1, %c0_2] : memref<32x128xbf16, #tpu.memory_space<vmem>>, vector<32x128xbf16>
    %cst = arith.constant dense<0.000000e+00> : vector<8x128xf32>
    %2 = tpu.matmul %0, %1, %cst {dimension_numbers = #tpu.dot_dimension_numbers<[1], [0], [0], [1], [0, 0, 1, 1], [], []>} : vector<8x32xbf16>, vector<32x128xbf16>, vector<8x128xf32> -> vector<8x128xf32>
    %c0_3 = arith.constant 0 : index
    %c0_4 = arith.constant 0 : index
    %3 = vector.load %arg3[%c0_3, %c0_4] : memref<8x1xf32, #tpu.memory_space<vmem>>, vector<8x1xf32>
    %4 = vector.broadcast %3 : vector<8x1xf32> to vector<8x128xf32>
    %5 = arith.addf %2, %4 : vector<8x128xf32>
    %c0_5 = arith.constant 0 : index
    %c0_6 = arith.constant 0 : index
    %6 = vector.load %arg4[%c0_5, %c0_6] : memref<8x128xf32, #tpu.memory_space<vmem>>, vector<8x128xf32>
    tpu.vector_store %arg4[%c0_5, %c0_6], %5 {strides = array<i32>} : memref<8x128xf32, #tpu.memory_space<vmem>>, vector<8x128xf32>,
    return
  }
  func.func @transform_0(%arg0: i32) -> (i32, i32) {
    %c0_i32 = arith.constant 0 : i32
    %c0_i32_0 = arith.constant 0 : i32
    %c0_i32_1 = arith.constant 0 : i32
    return %c0_i32, %c0_i32_0 : i32, i32
  }
  func.func @transform_1(%arg0: i32) -> (i32, i32) {
    %c0_i32 = arith.constant 0 : i32
    %c0_i32_0 = arith.constant 0 : i32
    return %c0_i32, %arg0 : i32, i32
  }
  func.func @transform_2(%arg0: i32) -> (i32, i32) {
    %c0_i32 = arith.constant 0 : i32
    %c0_i32_0 = arith.constant 0 : i32
    %c0_i32_1 = arith.constant 0 : i32
    return %c0_i32, %c0_i32_0 : i32, i32
  }
  func.func @transform_3(%arg0: i32) -> (i32, i32) {
    %c0_i32 = arith.constant 0 : i32
    %c0_i32_0 = arith.constant 0 : i32
    return %c0_i32, %arg0 : i32, i32
  }
}

module attributes {stable_mosaic.version = 11 : i64} {
  func.func @_gemm_single_kernel(%arg0: i32, %arg1: memref<8x16xbf16, #tpu.memory_space<vmem>>, %arg2: memref<16x128xbf16, #tpu.memory_space<vmem>>, %arg3: memref<8x1xf32, #tpu.memory_space<vmem>>, %arg4: memref<8x128xf32, #tpu.memory_space<vmem>>) attributes {dimension_semantics = [#tpu.dimension_semantics<parallel>], iteration_bounds = array<i64: 1>, scalar_prefetch = 0 : i64, scratch_operands = 0 : i64, tpu.core_type = #tpu.core_type<tc>, window_params = [{pipeline_mode = #tpu.pipeline_mode<synchronous>, transform_indices = @transform_0, window_bounds = array<i64: 8, 16>}, {transform_indices = @transform_1, window_bounds = array<i64: 16, 128>}, {pipeline_mode = #tpu.pipeline_mode<synchronous>, transform_indices = @transform_2, window_bounds = array<i64: 8, 1>}, {transform_indices = @transform_3, window_bounds = array<i64: 8, 128>}]} {
    %c0 = arith.constant 0 : index
    %c0_0 = arith.constant 0 : index
    %0 = vector.load %arg1[%c0, %c0_0] : memref<8x16xbf16, #tpu.memory_space<vmem>>, vector<8x16xbf16>
    %c0_1 = arith.constant 0 : index
    %c0_2 = arith.constant 0 : index
    %1 = vector.load %arg2[%c0_1, %c0_2] : memref<16x128xbf16, #tpu.memory_space<vmem>>, vector<16x128xbf16>
    %cst = arith.constant dense<0.000000e+00> : vector<8x128xf32>
    %2 = tpu.matmul %0, %1, %cst {dimension_numbers = #tpu.dot_dimension_numbers<[1], [0], [0], [1], [0, 0, 1, 1], [], []>} : vector<8x16xbf16>, vector<16x128xbf16>, vector<8x128xf32> -> vector<8x128xf32>
    %c0_3 = arith.constant 0 : index
    %c0_4 = arith.constant 0 : index
    %3 = vector.load %arg3[%c0_3, %c0_4] : memref<8x1xf32, #tpu.memory_space<vmem>>, vector<8x1xf32>
    %4 = vector.broadcast %3 : vector<8x1xf32> to vector<8x128xf32>
    %5 = arith.addf %2, %4 : vector<8x128xf32>
    %c0_5 = arith.constant 0 : index
    %c0_6 = arith.constant 0 : index
    %6 = vector.load %arg4[%c0_5, %c0_6] : memref<8x128xf32, #tpu.memory_space<vmem>>, vector<8x128xf32>
    tpu.vector_store %arg4[%c0_5, %c0_6], %5 {strides = array<i32>} : memref<8x128xf32, #tpu.memory_space<vmem>>, vector<8x128xf32>,
    return
  }
  func.func @transform_0(%arg0: i32) -> (i32, i32) {
    %c0_i32 = arith.constant 0 : i32
    %c0_i32_0 = arith.constant 0 : i32
    %c0_i32_1 = arith.constant 0 : i32
    return %c0_i32, %c0_i32_0 : i32, i32
  }
  func.func @transform_1(%arg0: i32) -> (i32, i32) {
    %c0_i32 = arith.constant 0 : i32
    %c0_i32_0 = arith.constant 0 : i32
    return %c0_i32, %arg0 : i32, i32
  }
  func.func @transform_2(%arg0: i32) -> (i32, i32) {
    %c0_i32 = arith.constant 0 : i32
    %c0_i32_0 = arith.constant 0 : i32
    %c0_i32_1 = arith.constant 0 : i32
    return %c0_i32, %c0_i32_0 : i32, i32
  }
  func.func @transform_3(%arg0: i32) -> (i32, i32) {
    %c0_i32 = arith.constant 0 : i32
    %c0_i32_0 = arith.constant 0 : i32
    return %c0_i32, %arg0 : i32, i32
  }
}

module attributes {stable_mosaic.version = 11 : i64} {
  func.func @_gemm_single_kernel(%arg0: i32, %arg1: memref<8x64xbf16, #tpu.memory_space<vmem>>, %arg2: memref<64x128xbf16, #tpu.memory_space<vmem>>, %arg3: memref<8x1xf32, #tpu.memory_space<vmem>>, %arg4: memref<8x128xf32, #tpu.memory_space<vmem>>) attributes {dimension_semantics = [#tpu.dimension_semantics<parallel>], iteration_bounds = array<i64: 1>, scalar_prefetch = 0 : i64, scratch_operands = 0 : i64, tpu.core_type = #tpu.core_type<tc>, window_params = [{pipeline_mode = #tpu.pipeline_mode<synchronous>, transform_indices = @transform_0, window_bounds = array<i64: 8, 64>}, {transform_indices = @transform_1, window_bounds = array<i64: 64, 128>}, {pipeline_mode = #tpu.pipeline_mode<synchronous>, transform_indices = @transform_2, window_bounds = array<i64: 8, 1>}, {transform_indices = @transform_3, window_bounds = array<i64: 8, 128>}]} {
    %c0 = arith.constant 0 : index
    %c0_0 = arith.constant 0 : index
    %0 = vector.load %arg1[%c0, %c0_0] : memref<8x64xbf16, #tpu.memory_space<vmem>>, vector<8x64xbf16>
    %c0_1 = arith.constant 0 : index
    %c0_2 = arith.constant 0 : index
    %1 = vector.load %arg2[%c0_1, %c0_2] : memref<64x128xbf16, #tpu.memory_space<vmem>>, vector<64x128xbf16>
    %cst = arith.constant dense<0.000000e+00> : vector<8x128xf32>
    %2 = tpu.matmul %0, %1, %cst {dimension_numbers = #tpu.dot_dimension_numbers<[1], [0], [0], [1], [0, 0, 1, 1], [], []>} : vector<8x64xbf16>, vector<64x128xbf16>, vector<8x128xf32> -> vector<8x128xf32>
    %c0_3 = arith.constant 0 : index
    %c0_4 = arith.constant 0 : index
    %3 = vector.load %arg3[%c0_3, %c0_4] : memref<8x1xf32, #tpu.memory_space<vmem>>, vector<8x1xf32>
    %4 = vector.broadcast %3 : vector<8x1xf32> to vector<8x128xf32>
    %5 = arith.addf %2, %4 : vector<8x128xf32>
    %c0_5 = arith.constant 0 : index
    %c0_6 = arith.constant 0 : index
    %6 = vector.load %arg4[%c0_5, %c0_6] : memref<8x128xf32, #tpu.memory_space<vmem>>, vector<8x128xf32>
    tpu.vector_store %arg4[%c0_5, %c0_6], %5 {strides = array<i32>} : memref<8x128xf32, #tpu.memory_space<vmem>>, vector<8x128xf32>,
    return
  }
  func.func @transform_0(%arg0: i32) -> (i32, i32) {
    %c0_i32 = arith.constant 0 : i32
    %c0_i32_0 = arith.constant 0 : i32
    %c0_i32_1 = arith.constant 0 : i32
    return %c0_i32, %c0_i32_0 : i32, i32
  }
  func.func @transform_1(%arg0: i32) -> (i32, i32) {
    %c0_i32 = arith.constant 0 : i32
    %c0_i32_0 = arith.constant 0 : i32
    return %c0_i32, %arg0 : i32, i32
  }
  func.func @transform_2(%arg0: i32) -> (i32, i32) {
    %c0_i32 = arith.constant 0 : i32
    %c0_i32_0 = arith.constant 0 : i32
    %c0_i32_1 = arith.constant 0 : i32
    return %c0_i32, %c0_i32_0 : i32, i32
  }
  func.func @transform_3(%arg0: i32) -> (i32, i32) {
    %c0_i32 = arith.constant 0 : i32
    %c0_i32_0 = arith.constant 0 : i32
    return %c0_i32, %arg0 : i32, i32
  }
}

module attributes {stable_mosaic.version = 11 : i64} {
  func.func @_gemm_single_kernel(%arg0: i32, %arg1: memref<4x392xbf16, #tpu.memory_space<vmem>>, %arg2: memref<392x512xbf16, #tpu.memory_space<vmem>>, %arg3: memref<4x1xf32, #tpu.memory_space<vmem>>, %arg4: memref<4x512xf32, #tpu.memory_space<vmem>>) attributes {dimension_semantics = [#tpu.dimension_semantics<parallel>], iteration_bounds = array<i64: 1>, scalar_prefetch = 0 : i64, scratch_operands = 0 : i64, tpu.core_type = #tpu.core_type<tc>, window_params = [{pipeline_mode = #tpu.pipeline_mode<synchronous>, transform_indices = @transform_0, window_bounds = array<i64: 4, 392>}, {transform_indices = @transform_1, window_bounds = array<i64: 392, 512>}, {pipeline_mode = #tpu.pipeline_mode<synchronous>, transform_indices = @transform_2, window_bounds = array<i64: 4, 1>}, {transform_indices = @transform_3, window_bounds = array<i64: 4, 512>}]} {
    %c0 = arith.constant 0 : index
    %c0_0 = arith.constant 0 : index
    %0 = vector.load %arg1[%c0, %c0_0] : memref<4x392xbf16, #tpu.memory_space<vmem>>, vector<4x392xbf16>
    %c0_1 = arith.constant 0 : index
    %c0_2 = arith.constant 0 : index
    %1 = vector.load %arg2[%c0_1, %c0_2] : memref<392x512xbf16, #tpu.memory_space<vmem>>, vector<392x512xbf16>
    %cst = arith.constant dense<0.000000e+00> : vector<4x512xf32>
    %2 = tpu.matmul %0, %1, %cst {dimension_numbers = #tpu.dot_dimension_numbers<[1], [0], [0], [1], [0, 0, 1, 1], [], []>} : vector<4x392xbf16>, vector<392x512xbf16>, vector<4x512xf32> -> vector<4x512xf32>
    %c0_3 = arith.constant 0 : index
    %c0_4 = arith.constant 0 : index
    %3 = vector.load %arg3[%c0_3, %c0_4] : memref<4x1xf32, #tpu.memory_space<vmem>>, vector<4x1xf32>
    %4 = vector.broadcast %3 : vector<4x1xf32> to vector<4x512xf32>
    %5 = arith.addf %2, %4 : vector<4x512xf32>
    %6 = math.tanh %5 : vector<4x512xf32>
    %c0_5 = arith.constant 0 : index
    %c0_6 = arith.constant 0 : index
    %7 = vector.load %arg4[%c0_5, %c0_6] : memref<4x512xf32, #tpu.memory_space<vmem>>, vector<4x512xf32>
    tpu.vector_store %arg4[%c0_5, %c0_6], %6 {strides = array<i32>} : memref<4x512xf32, #tpu.memory_space<vmem>>, vector<4x512xf32>,
    return
  }
  func.func @transform_0(%arg0: i32) -> (i32, i32) {
    %c0_i32 = arith.constant 0 : i32
    %c0_i32_0 = arith.constant 0 : i32
    %c0_i32_1 = arith.constant 0 : i32
    return %c0_i32, %c0_i32_0 : i32, i32
  }
  func.func @transform_1(%arg0: i32) -> (i32, i32) {
    %c0_i32 = arith.constant 0 : i32
    %c0_i32_0 = arith.constant 0 : i32
    return %c0_i32, %arg0 : i32, i32
  }
  func.func @transform_2(%arg0: i32) -> (i32, i32) {
    %c0_i32 = arith.constant 0 : i32
    %c0_i32_0 = arith.constant 0 : i32
    %c0_i32_1 = arith.constant 0 : i32
    return %c0_i32, %c0_i32_0 : i32, i32
  }
  func.func @transform_3(%arg0: i32) -> (i32, i32) {
    %c0_i32 = arith.constant 0 : i32
    %c0_i32_0 = arith.constant 0 : i32
    return %c0_i32, %arg0 : i32, i32
  }
}

module attributes {stable_mosaic.version = 11 : i64} {
  func.func @_inst_pool_kernel(%arg0: i32, %arg1: memref<1x4x256xf32, #tpu.memory_space<vmem>>, %arg2: memref<1x1x256xi32, #tpu.memory_space<vmem>>, %arg3: memref<1x4x256xf32, #tpu.memory_space<vmem>>) attributes {dimension_semantics = [#tpu.dimension_semantics<parallel>], iteration_bounds = array<i64: 2>, scalar_prefetch = 0 : i64, scratch_operands = 0 : i64, tpu.core_type = #tpu.core_type<tc>, window_params = [{transform_indices = @transform_0, window_bounds = array<i64: 1, 4, 256>}, {transform_indices = @transform_1, window_bounds = array<i64: 1, 1, 256>}, {transform_indices = @transform_2, window_bounds = array<i64: 1, 4, 256>}]} {
    %c0 = arith.constant 0 : index
    %c0_0 = arith.constant 0 : index
    %c0_1 = arith.constant 0 : index
    %0 = vector.load %arg1[%c0, %c0_0, %c0_1] : memref<1x4x256xf32, #tpu.memory_space<vmem>>, vector<1x4x256xf32>
    %c0_2 = arith.constant 0 : index
    %c0_3 = arith.constant 0 : index
    %c0_4 = arith.constant 0 : index
    %1 = vector.load %arg2[%c0_2, %c0_3, %c0_4] : memref<1x1x256xi32, #tpu.memory_space<vmem>>, vector<1x1x256xi32>
    %c1_i32 = arith.constant 1 : i32
    %2 = vector.broadcast %c1_i32 : i32 to vector<1x1x256xi32>
    %3 = arith.cmpi eq, %1, %2 : vector<1x1x256xi32>
    %4 = arith.extui %3 : vector<1x1x256xi1> to vector<1x1x256xi32>
    %5 = arith.sitofp %4 : vector<1x1x256xi32> to vector<1x1x256xf32>
    %cst = arith.constant dense<0.000000e+00> : vector<1x1xf32>
    %6 = vector.multi_reduction <add>, %5, %cst [2] : vector<1x1x256xf32> to vector<1x1xf32>
    %7 = vector.shape_cast %6 : vector<1x1xf32> to vector<1x1x1xf32>
    %8 = vector.broadcast %5 : vector<1x1x256xf32> to vector<1x4x256xf32>
    %9 = arith.mulf %0, %8 : vector<1x4x256xf32>
    %cst_5 = arith.constant dense<0.000000e+00> : vector<1x4xf32>
    %10 = vector.multi_reduction <add>, %9, %cst_5 [2] : vector<1x4x256xf32> to vector<1x4xf32>
    %11 = vector.shape_cast %10 : vector<1x4xf32> to vector<1x4x1xf32>
    %cst_6 = arith.constant 1.000000e+00 : f32
    %12 = vector.broadcast %cst_6 : f32 to vector<1x1x1xf32>
    %13 = arith.maximumf %7, %12 : vector<1x1x1xf32>
    %14 = vector.broadcast %13 : vector<1x1x1xf32> to vector<1x4x1xf32>
    %15 = arith.divf %11, %14 : vector<1x4x1xf32>
    %16 = vector.broadcast %15 : vector<1x4x1xf32> to vector<1x4x256xf32>
    %17 = vector.broadcast %5 : vector<1x1x256xf32> to vector<1x4x256xf32>
    %18 = arith.mulf %16, %17 : vector<1x4x256xf32>
    %c0_7 = arith.constant 0 : index
    %c0_8 = arith.constant 0 : index
    %c0_9 = arith.constant 0 : index
    %19 = vector.load %arg3[%c0_7, %c0_8, %c0_9] : memref<1x4x256xf32, #tpu.memory_space<vmem>>, vector<1x4x256xf32>
    tpu.vector_store %arg3[%c0_7, %c0_8, %c0_9], %18 {strides = array<i32>} : memref<1x4x256xf32, #tpu.memory_space<vmem>>, vector<1x4x256xf32>,
    return
  }
  func.func @transform_0(%arg0: i32) -> (i32, i32, i32) {
    %c0_i32 = arith.constant 0 : i32
    %c0_i32_0 = arith.constant 0 : i32
    %c0_i32_1 = arith.constant 0 : i32
    return %arg0, %c0_i32, %c0_i32_0 : i32, i32, i32
  }
  func.func @transform_1(%arg0: i32) -> (i32, i32, i32) {
    %c0_i32 = arith.constant 0 : i32
    %c0_i32_0 = arith.constant 0 : i32
    %c0_i32_1 = arith.constant 0 : i32
    return %arg0, %c0_i32, %c0_i32_0 : i32, i32, i32
  }
  func.func @transform_2(%arg0: i32) -> (i32, i32, i32) {
    %c0_i32 = arith.constant 0 : i32
    %c0_i32_0 = arith.constant 0 : i32
    %c0_i32_1 = arith.constant 0 : i32
    return %arg0, %c0_i32, %c0_i32_0 : i32, i32, i32
  }
}

</mosaic_0001>

<bundles_post_ra>
// kernel: encoder_forward.19
= control target key start
LH: loop header
LB: loop body
LE: loop exit
PB: predicated region body
PF: predicated region fallthrough
CT: control target
= control target key end

     0   :  { %v27_v0 = vlaneseq  ;;  %v512_v1 = vmov 1983009808   ;;  %vm104_vm0 = vcmask 1041408   ;;  %v513_v54 = vmov 269488144   ;;  %s716_s0 = inlined_call_operand.vmem [shape: f32[8,2,256], index: 0, kind: input, shape index: {}]   ;;  %s717_s1 = inlined_call_operand.vmem [shape: f32[8,2,256], index: 1, kind: output, shape index: {}]  }
   0x1   :  { %v25_v2 = vunpack.c.l.s4 %v512_v1  ;;  %v529_v4 = vld [vmem:[%s716_s0] sm:$0xf]  ;;  %v534_v6 = vld [vmem:[%s716_s0 + $0x8] sm:$0xf]  ;;  %v539_v7 = vld [vmem:[%s716_s0 + $0x4] sm:$0xf]  ;;  %v163_v55 = vunpack.c.l.s4 %v513_v54 }
   0x2   :  { %v524_v3 = vshrl.u32 %v27_v0, 7  ;;  %v544_v8 = vld [vmem:[%s716_s0 + $0xc] sm:$0xf]  ;;  %v552_v10 = vld [vmem:[%s716_s0 + $0x10] sm:$0xf] }
   0x3   :  { %v26_v5 = vunpack.c.0.s8 %v25_v2  ;;  %v557_v11 = vld [vmem:[%s716_s0 + $0x14] sm:$0xf]  ;;  %v562_v12 = vld [vmem:[%s716_s0 + $0x18] sm:$0xf]  ;;  %v575_v17 = vld [vmem:[%s716_s0 + $0x1c] sm:$0xf]  ;;  %v164_v56 = vunpack.c.0.s8 %v163_v55 }
   0x5   :  { %v547_v9 = vsub.s32 %v26_v5, %v524_v3  ;;  %v602_v57 = vsub.s32 %v164_v56, %v524_v3 }
   0x7   :  { %v30_v13 = vrot.slane %v529_v4, %v547_v9  ;;  %v46_v14 = vrot.slane %v534_v6, %v547_v9  ;;  %v38_v15 = vrot.slane %v539_v7, %v547_v9  ;;  %v54_v16 = vrot.slane %v544_v8, %v547_v9 }
   0x8   :  { %v62_v18 = vrot.slane %v552_v10, %v547_v9  ;;  %v70_v19 = vrot.slane %v557_v11, %v547_v9  ;;  %v78_v20 = vrot.slane %v562_v12, %v547_v9  ;;  %v86_v28 = vrot.slane %v575_v17, %v547_v9 }
   0x9   :  { %v31_v21 = vcombine.high %v30_v13, %v30_v13  ;;  %v105_v22 = vsel %vm104_vm0, %v30_v13, 0.0  ;;  %v47_v23 = vcombine.high %v46_v14, %v46_v14  ;;  %v115_v24 = vsel %vm104_vm0, %v46_v14, 0.0 }
   0xa   :  { %v39_v25 = vcombine.high %v38_v15, %v38_v15  ;;  %v110_v26 = vsel %vm104_vm0, %v38_v15, 0.0  ;;  %v55_v27 = vcombine.high %v54_v16, %v54_v16  ;;  %v120_v31 = vsel %vm104_vm0, %v54_v16, 0.0 }
   0xb   :  { %v106_v29 = vsel %vm104_vm0, %v31_v21, 0.0  ;;  %v116_v30 = vsel %vm104_vm0, %v47_v23, 0.0  ;;  %v63_v32 = vcombine.high %v62_v18, %v62_v18  ;;  %v71_v37 = vcombine.high %v70_v19, %v70_v19 }
   0xc   :  { %v107_v33 = vadd.f32 %v106_v29, %v105_v22  ;;  %v117_v34 = vadd.f32 %v116_v30, %v115_v24  ;;  %v111_v35 = vsel %vm104_vm0, %v39_v25, 0.0  ;;  %v121_v36 = vsel %vm104_vm0, %v55_v27, 0.0 }
   0xd   :  { %v112_v38 = vadd.f32 %v111_v35, %v110_v26  ;;  %v122_v39 = vadd.f32 %v121_v36, %v120_v31  ;;  %v125_v40 = vsel %vm104_vm0, %v62_v18, 0.0  ;;  %v126_v41 = vsel %vm104_vm0, %v63_v32, 0.0 }
   0xe   :  { %108 = vadd.xlane.f32.xlu0 %v107_v33  ;;  %118 = vadd.xlane.f32.xlu1 %v117_v34  ;;  %v130_v42 = vsel %vm104_vm0, %v70_v19, 0.0  ;;  %v131_v43 = vsel %vm104_vm0, %v71_v37, 0.0  ;;  %v79_v44 = vcombine.high %v78_v20, %v78_v20  ;;  %v87_v45 = vcombine.high %v86_v28, %v86_v28 }
   0xf   :  { %v127_v46 = vadd.f32 %v126_v41, %v125_v40  ;;  %v132_v47 = vadd.f32 %v131_v43, %v130_v42  ;;  %v135_v48 = vsel %vm104_vm0, %v78_v20, 0.0  ;;  %v140_v50 = vsel %vm104_vm0, %v86_v28, 0.0 }
  0x10   :  { %v136_v49 = vsel %vm104_vm0, %v79_v44, 0.0  ;;  %v141_v51 = vsel %vm104_vm0, %v87_v45, 0.0 }
  0x11   :  { %v137_v52 = vadd.f32 %v136_v49, %v135_v48  ;;  %v142_v53 = vadd.f32 %v141_v51, %v140_v50 }
  0x12   :  { %113 = vadd.xlane.f32.xlu0 %v112_v38  ;;  %123 = vadd.xlane.f32.xlu1 %v122_v39 }
  0x16   :  { %128 = vadd.xlane.f32.xlu0 %v127_v46  ;;  %133 = vadd.xlane.f32.xlu1 %v132_v47 }
  0x1a   :  { %138 = vadd.xlane.f32.xlu0 %v137_v52  ;;  %143 = vadd.xlane.f32.xlu1 %v142_v53 }
  0x9b   :  { %v109_v58 = vpop.xlane.xlu0 %108  ;;  %v119_v59 = vpop.xlane.xlu1 %118 }
  0x9c   :  { %v146_v60 = vmul.f32 0.00390625, %v109_v58  ;;  %v148_v61 = vmul.f32 0.00390625, %v119_v59 }
  0x9e   :  { %v168_v62 = vrot.slane %v146_v60, %v602_v57  ;;  %v182_v63 = vrot.slane %v148_v61, %v602_v57 }
  0x9f   :  { %v114_v0 = vpop.xlane.xlu0 %113  ;;  %v124_v1 = vpop.xlane.xlu1 %123 }
  0xa0   :  { %v607_v2 = vsub.f32 %v529_v4, %v168_v62  ;;  %v610_v5 = vsub.f32 %v534_v6, %v182_v63  ;;  %v147_v13 = vmul.f32 0.00390625, %v114_v0  ;;  %v149_v14 = vmul.f32 0.00390625, %v124_v1 }
  0xa2   :  { %v175_v3 = vrot.slane %v147_v13, %v602_v57  ;;  %v189_v15 = vrot.slane %v149_v14, %v602_v57  ;;  %v234_v16 = vmul.f32 %v607_v2, %v607_v2  ;;  %v236_v18 = vmul.f32 %v610_v5, %v610_v5 }
  0xa3   :  { %v129_v19 = vpop.xlane.xlu0 %128  ;;  %v134_v20 = vpop.xlane.xlu1 %133 }
  0xa4   :  { %v619_v4 = vsub.f32 %v539_v7, %v175_v3  ;;  %v622_v6 = vsub.f32 %v544_v8, %v189_v15  ;;  %v150_v21 = vmul.f32 0.00390625, %v129_v19  ;;  %v151_v22 = vmul.f32 0.00390625, %v134_v20 }
  0xa5   :  { %v256_v23 = vrot.slane %v234_v16, %v547_v9  ;;  %v272_v24 = vrot.slane %v236_v18, %v547_v9 }
  0xa6   :  { %v196_v25 = vrot.slane %v150_v21, %v602_v57  ;;  %v203_v26 = vrot.slane %v151_v22, %v602_v57  ;;  %v235_v27 = vmul.f32 %v619_v4, %v619_v4  ;;  %v237_v7 = vmul.f32 %v622_v6, %v622_v6 }
  0xa7   :  { %v139_v28 = vpop.xlane.xlu0 %138  ;;  %v144_v29 = vpop.xlane.xlu1 %143  ;;  %v257_v8 = vcombine.high %v256_v23, %v256_v23  ;;  %v273_v30 = vcombine.high %v272_v24, %v272_v24  ;;  %v330_v35 = vsel %vm104_vm0, %v256_v23, 0.0 }
  0xa8   :  { %v633_v31 = vsub.f32 %v552_v10, %v196_v25  ;;  %v636_v32 = vsub.f32 %v557_v11, %v203_v26  ;;  %v152_v33 = vmul.f32 0.00390625, %v139_v28  ;;  %v153_v34 = vmul.f32 0.00390625, %v144_v29 }
  0xa9   :  { %v331_v36 = vsel %vm104_vm0, %v257_v8, 0.0  ;;  %v264_v37 = vrot.slane %v235_v27, %v547_v9  ;;  %v280_v38 = vrot.slane %v237_v7, %v547_v9  ;;  %v340_v10 = vsel %vm104_vm0, %v272_v24, 0.0 }
  0xaa   :  { %v210_v39 = vrot.slane %v152_v33, %v602_v57  ;;  %v217_v40 = vrot.slane %v153_v34, %v602_v57  ;;  %v332_v41 = vadd.f32 %v331_v36, %v330_v35  ;;  %v341_v11 = vsel %vm104_vm0, %v273_v30, 0.0 }
  0xab   :  { %v265_v42 = vcombine.high %v264_v37, %v264_v37  ;;  %v281_v43 = vcombine.high %v280_v38, %v280_v38  ;;  %v238_v46 = vmul.f32 %v633_v31, %v633_v31  ;;  %v239_v47 = vmul.f32 %v636_v32, %v636_v32 }
  0xac   :  { %v647_v44 = vsub.f32 %v562_v12, %v210_v39  ;;  %v650_v45 = vsub.f32 %v575_v17, %v217_v40  ;;  %333 = vadd.xlane.f32.xlu0 %v332_v41  ;;  %v335_v48 = vsel %vm104_vm0, %v264_v37, 0.0  ;;  %v342_v50 = vadd.f32 %v341_v11, %v340_v10 }
  0xad   :  { %v336_v49 = vsel %vm104_vm0, %v265_v42, 0.0  ;;  %v288_v52 = vrot.slane %v238_v46, %v547_v9  ;;  %v296_v12 = vrot.slane %v239_v47, %v547_v9  ;;  %v345_v17 = vsel %vm104_vm0, %v280_v38, 0.0 }
  0xae   :  { %v337_v51 = vadd.f32 %v336_v49, %v335_v48  ;;  %v346_v53 = vsel %vm104_vm0, %v281_v43, 0.0  ;;  %v240_v54 = vmul.f32 %v647_v44, %v647_v44  ;;  %v241_v55 = vmul.f32 %v650_v45, %v650_v45 }
  0xaf   :  { %v289_v56 = vcombine.high %v288_v52, %v288_v52  ;;  %v350_v58 = vsel %vm104_vm0, %v288_v52, 0.0  ;;  %v297_v59 = vcombine.high %v296_v12, %v296_v12  ;;  %v347_v62 = vadd.f32 %v346_v53, %v345_v17 }
  0xb0   :  { %343 = vadd.xlane.f32.xlu0 %v342_v50  ;;  %338 = vadd.xlane.f32.xlu1 %v337_v51  ;;  %v304_v60 = vrot.slane %v240_v54, %v547_v9  ;;  %v312_v61 = vrot.slane %v241_v55, %v547_v9  ;;  %v355_v0 = vsel %vm104_vm0, %v296_v12, 0.0 }
  0xb1   :  { %v351_v63 = vsel %vm104_vm0, %v289_v56, 0.0  ;;  %v356_v13 = vsel %vm104_vm0, %v297_v59, 0.0 }
  0xb2   :  { %v352_v1 = vadd.f32 %v351_v63, %v350_v58  ;;  %v305_v14 = vcombine.high %v304_v60, %v304_v60  ;;  %v360_v3 = vsel %vm104_vm0, %v304_v60, 0.0  ;;  %v313_v15 = vcombine.high %v312_v61, %v312_v61 }
  0xb3   :  { %v357_v18 = vadd.f32 %v356_v13, %v355_v0  ;;  %v365_v9 = vsel %vm104_vm0, %v312_v61, 0.0 }
  0xb4   :  { %348 = vadd.xlane.f32.xlu1 %v347_v62  ;;  %353 = vadd.xlane.f32.xlu0 %v352_v1  ;;  %v361_v16 = vsel %vm104_vm0, %v305_v14, 0.0  ;;  %v366_v20 = vsel %vm104_vm0, %v313_v15, 0.0 }
  0xb5   :  { %v362_v19 = vadd.f32 %v361_v16, %v360_v3  ;;  %v367_v21 = vadd.f32 %v366_v20, %v365_v9 }
  0xb8   :  { %358 = vadd.xlane.f32.xlu1 %v357_v18  ;;  %363 = vadd.xlane.f32.xlu0 %v362_v19 }
  0xbc   :  { %368 = vadd.xlane.f32.xlu1 %v367_v21 }
 0x139   :  { %v334_v22 = vpop.xlane.xlu0 %333 }
 0x13a   :  { %v370_v23 = vmul.f32 0.00390625, %v334_v22 }
 0x13c   :  { %v378_v24 = vadd.f32 1e-05, %v370_v23 }
 0x13d   :  { %v339_v25 = vpop.xlane.xlu1 %338  ;;  %v344_v26 = vpop.xlane.xlu0 %343 }
 0x13e   :  { %496 = vrsqrt.f32 %v378_v24  ;;  %v371_v27 = vmul.f32 0.00390625, %v339_v25  ;;  %v372_v7 = vmul.f32 0.00390625, %v344_v26 }
 0x140   :  { %v379_v28 = vadd.f32 1e-05, %v371_v27  ;;  %v380_v29 = vadd.f32 1e-05, %v372_v7 }
 0x141   :  { %v349_v8 = vpop.xlane.xlu1 %348  ;;  %v354_v33 = vpop.xlane.xlu0 %353 }
 0x142   :  { %498 = vrsqrt.f32 %v379_v28  ;;  %v373_v30 = vmul.f32 0.00390625, %v349_v8  ;;  %v374_v34 = vmul.f32 0.00390625, %v354_v33 }
 0x143   :  { %500 = vrsqrt.f32 %v380_v29 }
 0x144   :  { %v381_v35 = vadd.f32 1e-05, %v373_v30  ;;  %v382_v36 = vadd.f32 1e-05, %v374_v34 }
 0x145   :  { %v359_v37 = vpop.xlane.xlu1 %358  ;;  %v364_v39 = vpop.xlane.xlu0 %363 }
 0x146   :  { %502 = vrsqrt.f32 %v381_v35  ;;  %v375_v38 = vmul.f32 0.00390625, %v359_v37  ;;  %v376_v40 = vmul.f32 0.00390625, %v364_v39 }
 0x147   :  { %504 = vrsqrt.f32 %v382_v36 }
 0x148   :  { %v497_v41 = vpop.eup %496  ;;  %v383_v10 = vadd.f32 1e-05, %v375_v38  ;;  %v384_v42 = vadd.f32 1e-05, %v376_v40 }
 0x149   :  { %v408_v11 = vrot.slane %v497_v41, %v602_v57  ;;  %v369_v43 = vpop.xlane.xlu1 %368 }
 0x14a   :  { %506 = vrsqrt.f32 %v383_v10  ;;  %v377_v46 = vmul.f32 0.00390625, %v369_v43 }
 0x14b   :  { %v466_v47 = vmul.f32 %v408_v11, %v607_v2  ;;  %508 = vrsqrt.f32 %v384_v42 }
 0x14c   :  { %v499_v48 = vpop.eup %498  ;;  %v385_v49 = vadd.f32 1e-05, %v377_v46 }
 0x14d   :  { %v501_v50 = vpop.eup %500  ;;  %v474_v51 = vmax.f32 %v466_v47, 0.0  ;;  %v415_v52 = vrot.slane %v499_v48, %v602_v57 }
 0x14e   :  { %v422_v12 = vrot.slane %v501_v50, %v602_v57  ;;  %510 = vrsqrt.f32 %v385_v49 }
 0x14f   :  { %482 = vst [vmem:[%s717_s1] sm:$0xf] %v474_v51  ;;  %v467_v17 = vmul.f32 %v415_v52, %v619_v4 }
 0x150   :  { %v503_v53 = vpop.eup %502  ;;  %v468_v54 = vmul.f32 %v422_v12, %v610_v5 }
 0x151   :  { %v505_v2 = vpop.eup %504  ;;  %v475_v55 = vmax.f32 %v467_v17, 0.0  ;;  %v429_v56 = vrot.slane %v503_v53, %v602_v57 }
 0x152   :  { %v476_v58 = vmax.f32 %v468_v54, 0.0  ;;  %v436_v59 = vrot.slane %v505_v2, %v602_v57 }
 0x153   :  { %483 = vst [vmem:[%s717_s1 + $0x4] sm:$0xf] %v475_v55  ;;  %v469_v60 = vmul.f32 %v429_v56, %v622_v6 }
 0x154   :  { %v507_v61 = vpop.eup %506  ;;  %484 = vst [vmem:[%s717_s1 + $0x8] sm:$0xf] %v476_v58  ;;  %v470_v5 = vmul.f32 %v436_v59, %v633_v31 }
 0x155   :  { %v509_v4 = vpop.eup %508  ;;  %v477_v62 = vmax.f32 %v469_v60, 0.0  ;;  %v443_v63 = vrot.slane %v507_v61, %v602_v57 }
 0x156   :  { %v478_v0 = vmax.f32 %v470_v5, 0.0  ;;  %v450_v1 = vrot.slane %v509_v4, %v602_v57 }
 0x157   :  { %485 = vst [vmem:[%s717_s1 + $0xc] sm:$0xf] %v477_v62  ;;  %v471_v6 = vmul.f32 %v443_v63, %v636_v32 }
 0x158   :  { %v511_v13 = vpop.eup %510  ;;  %486 = vst [vmem:[%s717_s1 + $0x10] sm:$0xf] %v478_v0  ;;  %v472_v31 = vmul.f32 %v450_v1, %v647_v44 }
 0x159   :  { %v479_v14 = vmax.f32 %v471_v6, 0.0  ;;  %v457_v3 = vrot.slane %v511_v13, %v602_v57 }
 0x15a   :  { %v480_v15 = vmax.f32 %v472_v31, 0.0 }
 0x15b   :  { %487 = vst [vmem:[%s717_s1 + $0x14] sm:$0xf] %v479_v14  ;;  %v473_v16 = vmul.f32 %v457_v3, %v650_v45 }
 0x15c   :  { %488 = vst [vmem:[%s717_s1 + $0x18] sm:$0xf] %v480_v15 }
 0x15d   :  { %v481_v32 = vmax.f32 %v473_v16, 0.0 }
 0x15f   :  { %489 = vst [vmem:[%s717_s1 + $0x1c] sm:$0xf] %v481_v32 }

// kernel: encoder_forward.18
= control target key start
LH: loop header
LB: loop body
LE: loop exit
PB: predicated region body
PF: predicated region fallthrough
CT: control target
= control target key end

     0   :  { %v471_v1 = vmov 0   ;;  %vm256_vm0 = vcmask 195584   ;;  %vm260_vm1 = vcmask 1043456   ;;  %s624_s1 = inlined_call_operand.vmem [shape: bf16[152,512], index: 1, kind: input, shape index: {}]   ;;  %s625_s0 = inlined_call_operand.vmem [shape: bf16[8,152], index: 0, kind: input, shape index: {}]   ;;  %s626_s2 = inlined_call_operand.vmem [shape: f32[8,1], index: 2, kind: input, shape index: {}]   ;;  %s627_s3 = inlined_call_operand.vmem [shape: f32[8,512], index: 3, kind: output, shape index: {}]  }
   0x1   :  { %v411_v0 = vld [vmem:[%s624_s1 + $0x4] ss:$16 sps:$4 sm:$0xff]   ;;  %410 = vset.pattern.permute.xlu0 %v471_v1  ;;  %v413_v2 = vld [vmem:[%s624_s1 + $0xc] ss:$16 sps:$4 sm:$0xff]   ;;  %v415_v3 = vld [vmem:[%s624_s1] ss:$16 sps:$4 sm:$0xff]  }
   0x2   :  { %273 = vmatprep.subr.bf16.mxu0 %v411_v0  ;;  %v416_v4 = vld [vmem:[%s624_s1 + $0x8] ss:$16 sps:$4 sm:$0xff]   ;;  %314 = vmatprep.subr.bf16.mxu1 %v413_v2  ;;  %v417_v5 = vld [vmem:[%s624_s1 + $0x24] ss:$16 sps:$4 sm:$0xff]   ;;  %v419_v6 = vld [vmem:[%s624_s1 + $0x2c] ss:$16 sps:$4 sm:$0xff]  }
   0x3   :  { %274 = vmatpush1.bf16.msra.mxu0 %v415_v3  ;;  %315 = vmatpush1.bf16.msra.mxu1 %v416_v4  ;;  %v421_v7 = vld [vmem:[%s624_s1 + $0x20] ss:$16 sps:$4 sm:$0xff]   ;;  %v422_v8 = vld [vmem:[%s624_s1 + $0x28] ss:$16 sps:$4 sm:$0xff]   ;;  %v423_v9 = vld [vmem:[%s624_s1 + $0x44] ss:$16 sps:$4 sm:$0xff]  }
   0x4   :  { %275 = vmatprep.subr.bf16.mxu0 %v417_v5  ;;  %316 = vmatprep.subr.bf16.mxu1 %v419_v6  ;;  %v425_v10 = vld [vmem:[%s624_s1 + $0x4c] ss:$16 sps:$4 sm:$0xff]   ;;  %v427_v11 = vld [vmem:[%s624_s1 + $0x40] ss:$16 sps:$4 sm:$0xff]   ;;  %v428_v12 = vld [vmem:[%s624_s1 + $0x48] ss:$16 sps:$4 sm:$0xff]  }
   0x5   :  { %v429_v13 = vld [vmem:[%s624_s1 + $0x64] ss:$16 sps:$4 sm:$0xff]   ;;  %v431_v14 = vld [vmem:[%s624_s1 + $0x6c] ss:$16 sps:$4 sm:$0xff]   ;;  %v433_v15 = vld [vmem:[%s624_s1 + $0x60] ss:$16 sps:$4 sm:$0xff]  }
   0x6   :  { %v434_v16 = vld [vmem:[%s624_s1 + $0x68] ss:$16 sps:$4 sm:$0xff]   ;;  %v435_v17 = vld [vmem:[%s624_s1 + $0x84] ss:$16 sps:$4 sm:$0xff]   ;;  %v437_v18 = vld [vmem:[%s624_s1 + $0x8c] ss:$16 sps:$4 sm:$0xff]  }
   0x7   :  { %276 = vmatpush1.bf16.msra.mxu0 %v421_v7  ;;  %317 = vmatpush1.bf16.msra.mxu1 %v422_v8  ;;  %v439_v19 = vld [vmem:[%s624_s1 + $0x80] ss:$16 sps:$4 sm:$0xff]   ;;  %v440_v20 = vld [vmem:[%s624_s1 + $0x88] ss:$16 sps:$4 sm:$0xff]   ;;  %v441_v21 = vld [vmem:[%s624_s1 + $0xa4] ss:$16 sps:$4 sm:$0xff]  }
   0x8   :  { %277 = vmatprep.subr.bf16.mxu0 %v423_v9  ;;  %318 = vmatprep.subr.bf16.mxu1 %v425_v10  ;;  %v443_v22 = vld [vmem:[%s624_s1 + $0xac] ss:$16 sps:$4 sm:$0xff]   ;;  %v445_v23 = vld [vmem:[%s624_s1 + $0xa0] ss:$16 sps:$4 sm:$0xff]   ;;  %v446_v24 = vld [vmem:[%s624_s1 + $0xa8] ss:$16 sps:$4 sm:$0xff]  }
   0x9   :  { %v447_v25 = vld [vmem:[%s624_s1 + $0xc4] ss:$16 sps:$4 sm:$0xff]   ;;  %v449_v26 = vld [vmem:[%s624_s1 + $0xcc] ss:$16 sps:$4 sm:$0xff]   ;;  %v451_v27 = vld [vmem:[%s624_s1 + $0xc0] ss:$16 sps:$4 sm:$0xff]  }
   0xa   :  { %v452_v28 = vld [vmem:[%s624_s1 + $0xc8] ss:$16 sps:$4 sm:$0xff]   ;;  %v15_v29 = vld [vmem:[%s625_s0] sm:$0xff]  ;;  %v455_v31 = vld [vmem:[%s624_s1 + $0xec] ss:$16 sps:$4 sm:$0xff]  }
   0xb   :  { %278 = vmatpush1.bf16.msra.mxu0 %v427_v11  ;;  %319 = vmatpush1.bf16.msra.mxu1 %v428_v12  ;;  %v453_v30 = vld [vmem:[%s624_s1 + $0xe4] ss:$16 sps:$4 sm:$0xff]   ;;  %v364_v33 = vcombine.high %v15_v29, %v15_v29  ;;  %v457_v34 = vld [vmem:[%s624_s1 + $0xe0] ss:$16 sps:$4 sm:$0xff]   ;;  %v458_v35 = vld [vmem:[%s624_s1 + $0xe8] ss:$16 sps:$4 sm:$0xff]   ;;  %v363_v48 = vcombine.low %v15_v29, %v15_v29 }
   0xc   :  { %279 = vmatprep.subr.bf16.mxu0 %v429_v13  ;;  %320 = vmatprep.subr.bf16.mxu1 %v431_v14  ;;  %v54_v32 = vld [vmem:[%s626_s2] sm:$0xff]  ;;  %v461_v37 = vld [vmem:[%s624_s1 + $0x10c] ss:$16 sps:$4 sm:$0xff]   ;;  %v464_v41 = vld [vmem:[%s624_s1 + $0x108] ss:$16 sps:$4 sm:$0xff]  }
   0xd   :  { %57 = vperm.xlu0 %410, %v54_v32   ;;  %v459_v36 = vld [vmem:[%s624_s1 + $0x104] ss:$16 sps:$4 sm:$0xff]   ;;  %v53_v39 = vld [vmem:[%s624_s1 + $0x128] sm:$0xff]  ;;  %406 = vmatprep.mubr.msk.bf16.mxu0 %vm256_vm0, %v364_v33  ;;  %v463_v40 = vld [vmem:[%s624_s1 + $0x100] ss:$16 sps:$4 sm:$0xff]  }
   0xe   :  { %v52_v38 = vld [vmem:[%s624_s1 + $0x120] sm:$0xff]  ;;  %408 = vmatprep.mubr.msk.bf16.mxu1 %vm256_vm0, %v364_v33  ;;  %v404_v43 = vcombine.high %v53_v39, %v53_v39  ;;  %v403_v45 = vcombine.low %v53_v39, %v53_v39 }
   0xf   :  { %280 = vmatpush1.bf16.msra.mxu0 %v433_v15  ;;  %321 = vmatpush1.bf16.msra.mxu1 %v434_v16  ;;  %v402_v42 = vcombine.high %v52_v38, %v52_v38  ;;  %v401_v44 = vcombine.low %v52_v38, %v52_v38 }
  0x10   :  { %281 = vmatprep.subr.bf16.mxu0 %v435_v17  ;;  %322 = vmatprep.subr.bf16.mxu1 %v437_v18  ;;  %v268_v47 = vsel %vm260_vm1, %v403_v45, 0 }
  0x11   :  { %v262_v46 = vsel %vm260_vm1, %v401_v44, 0 }
  0x13   :  { %282 = vmatpush1.bf16.msra.mxu0 %v439_v19  ;;  %323 = vmatpush1.bf16.msra.mxu1 %v440_v20 }
  0x14   :  { %283 = vmatprep.subr.bf16.mxu0 %v441_v21  ;;  %324 = vmatprep.subr.bf16.mxu1 %v443_v22 }
  0x17   :  { %284 = vmatpush1.bf16.msra.mxu0 %v445_v23  ;;  %325 = vmatpush1.bf16.msra.mxu1 %v446_v24 }
  0x18   :  { %285 = vmatprep.subr.bf16.mxu0 %v447_v25  ;;  %326 = vmatprep.subr.bf16.mxu1 %v449_v26 }
  0x1b   :  { %286 = vmatpush1.bf16.msra.mxu0 %v451_v27  ;;  %327 = vmatpush1.bf16.msra.mxu1 %v452_v28 }
  0x1c   :  { %287 = vmatprep.subr.bf16.mxu0 %v453_v30  ;;  %328 = vmatprep.subr.bf16.mxu1 %v455_v31 }
  0x1f   :  { %288 = vmatpush1.bf16.msra.mxu0 %v457_v34  ;;  %329 = vmatpush1.bf16.msra.mxu1 %v458_v35 }
  0x20   :  { %289 = vmatprep.subr.bf16.mxu0 %v459_v36  ;;  %330 = vmatprep.subr.bf16.mxu1 %v461_v37 }
  0x23   :  { %290 = vmatpush1.bf16.msra.mxu0 %v463_v40  ;;  %331 = vmatpush1.bf16.msra.mxu1 %v464_v41 }
  0x24   :  { %405 = vmatprep.subr.msk.bf16.mxu0 %vm260_vm1, %v402_v42  ;;  %407 = vmatprep.subr.msk.bf16.mxu1 %vm260_vm1, %v404_v43 }
  0x27   :  { %292 = vmatpush1.bf16.msra.mxu0 %v262_v46  ;;  %333 = vmatpush1.bf16.msra.mxu1 %v268_v47 }
  0x2a   :  { %306 = vmatmul.mubr.bf16.vlgmr.msra.gmra.mrb[0].mxu0 %v363_v48  ;;  %347 = vmatmul.mubr.bf16.vlgmr.msra.gmra.mrb[0].mxu1 %v363_v48 }
  0x8c   :  { %v58_v49 = vpop.permute.xlu0 %57 }
  0xfd   :  { %v307_v50 = vpop.f32.mrb[0].mxu0  ;;  %v348_v51 = vpop.f32.mrb[0].mxu1 }
  0xfe   :  { %v308_v52 = vadd.f32 %v307_v50, %v58_v49  ;;  %v349_v53 = vadd.f32 %v348_v51, %v58_v49  ;;  %v309_v54 = vpop.f32.mrb[1].mxu0  ;;  %v350_v55 = vpop.f32.mrb[1].mxu1 }
  0xff   :  { %v310_v56 = vadd.f32 %v309_v54, %v58_v49  ;;  %v351_v57 = vadd.f32 %v350_v55, %v58_v49  ;;  %v311_v58 = vpop.f32.mrb[2].mxu0  ;;  %v352_v59 = vpop.f32.mrb[2].mxu1 }
 0x100   :  { %355 = vst [vmem:[%s627_s3] sm:$0xff] %v308_v52  ;;  %357 = vst [vmem:[%s627_s3 + $0x10] sm:$0xff] %v349_v53  ;;  %v312_v60 = vpop.f32.mrb[3].mxu0  ;;  %v353_v61 = vpop.f32.mrb[3].mxu1 }
 0x101   :  { %356 = vst [vmem:[%s627_s3 + $0x8] sm:$0xff] %v310_v56  ;;  %358 = vst [vmem:[%s627_s3 + $0x18] sm:$0xff] %v351_v57 }

// kernel: encoder_forward.20
= control target key start
LH: loop header
LB: loop body
LE: loop exit
PB: predicated region body
PF: predicated region fallthrough
CT: control target
= control target key end

     0   :  { %v162_v0 = vmov 0.0   ;;  %vm163_vm0 = vmmov 0   ;;  %v164_v2 = vmov 0   ;;  %vm74_vm1 = vcmask 1043456   ;;  %s215_s1 = inlined_call_operand.vmem [shape: bf16[72,128], index: 1, kind: input, shape index: {}]   ;;  %s216_s2 = inlined_call_operand.vmem [shape: f32[16,1], index: 2, kind: input, shape index: {}]   ;;  %s217_s0 = inlined_call_operand.vmem [shape: bf16[16,72], index: 0, kind: input, shape index: {}]   ;;  %s218_s3 = inlined_call_operand.vmem [shape: f32[16,128], index: 3, kind: output, shape index: {}]  }
   0x1   :  { %138 = vmatprep.subr.bf16.mxu0 %v162_v0  ;;  %v156_v1 = vld [vmem:[%s215_s1] sm:$0xff]   ;;  %148 = vmatprep.mubr.msk.bf16.mxu0 %vm163_vm0, %v162_v0  ;;  %v157_v3 = vld [vmem:[%s215_s1 + $0x8] sm:$0xff]   ;;  %v158_v5 = vld [vmem:[%s215_s1 + $0x10] sm:$0xff]   ;;  %vm70_vm2 = vcmask 588800  }
   0x2   :  { %155 = vset.pattern.permute.xlu0 %v164_v2  ;;  %139 = vmatpush3.bf16.msra.mxu0 %v156_v1  ;;  %v26_v4 = vld [vmem:[%s216_s2] sm:$0xff]  ;;  %v27_v6 = vld [vmem:[%s216_s2 + $0x8] sm:$0xff]  ;;  %v159_v7 = vld [vmem:[%s215_s1 + $0x18] sm:$0xff]  }
   0x3   :  { %140 = vmatprep.subr.bf16.mxu0 %v162_v0  ;;  %30 = vperm.xlu0 %155, %v26_v4   ;;  %v160_v8 = vld [vmem:[%s215_s1 + $0x20] ss:$0 sps:$4 sm:$0xff]  }
   0x4   :  { %v76_v9 = vsel %vm74_vm1, %v160_v8, 0  ;;  %v161_v10 = vld [vmem:[%s217_s0] sm:$0xff]  }
   0x6   :  { %141 = vmatpush3.bf16.msra.mxu0 %v157_v3 }
   0x7   :  { %142 = vmatprep.subr.bf16.mxu0 %v162_v0  ;;  %35 = vperm.xlu0 %155, %v27_v6  }
   0xa   :  { %143 = vmatpush3.bf16.msra.mxu0 %v158_v5 }
   0xb   :  { %144 = vmatprep.subr.bf16.mxu0 %v162_v0 }
   0xe   :  { %145 = vmatpush3.bf16.msra.mxu0 %v159_v7 }
   0xf   :  { %146 = vmatprep.subr.bf16.mxu0 %v162_v0 }
  0x12   :  { %147 = vmatpush3.bf16.msra.mxu0 %v76_v9 }
  0x15   :  { %149 = vmatmul.mubr.msk.bf16.vlgmr.msra.gmra.mrb[0].mxu0 %vm70_vm2, %v161_v10 }
  0x82   :  { %v31_v11 = vpop.permute.xlu0 %30 }
  0x86   :  { %v36_v15 = vpop.permute.xlu0 %35 }
  0xe8   :  { %v112_v12 = vpop.f32.mrb[0].mxu0 }
  0xe9   :  { %v113_v13 = vadd.f32 %v112_v12, %v31_v11  ;;  %v150_v14 = vpop.f32.mrb[1].mxu0 }
  0xea   :  { %v115_v16 = vpop.f32.mrb[2].mxu0 }
  0xeb   :  { %119 = vst [vmem:[%s218_s3] sm:$0xff] %v113_v13  ;;  %v116_v17 = vadd.f32 %v115_v16, %v36_v15  ;;  %v151_v18 = vpop.f32.mrb[3].mxu0 }
  0xed   :  { %120 = vst [vmem:[%s218_s3 + $0x8] sm:$0xff] %v116_v17 }

// kernel: encoder_forward.21
= control target key start
LH: loop header
LB: loop body
LE: loop exit
PB: predicated region body
PF: predicated region fallthrough
CT: control target
= control target key end

     0   :  { %vm24_vm0 = vcmask 517120   ;;  %s576_s0 = inlined_call_operand.vmem [shape: f32[16,2,64], index: 0, kind: input, shape index: {}]   ;;  %s577_s1 = inlined_call_operand.vmem [shape: f32[16,2,64], index: 1, kind: output, shape index: {}]  }
   0x1   :  { %v8_v0 = vld [vmem:[%s576_s0] sm:$0x3]  ;;  %v10_v1 = vld [vmem:[%s576_s0 + $0x4] sm:$0x3]  ;;  %v9_v2 = vld [vmem:[%s576_s0 + $0x2] sm:$0x3] }
   0x2   :  { %v25_v3 = vsel %vm24_vm0, %v8_v0, 0.0  ;;  %v31_v4 = vsel %vm24_vm0, %v10_v1, 0.0  ;;  %v11_v5 = vld [vmem:[%s576_s0 + $0x6] sm:$0x3]  ;;  %v28_v6 = vsel %vm24_vm0, %v9_v2, 0.0 }
   0x3   :  { %26 = vadd.xlane.f32.xlu0 %v25_v3  ;;  %32 = vadd.xlane.f32.xlu1 %v31_v4  ;;  %v34_v7 = vsel %vm24_vm0, %v11_v5, 0.0  ;;  %v12_v8 = vld [vmem:[%s576_s0 + $0x8] sm:$0x3]  ;;  %v13_v9 = vld [vmem:[%s576_s0 + $0xa] sm:$0x3] }
   0x4   :  { %v37_v10 = vsel %vm24_vm0, %v12_v8, 0.0  ;;  %v40_v11 = vsel %vm24_vm0, %v13_v9, 0.0  ;;  %v339_v12 = vld [vmem:[%s576_s0 + $0xc] sm:$0x3]  ;;  %v344_v13 = vld [vmem:[%s576_s0 + $0xe] sm:$0x3] }
   0x5   :  { %v43_v14 = vsel %vm24_vm0, %v339_v12, 0.0  ;;  %v46_v15 = vsel %vm24_vm0, %v344_v13, 0.0  ;;  %v353_v16 = vld [vmem:[%s576_s0 + $0x10] sm:$0x3]  ;;  %v358_v17 = vld [vmem:[%s576_s0 + $0x12] sm:$0x3] }
   0x6   :  { %v49_v18 = vsel %vm24_vm0, %v353_v16, 0.0  ;;  %v52_v19 = vsel %vm24_vm0, %v358_v17, 0.0  ;;  %v367_v20 = vld [vmem:[%s576_s0 + $0x14] sm:$0x3]  ;;  %v372_v21 = vld [vmem:[%s576_s0 + $0x16] sm:$0x3] }
   0x7   :  { %29 = vadd.xlane.f32.xlu0 %v28_v6  ;;  %35 = vadd.xlane.f32.xlu1 %v34_v7  ;;  %v55_v22 = vsel %vm24_vm0, %v367_v20, 0.0  ;;  %v58_v23 = vsel %vm24_vm0, %v372_v21, 0.0  ;;  %v381_v24 = vld [vmem:[%s576_s0 + $0x18] sm:$0x3]  ;;  %v386_v25 = vld [vmem:[%s576_s0 + $0x1a] sm:$0x3] }
   0x8   :  { %v61_v26 = vsel %vm24_vm0, %v381_v24, 0.0  ;;  %v64_v27 = vsel %vm24_vm0, %v386_v25, 0.0  ;;  %v395_v28 = vld [vmem:[%s576_s0 + $0x1c] sm:$0x3]  ;;  %v400_v29 = vld [vmem:[%s576_s0 + $0x1e] sm:$0x3] }
   0x9   :  { %v67_v30 = vsel %vm24_vm0, %v395_v28, 0.0  ;;  %v70_v31 = vsel %vm24_vm0, %v400_v29, 0.0 }
   0xb   :  { %38 = vadd.xlane.f32.xlu0 %v37_v10  ;;  %41 = vadd.xlane.f32.xlu1 %v40_v11 }
   0xf   :  { %44 = vadd.xlane.f32.xlu0 %v43_v14  ;;  %47 = vadd.xlane.f32.xlu1 %v46_v15 }
  0x13   :  { %50 = vadd.xlane.f32.xlu0 %v49_v18  ;;  %53 = vadd.xlane.f32.xlu1 %v52_v19 }
  0x17   :  { %56 = vadd.xlane.f32.xlu0 %v55_v22  ;;  %59 = vadd.xlane.f32.xlu1 %v58_v23 }
  0x1b   :  { %62 = vadd.xlane.f32.xlu0 %v61_v26  ;;  %65 = vadd.xlane.f32.xlu1 %v64_v27 }
  0x1f   :  { %68 = vadd.xlane.f32.xlu0 %v67_v30  ;;  %71 = vadd.xlane.f32.xlu1 %v70_v31 }
  0x90   :  { %v27_v32 = vpop.xlane.xlu0 %26  ;;  %v33_v33 = vpop.xlane.xlu1 %32 }
  0x91   :  { %v74_v34 = vmul.f32 0.015625, %v27_v32  ;;  %v76_v35 = vmul.f32 0.015625, %v33_v33 }
  0x93   :  { %v406_v36 = vsub.f32 %v8_v0, %v74_v34  ;;  %v408_v37 = vsub.f32 %v10_v1, %v76_v35 }
  0x94   :  { %v30_v38 = vpop.xlane.xlu0 %29  ;;  %v36_v39 = vpop.xlane.xlu1 %35 }
  0x95   :  { %v75_v40 = vmul.f32 0.015625, %v30_v38  ;;  %v77_v41 = vmul.f32 0.015625, %v36_v39  ;;  %v106_v42 = vmul.f32 %v406_v36, %v406_v36  ;;  %v108_v43 = vmul.f32 %v408_v37, %v408_v37 }
  0x97   :  { %v414_v44 = vsub.f32 %v9_v2, %v75_v40  ;;  %v416_v45 = vsub.f32 %v11_v5, %v77_v41  ;;  %v122_v46 = vsel %vm24_vm0, %v106_v42, 0.0  ;;  %v128_v49 = vsel %vm24_vm0, %v108_v43, 0.0 }
  0x98   :  { %123 = vadd.xlane.f32.xlu0 %v122_v46  ;;  %v39_v47 = vpop.xlane.xlu0 %38  ;;  %v42_v48 = vpop.xlane.xlu1 %41 }
  0x99   :  { %v78_v50 = vmul.f32 0.015625, %v39_v47  ;;  %v79_v51 = vmul.f32 0.015625, %v42_v48  ;;  %v107_v52 = vmul.f32 %v414_v44, %v414_v44  ;;  %v109_v53 = vmul.f32 %v416_v45, %v416_v45 }
  0x9b   :  { %v424_v54 = vsub.f32 %v12_v8, %v78_v50  ;;  %v426_v55 = vsub.f32 %v13_v9, %v79_v51  ;;  %v125_v56 = vsel %vm24_vm0, %v107_v52, 0.0  ;;  %v131_v59 = vsel %vm24_vm0, %v109_v53, 0.0 }
  0x9c   :  { %129 = vadd.xlane.f32.xlu0 %v128_v49  ;;  %126 = vadd.xlane.f32.xlu1 %v125_v56  ;;  %v45_v57 = vpop.xlane.xlu0 %44  ;;  %v48_v58 = vpop.xlane.xlu1 %47 }
  0x9d   :  { %v80_v60 = vmul.f32 0.015625, %v45_v57  ;;  %v81_v61 = vmul.f32 0.015625, %v48_v58  ;;  %v110_v62 = vmul.f32 %v424_v54, %v424_v54  ;;  %v111_v63 = vmul.f32 %v426_v55, %v426_v55 }
  0x9f   :  { %v435_v0 = vsub.f32 %v339_v12, %v80_v60  ;;  %v438_v1 = vsub.f32 %v344_v13, %v81_v61  ;;  %v134_v2 = vsel %vm24_vm0, %v110_v62, 0.0  ;;  %v137_v5 = vsel %vm24_vm0, %v111_v63, 0.0 }
  0xa0   :  { %132 = vadd.xlane.f32.xlu1 %v131_v59  ;;  %135 = vadd.xlane.f32.xlu0 %v134_v2  ;;  %v51_v3 = vpop.xlane.xlu0 %50  ;;  %v54_v4 = vpop.xlane.xlu1 %53 }
  0xa1   :  { %v82_v6 = vmul.f32 0.015625, %v51_v3  ;;  %v83_v7 = vmul.f32 0.015625, %v54_v4  ;;  %v112_v8 = vmul.f32 %v435_v0, %v435_v0  ;;  %v113_v9 = vmul.f32 %v438_v1, %v438_v1 }
  0xa3   :  { %v447_v10 = vsub.f32 %v353_v16, %v82_v6  ;;  %v450_v11 = vsub.f32 %v358_v17, %v83_v7  ;;  %v140_v12 = vsel %vm24_vm0, %v112_v8, 0.0  ;;  %v143_v15 = vsel %vm24_vm0, %v113_v9, 0.0 }
  0xa4   :  { %138 = vadd.xlane.f32.xlu1 %v137_v5  ;;  %141 = vadd.xlane.f32.xlu0 %v140_v12  ;;  %v57_v13 = vpop.xlane.xlu0 %56  ;;  %v60_v14 = vpop.xlane.xlu1 %59 }
  0xa5   :  { %v84_v18 = vmul.f32 0.015625, %v57_v13  ;;  %v85_v19 = vmul.f32 0.015625, %v60_v14  ;;  %v114_v22 = vmul.f32 %v447_v10, %v447_v10  ;;  %v115_v16 = vmul.f32 %v450_v11, %v450_v11 }
  0xa7   :  { %v459_v23 = vsub.f32 %v367_v20, %v84_v18  ;;  %v462_v17 = vsub.f32 %v372_v21, %v85_v19  ;;  %v146_v26 = vsel %vm24_vm0, %v114_v22, 0.0  ;;  %v149_v31 = vsel %vm24_vm0, %v115_v16, 0.0 }
  0xa8   :  { %144 = vadd.xlane.f32.xlu1 %v143_v15  ;;  %147 = vadd.xlane.f32.xlu0 %v146_v26  ;;  %v63_v27 = vpop.xlane.xlu0 %62  ;;  %v66_v30 = vpop.xlane.xlu1 %65 }
  0xa9   :  { %v86_v32 = vmul.f32 0.015625, %v63_v27  ;;  %v87_v33 = vmul.f32 0.015625, %v66_v30  ;;  %v116_v34 = vmul.f32 %v459_v23, %v459_v23  ;;  %v117_v20 = vmul.f32 %v462_v17, %v462_v17 }
  0xab   :  { %v471_v35 = vsub.f32 %v381_v24, %v86_v32  ;;  %v474_v21 = vsub.f32 %v386_v25, %v87_v33  ;;  %v152_v38 = vsel %vm24_vm0, %v116_v34, 0.0  ;;  %v155_v41 = vsel %vm24_vm0, %v117_v20, 0.0 }
  0xac   :  { %150 = vadd.xlane.f32.xlu1 %v149_v31  ;;  %153 = vadd.xlane.f32.xlu0 %v152_v38  ;;  %v69_v39 = vpop.xlane.xlu0 %68  ;;  %v72_v40 = vpop.xlane.xlu1 %71 }
  0xad   :  { %v88_v42 = vmul.f32 0.015625, %v69_v39  ;;  %v89_v43 = vmul.f32 0.015625, %v72_v40  ;;  %v118_v46 = vmul.f32 %v471_v35, %v471_v35  ;;  %v119_v24 = vmul.f32 %v474_v21, %v474_v21 }
  0xaf   :  { %v483_v47 = vsub.f32 %v395_v28, %v88_v42  ;;  %v486_v25 = vsub.f32 %v400_v29, %v89_v43  ;;  %v158_v48 = vsel %vm24_vm0, %v118_v46, 0.0  ;;  %v161_v49 = vsel %vm24_vm0, %v119_v24, 0.0 }
  0xb0   :  { %156 = vadd.xlane.f32.xlu1 %v155_v41  ;;  %159 = vadd.xlane.f32.xlu0 %v158_v48 }
  0xb1   :  { %v120_v50 = vmul.f32 %v483_v47, %v483_v47  ;;  %v121_v51 = vmul.f32 %v486_v25, %v486_v25 }
  0xb3   :  { %v164_v52 = vsel %vm24_vm0, %v120_v50, 0.0  ;;  %v167_v28 = vsel %vm24_vm0, %v121_v51, 0.0 }
  0xb4   :  { %162 = vadd.xlane.f32.xlu1 %v161_v49  ;;  %165 = vadd.xlane.f32.xlu0 %v164_v52 }
  0xb8   :  { %168 = vadd.xlane.f32.xlu1 %v167_v28 }
 0x125   :  { %v124_v29 = vpop.xlane.xlu0 %123 }
 0x126   :  { %v170_v53 = vmul.f32 0.015625, %v124_v29 }
 0x128   :  { %v186_v56 = vadd.f32 1e-05, %v170_v53 }
 0x129   :  { %v127_v57 = vpop.xlane.xlu1 %126  ;;  %v130_v58 = vpop.xlane.xlu0 %129 }
 0x12a   :  { %270 = vrsqrt.f32 %v186_v56  ;;  %v171_v59 = vmul.f32 0.015625, %v127_v57  ;;  %v172_v60 = vmul.f32 0.015625, %v130_v58 }
 0x12c   :  { %v187_v61 = vadd.f32 1e-05, %v171_v59  ;;  %v188_v62 = vadd.f32 1e-05, %v172_v60 }
 0x12d   :  { %v133_v63 = vpop.xlane.xlu1 %132  ;;  %v136_v2 = vpop.xlane.xlu0 %135 }
 0x12e   :  { %272 = vrsqrt.f32 %v187_v61  ;;  %v173_v3 = vmul.f32 0.015625, %v133_v63  ;;  %v174_v4 = vmul.f32 0.015625, %v136_v2 }
 0x12f   :  { %274 = vrsqrt.f32 %v188_v62 }
 0x130   :  { %v189_v5 = vadd.f32 1e-05, %v173_v3  ;;  %v190_v6 = vadd.f32 1e-05, %v174_v4 }
 0x131   :  { %v139_v7 = vpop.xlane.xlu1 %138  ;;  %v142_v8 = vpop.xlane.xlu0 %141 }
 0x132   :  { %276 = vrsqrt.f32 %v189_v5  ;;  %v175_v9 = vmul.f32 0.015625, %v139_v7  ;;  %v176_v12 = vmul.f32 0.015625, %v142_v8 }
 0x133   :  { %278 = vrsqrt.f32 %v190_v6 }
 0x134   :  { %v271_v13 = vpop.eup %270  ;;  %v191_v14 = vadd.f32 1e-05, %v175_v9  ;;  %v192_v15 = vadd.f32 1e-05, %v176_v12 }
 0x135   :  { %v218_v18 = vmul.f32 %v271_v13, %v406_v36  ;;  %v145_v19 = vpop.xlane.xlu1 %144  ;;  %v148_v22 = vpop.xlane.xlu0 %147 }
 0x136   :  { %280 = vrsqrt.f32 %v191_v14  ;;  %v177_v16 = vmul.f32 0.015625, %v145_v19  ;;  %v178_v26 = vmul.f32 0.015625, %v148_v22 }
 0x137   :  { %v234_v27 = vmax.f32 %v218_v18, 0.0  ;;  %282 = vrsqrt.f32 %v192_v15 }
 0x138   :  { %v273_v30 = vpop.eup %272  ;;  %v193_v31 = vadd.f32 1e-05, %v177_v16  ;;  %v194_v32 = vadd.f32 1e-05, %v178_v26 }
 0x139   :  { %v275_v33 = vpop.eup %274  ;;  %250 = vst.msk [vmem:[%s577_s1] sm:$0x3] %vm24_vm0, %v234_v27  ;;  %v219_v34 = vmul.f32 %v273_v30, %v414_v44  ;;  %v151_v20 = vpop.xlane.xlu1 %150 }
 0x13a   :  { %v154_v36 = vpop.xlane.xlu0 %153  ;;  %v220_v38 = vmul.f32 %v275_v33, %v408_v37  ;;  %284 = vrsqrt.f32 %v193_v31  ;;  %v179_v39 = vmul.f32 0.015625, %v151_v20 }
 0x13b   :  { %v180_v40 = vmul.f32 0.015625, %v154_v36  ;;  %v235_v41 = vmax.f32 %v219_v34, 0.0  ;;  %286 = vrsqrt.f32 %v194_v32 }
 0x13c   :  { %v277_v42 = vpop.eup %276  ;;  %v236_v43 = vmax.f32 %v220_v38, 0.0  ;;  %v195_v46 = vadd.f32 1e-05, %v179_v39 }
 0x13d   :  { %v196_v24 = vadd.f32 1e-05, %v180_v40  ;;  %v279_v48 = vpop.eup %278  ;;  %251 = vst.msk [vmem:[%s577_s1 + $0x2] sm:$0x3] %vm24_vm0, %v235_v41  ;;  %v221_v44 = vmul.f32 %v277_v42, %v416_v45  ;;  %v157_v49 = vpop.xlane.xlu1 %156 }
 0x13e   :  { %v160_v50 = vpop.xlane.xlu0 %159  ;;  %252 = vst.msk [vmem:[%s577_s1 + $0x4] sm:$0x3] %vm24_vm0, %v236_v43  ;;  %v222_v37 = vmul.f32 %v279_v48, %v424_v54  ;;  %288 = vrsqrt.f32 %v195_v46  ;;  %v181_v51 = vmul.f32 0.015625, %v157_v49 }
 0x13f   :  { %v182_v52 = vmul.f32 0.015625, %v160_v50  ;;  %v237_v28 = vmax.f32 %v221_v44, 0.0  ;;  %290 = vrsqrt.f32 %v196_v24 }
 0x140   :  { %v281_v29 = vpop.eup %280  ;;  %v238_v53 = vmax.f32 %v222_v37, 0.0  ;;  %v197_v56 = vadd.f32 1e-05, %v181_v51 }
 0x141   :  { %v198_v57 = vadd.f32 1e-05, %v182_v52  ;;  %v283_v58 = vpop.eup %282  ;;  %253 = vst.msk [vmem:[%s577_s1 + $0x6] sm:$0x3] %vm24_vm0, %v237_v28  ;;  %v223_v45 = vmul.f32 %v281_v29, %v426_v55  ;;  %v163_v59 = vpop.xlane.xlu1 %162 }
 0x142   :  { %v166_v60 = vpop.xlane.xlu0 %165  ;;  %254 = vst.msk [vmem:[%s577_s1 + $0x8] sm:$0x3] %vm24_vm0, %v238_v53  ;;  %v224_v54 = vmul.f32 %v283_v58, %v435_v0  ;;  %292 = vrsqrt.f32 %v197_v56  ;;  %v183_v61 = vmul.f32 0.015625, %v163_v59 }
 0x143   :  { %v184_v62 = vmul.f32 0.015625, %v166_v60  ;;  %v239_v63 = vmax.f32 %v223_v45, 0.0  ;;  %294 = vrsqrt.f32 %v198_v57 }
 0x144   :  { %v285_v2 = vpop.eup %284  ;;  %v240_v3 = vmax.f32 %v224_v54, 0.0  ;;  %v199_v4 = vadd.f32 1e-05, %v183_v61 }
 0x145   :  { %v200_v5 = vadd.f32 1e-05, %v184_v62  ;;  %v287_v6 = vpop.eup %286  ;;  %255 = vst.msk [vmem:[%s577_s1 + $0xa] sm:$0x3] %vm24_vm0, %v239_v63  ;;  %v225_v55 = vmul.f32 %v285_v2, %v438_v1  ;;  %v169_v7 = vpop.xlane.xlu1 %168 }
 0x146   :  { %256 = vst.msk [vmem:[%s577_s1 + $0xc] sm:$0x3] %vm24_vm0, %v240_v3  ;;  %v226_v0 = vmul.f32 %v287_v6, %v447_v10  ;;  %296 = vrsqrt.f32 %v199_v4  ;;  %v185_v8 = vmul.f32 0.015625, %v169_v7 }
 0x147   :  { %v241_v9 = vmax.f32 %v225_v55, 0.0  ;;  %298 = vrsqrt.f32 %v200_v5 }
 0x148   :  { %v289_v12 = vpop.eup %288  ;;  %v242_v13 = vmax.f32 %v226_v0, 0.0  ;;  %v201_v14 = vadd.f32 1e-05, %v185_v8 }
 0x149   :  { %v291_v15 = vpop.eup %290  ;;  %257 = vst.msk [vmem:[%s577_s1 + $0xe] sm:$0x3] %vm24_vm0, %v241_v9  ;;  %v227_v1 = vmul.f32 %v289_v12, %v450_v11 }
 0x14a   :  { %258 = vst.msk [vmem:[%s577_s1 + $0x10] sm:$0x3] %vm24_vm0, %v242_v13  ;;  %v228_v10 = vmul.f32 %v291_v15, %v459_v23  ;;  %300 = vrsqrt.f32 %v201_v14 }
 0x14b   :  { %v243_v18 = vmax.f32 %v227_v1, 0.0 }
 0x14c   :  { %v293_v19 = vpop.eup %292  ;;  %v244_v22 = vmax.f32 %v228_v10, 0.0 }
 0x14d   :  { %v295_v16 = vpop.eup %294  ;;  %259 = vst.msk [vmem:[%s577_s1 + $0x12] sm:$0x3] %vm24_vm0, %v243_v18  ;;  %v229_v26 = vmul.f32 %v293_v19, %v462_v17 }
 0x14e   :  { %260 = vst.msk [vmem:[%s577_s1 + $0x14] sm:$0x3] %vm24_vm0, %v244_v22  ;;  %v230_v11 = vmul.f32 %v295_v16, %v471_v35 }
 0x14f   :  { %v245_v23 = vmax.f32 %v229_v26, 0.0 }
 0x150   :  { %v297_v27 = vpop.eup %296  ;;  %v246_v30 = vmax.f32 %v230_v11, 0.0 }
 0x151   :  { %v299_v31 = vpop.eup %298  ;;  %261 = vst.msk [vmem:[%s577_s1 + $0x16] sm:$0x3] %vm24_vm0, %v245_v23  ;;  %v231_v32 = vmul.f32 %v297_v27, %v474_v21 }
 0x152   :  { %262 = vst.msk [vmem:[%s577_s1 + $0x18] sm:$0x3] %vm24_vm0, %v246_v30  ;;  %v232_v17 = vmul.f32 %v299_v31, %v483_v47 }
 0x153   :  { %v247_v33 = vmax.f32 %v231_v32, 0.0 }
 0x154   :  { %v301_v35 = vpop.eup %300  ;;  %v248_v34 = vmax.f32 %v232_v17, 0.0 }
 0x155   :  { %263 = vst.msk [vmem:[%s577_s1 + $0x1a] sm:$0x3] %vm24_vm0, %v247_v33  ;;  %v233_v20 = vmul.f32 %v301_v35, %v486_v25 }
 0x156   :  { %264 = vst.msk [vmem:[%s577_s1 + $0x1c] sm:$0x3] %vm24_vm0, %v248_v34 }
 0x157   :  { %v249_v21 = vmax.f32 %v233_v20, 0.0 }
 0x159   :  { %265 = vst.msk [vmem:[%s577_s1 + $0x1e] sm:$0x3] %vm24_vm0, %v249_v21 }

// kernel: encoder_forward.22
= control target key start
LH: loop header
LB: loop body
LE: loop exit
PB: predicated region body
PF: predicated region fallthrough
CT: control target
= control target key end

     0   :  { %v248_v0 = vmov 0   ;;  %vm133_vm0 = vcmask 130048   ;;  %s332_s1 = inlined_call_operand.vmem [shape: bf16[144,128], index: 1, kind: input, shape index: {}]   ;;  %s333_s0 = inlined_call_operand.vmem [shape: bf16[32,144], index: 0, kind: input, shape index: {}]   ;;  %s334_s2 = inlined_call_operand.vmem [shape: f32[32,1], index: 2, kind: input, shape index: {}]   ;;  %s335_s3 = inlined_call_operand.vmem [shape: f32[32,128], index: 3, kind: output, shape index: {}]  }
   0x1   :  { %140 = vmatprep.subr.bf16.mxu0 %v248_v0  ;;  %212 = vmatprep.subr.bf16.mxu1 %v248_v0  ;;  %v233_v1 = vld [vmem:[%s332_s1] sm:$0xff]   ;;  %v234_v2 = vld [vmem:[%s332_s1 + $0x8] sm:$0xff]   ;;  %v235_v3 = vld [vmem:[%s332_s1 + $0x10] sm:$0xff]  }
   0x2   :  { %232 = vset.pattern.permute.xlu1 %v248_v0  ;;  %231 = vset.pattern.permute.xlu0 %v248_v0  ;;  %v236_v4 = vld [vmem:[%s332_s1 + $0x18] sm:$0xff]   ;;  %v244_v5 = vld [vmem:[%s333_s0 + $0x4] ss:$8 sps:$4 sm:$0xff]   ;;  %v39_v7 = vld [vmem:[%s334_s2 + $0x10] sm:$0xff] }
   0x3   :  { %141 = vmatpush1.bf16.msra.mxu0 %v233_v1  ;;  %221 = vmatpush1.bf16.msra.mxu1 %v233_v1  ;;  %v247_v6 = vld [vmem:[%s333_s0 + $0x14] ss:$8 sps:$4 sm:$0xff]   ;;  %v37_v8 = vld [vmem:[%s334_s2] sm:$0xff]  ;;  %v38_v11 = vld [vmem:[%s334_s2 + $0x8] sm:$0xff] }
   0x4   :  { %142 = vmatprep.subr.bf16.mxu0 %v248_v0  ;;  %213 = vmatprep.subr.bf16.mxu1 %v248_v0  ;;  %v40_v9 = vld [vmem:[%s334_s2 + $0x18] sm:$0xff]  ;;  %v237_v10 = vld [vmem:[%s332_s1 + $0x20] sm:$0xff]   ;;  %v238_v12 = vld [vmem:[%s332_s1 + $0x28] sm:$0xff]  }
   0x5   :  { %210 = vmatprep.mubr.msk.bf16.mxu0 %vm133_vm0, %v244_v5  ;;  %53 = vperm.xlu1 %232, %v39_v7   ;;  %v239_v13 = vld [vmem:[%s332_s1 + $0x30] sm:$0xff]   ;;  %v240_v14 = vld [vmem:[%s332_s1 + $0x38] sm:$0xff]   ;;  %v241_v15 = vld [vmem:[%s332_s1 + $0x40] sm:$0xff]  }
   0x6   :  { %211 = vmatprep.mubr.msk.bf16.mxu1 %vm133_vm0, %v247_v6  ;;  %43 = vperm.xlu0 %231, %v37_v8   ;;  %v242_v16 = vld [vmem:[%s333_s0] ss:$8 sps:$4 sm:$0xff]   ;;  %v245_v17 = vld [vmem:[%s333_s0 + $0x10] ss:$8 sps:$4 sm:$0xff]  }
   0x7   :  { %143 = vmatpush1.bf16.msra.mxu0 %v234_v2  ;;  %222 = vmatpush1.bf16.msra.mxu1 %v234_v2 }
   0x8   :  { %144 = vmatprep.subr.bf16.mxu0 %v248_v0  ;;  %214 = vmatprep.subr.bf16.mxu1 %v248_v0 }
   0x9   :  { %58 = vperm.xlu1 %232, %v40_v9  }
   0xa   :  { %48 = vperm.xlu0 %231, %v38_v11  }
   0xb   :  { %145 = vmatpush1.bf16.msra.mxu0 %v235_v3  ;;  %223 = vmatpush1.bf16.msra.mxu1 %v235_v3 }
   0xc   :  { %146 = vmatprep.subr.bf16.mxu0 %v248_v0  ;;  %215 = vmatprep.subr.bf16.mxu1 %v248_v0 }
   0xf   :  { %147 = vmatpush1.bf16.msra.mxu0 %v236_v4  ;;  %224 = vmatpush1.bf16.msra.mxu1 %v236_v4 }
  0x10   :  { %148 = vmatprep.subr.bf16.mxu0 %v248_v0  ;;  %216 = vmatprep.subr.bf16.mxu1 %v248_v0 }
  0x13   :  { %149 = vmatpush1.bf16.msra.mxu0 %v237_v10  ;;  %225 = vmatpush1.bf16.msra.mxu1 %v237_v10 }
  0x14   :  { %150 = vmatprep.subr.bf16.mxu0 %v248_v0  ;;  %217 = vmatprep.subr.bf16.mxu1 %v248_v0 }
  0x17   :  { %151 = vmatpush1.bf16.msra.mxu0 %v238_v12  ;;  %226 = vmatpush1.bf16.msra.mxu1 %v238_v12 }
  0x18   :  { %152 = vmatprep.subr.bf16.mxu0 %v248_v0  ;;  %218 = vmatprep.subr.bf16.mxu1 %v248_v0 }
  0x1b   :  { %153 = vmatpush1.bf16.msra.mxu0 %v239_v13  ;;  %227 = vmatpush1.bf16.msra.mxu1 %v239_v13 }
  0x1c   :  { %154 = vmatprep.subr.bf16.mxu0 %v248_v0  ;;  %219 = vmatprep.subr.bf16.mxu1 %v248_v0 }
  0x1f   :  { %155 = vmatpush1.bf16.msra.mxu0 %v240_v14  ;;  %228 = vmatpush1.bf16.msra.mxu1 %v240_v14 }
  0x20   :  { %156 = vmatprep.subr.bf16.mxu0 %v248_v0  ;;  %220 = vmatprep.subr.bf16.mxu1 %v248_v0 }
  0x23   :  { %157 = vmatpush1.bf16.msra.mxu0 %v241_v15  ;;  %229 = vmatpush1.bf16.msra.mxu1 %v241_v15 }
  0x26   :  { %173 = vmatmul.mubr.bf16.vlgmr.msra.gmra.mrb[0].mxu0 %v242_v16  ;;  %181 = vmatmul.mubr.bf16.vlgmr.msra.gmra.mrb[0].mxu1 %v245_v17 }
  0x84   :  { %v54_v18 = vpop.permute.xlu1 %53 }
  0x85   :  { %v44_v19 = vpop.permute.xlu0 %43 }
  0x88   :  { %v59_v20 = vpop.permute.xlu1 %58 }
  0x89   :  { %v49_v21 = vpop.permute.xlu0 %48 }
  0xf9   :  { %v174_v22 = vpop.f32.mrb[0].mxu0  ;;  %v182_v23 = vpop.f32.mrb[0].mxu1 }
  0xfa   :  { %v175_v24 = vadd.f32 %v174_v22, %v44_v19  ;;  %v183_v25 = vadd.f32 %v182_v23, %v54_v18  ;;  %v176_v26 = vpop.f32.mrb[1].mxu0  ;;  %v184_v27 = vpop.f32.mrb[1].mxu1 }
  0xfb   :  { %v177_v28 = vpop.f32.mrb[2].mxu0  ;;  %v185_v29 = vpop.f32.mrb[2].mxu1 }
  0xfc   :  { %189 = vst [vmem:[%s335_s3] sm:$0xff] %v175_v24  ;;  %191 = vst [vmem:[%s335_s3 + $0x10] sm:$0xff] %v183_v25  ;;  %v178_v30 = vadd.f32 %v177_v28, %v49_v21  ;;  %v186_v31 = vadd.f32 %v185_v29, %v59_v20  ;;  %v179_v32 = vpop.f32.mrb[3].mxu0  ;;  %v187_v33 = vpop.f32.mrb[3].mxu1 }
  0xfe   :  { %190 = vst [vmem:[%s335_s3 + $0x8] sm:$0xff] %v178_v30  ;;  %192 = vst [vmem:[%s335_s3 + $0x18] sm:$0xff] %v186_v31 }

// kernel: encoder_forward.23
= control target key start
LH: loop header
LB: loop body
LE: loop exit
PB: predicated region body
PF: predicated region fallthrough
CT: control target
= control target key end

     0   :  { %vm40_vm0 = vcmask 123904   ;;  %s1176_s0 = inlined_call_operand.vmem [shape: f32[32,2,16], index: 0, kind: input, shape index: {}]   ;;  %s1177_s1 = inlined_call_operand.vmem [shape: f32[32,2,16], index: 1, kind: output, shape index: {}]  }
   0x1   :  { %v603_v0 = vld [vmem:[%s1176_s0] sm:$0x3]  ;;  %v608_v1 = vld [vmem:[%s1176_s0 + $0x4] sm:$0x3]  ;;  %v613_v2 = vld [vmem:[%s1176_s0 + $0x2] sm:$0x3] }
   0x2   :  { %v41_v3 = vsel %vm40_vm0, %v603_v0, 0.0  ;;  %v47_v4 = vsel %vm40_vm0, %v608_v1, 0.0  ;;  %v622_v5 = vld [vmem:[%s1176_s0 + $0x6] sm:$0x3]  ;;  %v44_v6 = vsel %vm40_vm0, %v613_v2, 0.0 }
   0x3   :  { %42 = vadd.xlane.f32.xlu0 %v41_v3  ;;  %48 = vadd.xlane.f32.xlu1 %v47_v4  ;;  %v50_v7 = vsel %vm40_vm0, %v622_v5, 0.0  ;;  %v631_v8 = vld [vmem:[%s1176_s0 + $0x8] sm:$0x3]  ;;  %v636_v9 = vld [vmem:[%s1176_s0 + $0xa] sm:$0x3] }
   0x4   :  { %v53_v10 = vsel %vm40_vm0, %v631_v8, 0.0  ;;  %v56_v11 = vsel %vm40_vm0, %v636_v9, 0.0  ;;  %v645_v12 = vld [vmem:[%s1176_s0 + $0xc] sm:$0x3]  ;;  %v650_v13 = vld [vmem:[%s1176_s0 + $0xe] sm:$0x3] }
   0x5   :  { %v59_v14 = vsel %vm40_vm0, %v645_v12, 0.0  ;;  %v62_v15 = vsel %vm40_vm0, %v650_v13, 0.0  ;;  %v659_v16 = vld [vmem:[%s1176_s0 + $0x10] sm:$0x3]  ;;  %v664_v17 = vld [vmem:[%s1176_s0 + $0x12] sm:$0x3] }
   0x6   :  { %v65_v18 = vsel %vm40_vm0, %v659_v16, 0.0  ;;  %v68_v19 = vsel %vm40_vm0, %v664_v17, 0.0  ;;  %v673_v20 = vld [vmem:[%s1176_s0 + $0x14] sm:$0x3]  ;;  %v678_v21 = vld [vmem:[%s1176_s0 + $0x16] sm:$0x3] }
   0x7   :  { %45 = vadd.xlane.f32.xlu0 %v44_v6  ;;  %51 = vadd.xlane.f32.xlu1 %v50_v7  ;;  %v71_v22 = vsel %vm40_vm0, %v673_v20, 0.0  ;;  %v74_v23 = vsel %vm40_vm0, %v678_v21, 0.0  ;;  %v687_v24 = vld [vmem:[%s1176_s0 + $0x18] sm:$0x3]  ;;  %v692_v25 = vld [vmem:[%s1176_s0 + $0x1a] sm:$0x3] }
   0x8   :  { %v77_v26 = vsel %vm40_vm0, %v687_v24, 0.0  ;;  %v80_v27 = vsel %vm40_vm0, %v692_v25, 0.0  ;;  %v701_v28 = vld [vmem:[%s1176_s0 + $0x1c] sm:$0x3]  ;;  %v706_v29 = vld [vmem:[%s1176_s0 + $0x1e] sm:$0x3] }
   0x9   :  { %v83_v30 = vsel %vm40_vm0, %v701_v28, 0.0  ;;  %v86_v31 = vsel %vm40_vm0, %v706_v29, 0.0  ;;  %v715_v32 = vld [vmem:[%s1176_s0 + $0x20] sm:$0x3]  ;;  %v720_v33 = vld [vmem:[%s1176_s0 + $0x22] sm:$0x3] }
   0xa   :  { %v89_v34 = vsel %vm40_vm0, %v715_v32, 0.0  ;;  %v92_v35 = vsel %vm40_vm0, %v720_v33, 0.0  ;;  %v729_v36 = vld [vmem:[%s1176_s0 + $0x24] sm:$0x3]  ;;  %v734_v37 = vld [vmem:[%s1176_s0 + $0x26] sm:$0x3] }
   0xb   :  { %54 = vadd.xlane.f32.xlu0 %v53_v10  ;;  %57 = vadd.xlane.f32.xlu1 %v56_v11  ;;  %v95_v38 = vsel %vm40_vm0, %v729_v36, 0.0  ;;  %v98_v39 = vsel %vm40_vm0, %v734_v37, 0.0  ;;  %v743_v40 = vld [vmem:[%s1176_s0 + $0x28] sm:$0x3]  ;;  %v748_v41 = vld [vmem:[%s1176_s0 + $0x2a] sm:$0x3] }
   0xc   :  { %v101_v42 = vsel %vm40_vm0, %v743_v40, 0.0  ;;  %v104_v43 = vsel %vm40_vm0, %v748_v41, 0.0  ;;  %v757_v44 = vld [vmem:[%s1176_s0 + $0x2c] sm:$0x3]  ;;  %v762_v45 = vld [vmem:[%s1176_s0 + $0x2e] sm:$0x3] }
   0xd   :  { %v107_v46 = vsel %vm40_vm0, %v757_v44, 0.0  ;;  %v110_v47 = vsel %vm40_vm0, %v762_v45, 0.0  ;;  %v771_v48 = vld [vmem:[%s1176_s0 + $0x30] sm:$0x3]  ;;  %v776_v49 = vld [vmem:[%s1176_s0 + $0x32] sm:$0x3] }
   0xe   :  { %v113_v50 = vsel %vm40_vm0, %v771_v48, 0.0  ;;  %v116_v51 = vsel %vm40_vm0, %v776_v49, 0.0  ;;  %v785_v52 = vld [vmem:[%s1176_s0 + $0x34] sm:$0x3]  ;;  %v790_v53 = vld [vmem:[%s1176_s0 + $0x36] sm:$0x3] }
   0xf   :  { %60 = vadd.xlane.f32.xlu0 %v59_v14  ;;  %63 = vadd.xlane.f32.xlu1 %v62_v15  ;;  %v119_v54 = vsel %vm40_vm0, %v785_v52, 0.0  ;;  %v122_v55 = vsel %vm40_vm0, %v790_v53, 0.0  ;;  %v799_v56 = vld [vmem:[%s1176_s0 + $0x38] sm:$0x3]  ;;  %v804_v57 = vld [vmem:[%s1176_s0 + $0x3a] sm:$0x3] }
  0x10   :  { %v125_v58 = vsel %vm40_vm0, %v799_v56, 0.0  ;;  %v128_v59 = vsel %vm40_vm0, %v804_v57, 0.0  ;;  %v813_v60 = vld [vmem:[%s1176_s0 + $0x3c] sm:$0x3]  ;;  %v818_v61 = vld [vmem:[%s1176_s0 + $0x3e] sm:$0x3] }
  0x11   :  { %v131_v62 = vsel %vm40_vm0, %v813_v60, 0.0  ;;  %v134_v63 = vsel %vm40_vm0, %v818_v61, 0.0 }
  0x13   :  { %66 = vadd.xlane.f32.xlu0 %v65_v18  ;;  %69 = vadd.xlane.f32.xlu1 %v68_v19 }
  0x17   :  { %72 = vadd.xlane.f32.xlu0 %v71_v22  ;;  %75 = vadd.xlane.f32.xlu1 %v74_v23 }
  0x1b   :  { %78 = vadd.xlane.f32.xlu0 %v77_v26  ;;  %81 = vadd.xlane.f32.xlu1 %v80_v27 }
  0x1f   :  { %84 = vadd.xlane.f32.xlu0 %v83_v30  ;;  %87 = vadd.xlane.f32.xlu1 %v86_v31 }
  0x23   :  { %90 = vadd.xlane.f32.xlu0 %v89_v34  ;;  %93 = vadd.xlane.f32.xlu1 %v92_v35 }
  0x27   :  { %96 = vadd.xlane.f32.xlu0 %v95_v38  ;;  %99 = vadd.xlane.f32.xlu1 %v98_v39 }
  0x2b   :  { %102 = vadd.xlane.f32.xlu0 %v101_v42  ;;  %105 = vadd.xlane.f32.xlu1 %v104_v43 }
  0x2f   :  { %108 = vadd.xlane.f32.xlu0 %v107_v46  ;;  %111 = vadd.xlane.f32.xlu1 %v110_v47 }
  0x33   :  { %114 = vadd.xlane.f32.xlu0 %v113_v50  ;;  %117 = vadd.xlane.f32.xlu1 %v116_v51 }
  0x37   :  { %120 = vadd.xlane.f32.xlu0 %v119_v54  ;;  %123 = vadd.xlane.f32.xlu1 %v122_v55 }
  0x3b   :  { %126 = vadd.xlane.f32.xlu0 %v125_v58  ;;  %129 = vadd.xlane.f32.xlu1 %v128_v59 }
  0x3f   :  { %132 = vadd.xlane.f32.xlu0 %v131_v62  ;;  %135 = vadd.xlane.f32.xlu1 %v134_v63 }
  0x90   :  { %v43_v3 = vpop.xlane.xlu0 %42  ;;  %v49_v4 = vpop.xlane.xlu1 %48 }
  0x91   :  { %v138_v6 = vmul.f32 0.0625, %v43_v3  ;;  %v140_v7 = vmul.f32 0.0625, %v49_v4 }
  0x93   :  { %v825_v10 = vsub.f32 %v603_v0, %v138_v6  ;;  %v828_v11 = vsub.f32 %v608_v1, %v140_v7 }
  0x94   :  { %v46_v14 = vpop.xlane.xlu0 %45  ;;  %v52_v15 = vpop.xlane.xlu1 %51 }
  0x95   :  { %v139_v18 = vmul.f32 0.0625, %v46_v14  ;;  %v141_v19 = vmul.f32 0.0625, %v52_v15  ;;  %v202_v22 = vmul.f32 %v825_v10, %v825_v10  ;;  %v204_v23 = vmul.f32 %v828_v11, %v828_v11 }
  0x97   :  { %v835_v26 = vsub.f32 %v613_v2, %v139_v18  ;;  %v838_v27 = vsub.f32 %v622_v5, %v141_v19  ;;  %v234_v0 = vsel %vm40_vm0, %v202_v22, 0.0  ;;  %v240_v31 = vsel %vm40_vm0, %v204_v23, 0.0 }
  0x98   :  { %235 = vadd.xlane.f32.xlu0 %v234_v0  ;;  %v55_v1 = vpop.xlane.xlu0 %54  ;;  %v58_v30 = vpop.xlane.xlu1 %57 }
  0x99   :  { %v142_v34 = vmul.f32 0.0625, %v55_v1  ;;  %v143_v35 = vmul.f32 0.0625, %v58_v30  ;;  %v203_v38 = vmul.f32 %v835_v26, %v835_v26  ;;  %v205_v39 = vmul.f32 %v838_v27, %v838_v27 }
  0x9b   :  { %v847_v2 = vsub.f32 %v631_v8, %v142_v34  ;;  %v850_v5 = vsub.f32 %v636_v9, %v143_v35  ;;  %v237_v42 = vsel %vm40_vm0, %v203_v38, 0.0  ;;  %v243_v47 = vsel %vm40_vm0, %v205_v39, 0.0 }
  0x9c   :  { %241 = vadd.xlane.f32.xlu0 %v240_v31  ;;  %238 = vadd.xlane.f32.xlu1 %v237_v42  ;;  %v61_v43 = vpop.xlane.xlu0 %60  ;;  %v64_v46 = vpop.xlane.xlu1 %63 }
  0x9d   :  { %v144_v50 = vmul.f32 0.0625, %v61_v43  ;;  %v145_v51 = vmul.f32 0.0625, %v64_v46  ;;  %v206_v54 = vmul.f32 %v847_v2, %v847_v2  ;;  %v207_v8 = vmul.f32 %v850_v5, %v850_v5 }
  0x9f   :  { %v859_v55 = vsub.f32 %v645_v12, %v144_v50  ;;  %v862_v9 = vsub.f32 %v650_v13, %v145_v51  ;;  %v246_v58 = vsel %vm40_vm0, %v206_v54, 0.0  ;;  %v249_v63 = vsel %vm40_vm0, %v207_v8, 0.0 }
  0xa0   :  { %244 = vadd.xlane.f32.xlu1 %v243_v47  ;;  %247 = vadd.xlane.f32.xlu0 %v246_v58  ;;  %v67_v59 = vpop.xlane.xlu0 %66  ;;  %v70_v62 = vpop.xlane.xlu1 %69 }
  0xa1   :  { %v146_v3 = vmul.f32 0.0625, %v67_v59  ;;  %v147_v4 = vmul.f32 0.0625, %v70_v62  ;;  %v208_v6 = vmul.f32 %v859_v55, %v859_v55  ;;  %v209_v12 = vmul.f32 %v862_v9, %v862_v9 }
  0xa3   :  { %v871_v7 = vsub.f32 %v659_v16, %v146_v3  ;;  %v874_v13 = vsub.f32 %v664_v17, %v147_v4  ;;  %v252_v14 = vsel %vm40_vm0, %v208_v6, 0.0  ;;  %v255_v19 = vsel %vm40_vm0, %v209_v12, 0.0 }
  0xa4   :  { %250 = vadd.xlane.f32.xlu1 %v249_v63  ;;  %253 = vadd.xlane.f32.xlu0 %v252_v14  ;;  %v73_v15 = vpop.xlane.xlu0 %72  ;;  %v76_v18 = vpop.xlane.xlu1 %75 }
  0xa5   :  { %v148_v22 = vmul.f32 0.0625, %v73_v15  ;;  %v149_v23 = vmul.f32 0.0625, %v76_v18  ;;  %v210_v0 = vmul.f32 %v871_v7, %v871_v7  ;;  %v211_v16 = vmul.f32 %v874_v13, %v874_v13 }
  0xa7   :  { %v883_v1 = vsub.f32 %v673_v20, %v148_v22  ;;  %v886_v17 = vsub.f32 %v678_v21, %v149_v23  ;;  %v258_v30 = vsel %vm40_vm0, %v210_v0, 0.0  ;;  %v261_v35 = vsel %vm40_vm0, %v211_v16, 0.0 }
  0xa8   :  { %256 = vadd.xlane.f32.xlu1 %v255_v19  ;;  %259 = vadd.xlane.f32.xlu0 %v258_v30  ;;  %v79_v31 = vpop.xlane.xlu0 %78  ;;  %v82_v34 = vpop.xlane.xlu1 %81 }
  0xa9   :  { %v150_v38 = vmul.f32 0.0625, %v79_v31  ;;  %v151_v39 = vmul.f32 0.0625, %v82_v34  ;;  %v212_v42 = vmul.f32 %v883_v1, %v883_v1  ;;  %v213_v20 = vmul.f32 %v886_v17, %v886_v17 }
  0xab   :  { %v895_v43 = vsub.f32 %v687_v24, %v150_v38  ;;  %v898_v21 = vsub.f32 %v692_v25, %v151_v39  ;;  %v264_v46 = vsel %vm40_vm0, %v212_v42, 0.0  ;;  %v267_v51 = vsel %vm40_vm0, %v213_v20, 0.0 }
  0xac   :  { %262 = vadd.xlane.f32.xlu1 %v261_v35  ;;  %265 = vadd.xlane.f32.xlu0 %v264_v46  ;;  %v85_v47 = vpop.xlane.xlu0 %84  ;;  %v88_v50 = vpop.xlane.xlu1 %87 }
  0xad   :  { %v152_v54 = vmul.f32 0.0625, %v85_v47  ;;  %v153_v8 = vmul.f32 0.0625, %v88_v50  ;;  %v214_v58 = vmul.f32 %v895_v43, %v895_v43  ;;  %v215_v24 = vmul.f32 %v898_v21, %v898_v21 }
  0xaf   :  { %v907_v59 = vsub.f32 %v701_v28, %v152_v54  ;;  %v910_v25 = vsub.f32 %v706_v29, %v153_v8  ;;  %v270_v62 = vsel %vm40_vm0, %v214_v58, 0.0  ;;  %v273_v4 = vsel %vm40_vm0, %v215_v24, 0.0 }
  0xb0   :  { %268 = vadd.xlane.f32.xlu1 %v267_v51  ;;  %271 = vadd.xlane.f32.xlu0 %v270_v62  ;;  %v91_v63 = vpop.xlane.xlu0 %90  ;;  %v94_v3 = vpop.xlane.xlu1 %93 }
  0xb1   :  { %v154_v6 = vmul.f32 0.0625, %v91_v63  ;;  %v155_v12 = vmul.f32 0.0625, %v94_v3  ;;  %v216_v14 = vmul.f32 %v907_v59, %v907_v59  ;;  %v217_v28 = vmul.f32 %v910_v25, %v910_v25 }
  0xb3   :  { %v919_v15 = vsub.f32 %v715_v32, %v154_v6  ;;  %v922_v29 = vsub.f32 %v720_v33, %v155_v12  ;;  %v276_v18 = vsel %vm40_vm0, %v216_v14, 0.0  ;;  %v279_v23 = vsel %vm40_vm0, %v217_v28, 0.0 }
  0xb4   :  { %274 = vadd.xlane.f32.xlu1 %v273_v4  ;;  %277 = vadd.xlane.f32.xlu0 %v276_v18  ;;  %v97_v19 = vpop.xlane.xlu0 %96  ;;  %v100_v22 = vpop.xlane.xlu1 %99 }
  0xb5   :  { %v156_v0 = vmul.f32 0.0625, %v97_v19  ;;  %v157_v16 = vmul.f32 0.0625, %v100_v22  ;;  %v218_v30 = vmul.f32 %v919_v15, %v919_v15  ;;  %v219_v32 = vmul.f32 %v922_v29, %v922_v29 }
  0xb7   :  { %v931_v31 = vsub.f32 %v729_v36, %v156_v0  ;;  %v934_v33 = vsub.f32 %v734_v37, %v157_v16  ;;  %v282_v34 = vsel %vm40_vm0, %v218_v30, 0.0  ;;  %v285_v39 = vsel %vm40_vm0, %v219_v32, 0.0 }
  0xb8   :  { %280 = vadd.xlane.f32.xlu1 %v279_v23  ;;  %283 = vadd.xlane.f32.xlu0 %v282_v34  ;;  %v103_v35 = vpop.xlane.xlu0 %102  ;;  %v106_v38 = vpop.xlane.xlu1 %105 }
  0xb9   :  { %v158_v42 = vmul.f32 0.0625, %v103_v35  ;;  %v159_v20 = vmul.f32 0.0625, %v106_v38  ;;  %v220_v46 = vmul.f32 %v931_v31, %v931_v31  ;;  %v221_v36 = vmul.f32 %v934_v33, %v934_v33 }
  0xbb   :  { %v943_v47 = vsub.f32 %v743_v40, %v158_v42  ;;  %v946_v37 = vsub.f32 %v748_v41, %v159_v20  ;;  %v288_v50 = vsel %vm40_vm0, %v220_v46, 0.0  ;;  %v291_v8 = vsel %vm40_vm0, %v221_v36, 0.0 }
  0xbc   :  { %286 = vadd.xlane.f32.xlu1 %v285_v39  ;;  %289 = vadd.xlane.f32.xlu0 %v288_v50  ;;  %v109_v51 = vpop.xlane.xlu0 %108  ;;  %v112_v54 = vpop.xlane.xlu1 %111 }
  0xbd   :  { %v160_v58 = vmul.f32 0.0625, %v109_v51  ;;  %v161_v24 = vmul.f32 0.0625, %v112_v54  ;;  %v222_v62 = vmul.f32 %v943_v47, %v943_v47  ;;  %v223_v40 = vmul.f32 %v946_v37, %v946_v37 }
  0xbf   :  { %v955_v63 = vsub.f32 %v757_v44, %v160_v58  ;;  %v958_v41 = vsub.f32 %v762_v45, %v161_v24  ;;  %v294_v3 = vsel %vm40_vm0, %v222_v62, 0.0  ;;  %v297_v12 = vsel %vm40_vm0, %v223_v40, 0.0 }
  0xc0   :  { %292 = vadd.xlane.f32.xlu1 %v291_v8  ;;  %295 = vadd.xlane.f32.xlu0 %v294_v3  ;;  %v115_v4 = vpop.xlane.xlu0 %114  ;;  %v118_v6 = vpop.xlane.xlu1 %117 }
  0xc1   :  { %v162_v14 = vmul.f32 0.0625, %v115_v4  ;;  %v163_v28 = vmul.f32 0.0625, %v118_v6  ;;  %v224_v18 = vmul.f32 %v955_v63, %v955_v63  ;;  %v225_v44 = vmul.f32 %v958_v41, %v958_v41 }
  0xc3   :  { %v967_v19 = vsub.f32 %v771_v48, %v162_v14  ;;  %v970_v45 = vsub.f32 %v776_v49, %v163_v28  ;;  %v300_v22 = vsel %vm40_vm0, %v224_v18, 0.0  ;;  %v303_v16 = vsel %vm40_vm0, %v225_v44, 0.0 }
  0xc4   :  { %298 = vadd.xlane.f32.xlu1 %v297_v12  ;;  %301 = vadd.xlane.f32.xlu0 %v300_v22  ;;  %v121_v23 = vpop.xlane.xlu0 %120  ;;  %v124_v0 = vpop.xlane.xlu1 %123 }
  0xc5   :  { %v164_v30 = vmul.f32 0.0625, %v121_v23  ;;  %v165_v32 = vmul.f32 0.0625, %v124_v0  ;;  %v226_v34 = vmul.f32 %v967_v19, %v967_v19  ;;  %v227_v48 = vmul.f32 %v970_v45, %v970_v45 }
  0xc7   :  { %v979_v35 = vsub.f32 %v785_v52, %v164_v30  ;;  %v982_v49 = vsub.f32 %v790_v53, %v165_v32  ;;  %v306_v38 = vsel %vm40_vm0, %v226_v34, 0.0  ;;  %v309_v20 = vsel %vm40_vm0, %v227_v48, 0.0 }
  0xc8   :  { %304 = vadd.xlane.f32.xlu1 %v303_v16  ;;  %307 = vadd.xlane.f32.xlu0 %v306_v38  ;;  %v127_v39 = vpop.xlane.xlu0 %126  ;;  %v130_v42 = vpop.xlane.xlu1 %129 }
  0xc9   :  { %v166_v46 = vmul.f32 0.0625, %v127_v39  ;;  %v167_v36 = vmul.f32 0.0625, %v130_v42  ;;  %v228_v50 = vmul.f32 %v979_v35, %v979_v35  ;;  %v229_v52 = vmul.f32 %v982_v49, %v982_v49 }
  0xcb   :  { %v991_v51 = vsub.f32 %v799_v56, %v166_v46  ;;  %v994_v53 = vsub.f32 %v804_v57, %v167_v36  ;;  %v312_v54 = vsel %vm40_vm0, %v228_v50, 0.0  ;;  %v315_v24 = vsel %vm40_vm0, %v229_v52, 0.0 }
  0xcc   :  { %310 = vadd.xlane.f32.xlu1 %v309_v20  ;;  %313 = vadd.xlane.f32.xlu0 %v312_v54  ;;  %v133_v8 = vpop.xlane.xlu0 %132  ;;  %v136_v58 = vpop.xlane.xlu1 %135 }
  0xcd   :  { %v168_v62 = vmul.f32 0.0625, %v133_v8  ;;  %v169_v40 = vmul.f32 0.0625, %v136_v58  ;;  %v230_v3 = vmul.f32 %v991_v51, %v991_v51  ;;  %v231_v56 = vmul.f32 %v994_v53, %v994_v53 }
  0xcf   :  { %v1003_v4 = vsub.f32 %v813_v60, %v168_v62  ;;  %v1006_v57 = vsub.f32 %v818_v61, %v169_v40  ;;  %v318_v6 = vsel %vm40_vm0, %v230_v3, 0.0  ;;  %v321_v12 = vsel %vm40_vm0, %v231_v56, 0.0 }
  0xd0   :  { %316 = vadd.xlane.f32.xlu1 %v315_v24  ;;  %319 = vadd.xlane.f32.xlu0 %v318_v6 }
  0xd1   :  { %v232_v14 = vmul.f32 %v1003_v4, %v1003_v4  ;;  %v233_v28 = vmul.f32 %v1006_v57, %v1006_v57 }
  0xd3   :  { %v324_v18 = vsel %vm40_vm0, %v232_v14, 0.0  ;;  %v327_v60 = vsel %vm40_vm0, %v233_v28, 0.0 }
  0xd4   :  { %322 = vadd.xlane.f32.xlu1 %v321_v12  ;;  %325 = vadd.xlane.f32.xlu0 %v324_v18 }
  0xd8   :  { %328 = vadd.xlane.f32.xlu1 %v327_v60 }
 0x125   :  { %v236_v61 = vpop.xlane.xlu0 %235 }
 0x126   :  { %v330_v44 = vmul.f32 0.0625, %v236_v61 }
 0x128   :  { %v362_v22 = vadd.f32 1e-05, %v330_v44 }
 0x129   :  { %v239_v23 = vpop.xlane.xlu1 %238  ;;  %v242_v0 = vpop.xlane.xlu0 %241 }
 0x12a   :  { %526 = vrsqrt.f32 %v362_v22  ;;  %v331_v16 = vmul.f32 0.0625, %v239_v23  ;;  %v332_v30 = vmul.f32 0.0625, %v242_v0 }
 0x12c   :  { %v363_v32 = vadd.f32 1e-05, %v331_v16  ;;  %v364_v34 = vadd.f32 1e-05, %v332_v30 }
 0x12d   :  { %v245_v48 = vpop.xlane.xlu1 %244  ;;  %v248_v38 = vpop.xlane.xlu0 %247 }
 0x12e   :  { %528 = vrsqrt.f32 %v363_v32  ;;  %v333_v39 = vmul.f32 0.0625, %v245_v48  ;;  %v334_v42 = vmul.f32 0.0625, %v248_v38 }
 0x12f   :  { %530 = vrsqrt.f32 %v364_v34 }
 0x130   :  { %v365_v20 = vadd.f32 1e-05, %v333_v39  ;;  %v366_v46 = vadd.f32 1e-05, %v334_v42 }
 0x131   :  { %v251_v36 = vpop.xlane.xlu1 %250  ;;  %v254_v50 = vpop.xlane.xlu0 %253 }
 0x132   :  { %532 = vrsqrt.f32 %v365_v20  ;;  %v335_v52 = vmul.f32 0.0625, %v251_v36  ;;  %v336_v54 = vmul.f32 0.0625, %v254_v50 }
 0x133   :  { %534 = vrsqrt.f32 %v366_v46 }
 0x134   :  { %v527_v8 = vpop.eup %526  ;;  %v367_v58 = vadd.f32 1e-05, %v335_v52  ;;  %v368_v24 = vadd.f32 1e-05, %v336_v54 }
 0x135   :  { %v426_v62 = vmul.f32 %v527_v8, %v825_v10  ;;  %v257_v40 = vpop.xlane.xlu1 %256  ;;  %v260_v3 = vpop.xlane.xlu0 %259 }
 0x136   :  { %536 = vrsqrt.f32 %v367_v58  ;;  %v337_v56 = vmul.f32 0.0625, %v257_v40  ;;  %v338_v6 = vmul.f32 0.0625, %v260_v3 }
 0x137   :  { %v458_v12 = vmax.f32 %v426_v62, 0.0  ;;  %538 = vrsqrt.f32 %v368_v24 }
 0x138   :  { %v529_v14 = vpop.eup %528  ;;  %v369_v28 = vadd.f32 1e-05, %v337_v56  ;;  %v370_v18 = vadd.f32 1e-05, %v338_v6 }
 0x139   :  { %v531_v60 = vpop.eup %530  ;;  %490 = vst.msk [vmem:[%s1177_s1] sm:$0x3] %vm40_vm0, %v458_v12  ;;  %v427_v61 = vmul.f32 %v529_v14, %v835_v26  ;;  %v263_v44 = vpop.xlane.xlu1 %262 }
 0x13a   :  { %v266_v10 = vpop.xlane.xlu0 %265  ;;  %v428_v22 = vmul.f32 %v531_v60, %v828_v11  ;;  %540 = vrsqrt.f32 %v369_v28  ;;  %v339_v23 = vmul.f32 0.0625, %v263_v44 }
 0x13b   :  { %v340_v0 = vmul.f32 0.0625, %v266_v10  ;;  %v459_v16 = vmax.f32 %v427_v61, 0.0  ;;  %542 = vrsqrt.f32 %v370_v18 }
 0x13c   :  { %v533_v30 = vpop.eup %532  ;;  %v460_v32 = vmax.f32 %v428_v22, 0.0  ;;  %v371_v34 = vadd.f32 1e-05, %v339_v23 }
 0x13d   :  { %v372_v48 = vadd.f32 1e-05, %v340_v0  ;;  %v535_v38 = vpop.eup %534  ;;  %491 = vst.msk [vmem:[%s1177_s1 + $0x2] sm:$0x3] %vm40_vm0, %v459_v16  ;;  %v429_v26 = vmul.f32 %v533_v30, %v838_v27  ;;  %v269_v39 = vpop.xlane.xlu1 %268 }
 0x13e   :  { %v272_v42 = vpop.xlane.xlu0 %271  ;;  %492 = vst.msk [vmem:[%s1177_s1 + $0x4] sm:$0x3] %vm40_vm0, %v460_v32  ;;  %v430_v11 = vmul.f32 %v535_v38, %v847_v2  ;;  %544 = vrsqrt.f32 %v371_v34  ;;  %v341_v20 = vmul.f32 0.0625, %v269_v39 }
 0x13f   :  { %v342_v46 = vmul.f32 0.0625, %v272_v42  ;;  %v461_v36 = vmax.f32 %v429_v26, 0.0  ;;  %546 = vrsqrt.f32 %v372_v48 }
 0x140   :  { %v537_v50 = vpop.eup %536  ;;  %v462_v52 = vmax.f32 %v430_v11, 0.0  ;;  %v373_v54 = vadd.f32 1e-05, %v341_v20 }
 0x141   :  { %v374_v8 = vadd.f32 1e-05, %v342_v46  ;;  %v539_v58 = vpop.eup %538  ;;  %493 = vst.msk [vmem:[%s1177_s1 + $0x6] sm:$0x3] %vm40_vm0, %v461_v36  ;;  %v431_v27 = vmul.f32 %v537_v50, %v850_v5  ;;  %v275_v24 = vpop.xlane.xlu1 %274 }
 0x142   :  { %v278_v62 = vpop.xlane.xlu0 %277  ;;  %494 = vst.msk [vmem:[%s1177_s1 + $0x8] sm:$0x3] %vm40_vm0, %v462_v52  ;;  %v432_v2 = vmul.f32 %v539_v58, %v859_v55  ;;  %548 = vrsqrt.f32 %v373_v54  ;;  %v343_v40 = vmul.f32 0.0625, %v275_v24 }
 0x143   :  { %v344_v3 = vmul.f32 0.0625, %v278_v62  ;;  %v463_v56 = vmax.f32 %v431_v27, 0.0  ;;  %550 = vrsqrt.f32 %v374_v8 }
 0x144   :  { %v541_v6 = vpop.eup %540  ;;  %v464_v12 = vmax.f32 %v432_v2, 0.0  ;;  %v375_v14 = vadd.f32 1e-05, %v343_v40 }
 0x145   :  { %v376_v28 = vadd.f32 1e-05, %v344_v3  ;;  %v543_v18 = vpop.eup %542  ;;  %495 = vst.msk [vmem:[%s1177_s1 + $0xa] sm:$0x3] %vm40_vm0, %v463_v56  ;;  %v433_v5 = vmul.f32 %v541_v6, %v862_v9  ;;  %v281_v60 = vpop.xlane.xlu1 %280 }
 0x146   :  { %v284_v61 = vpop.xlane.xlu0 %283  ;;  %496 = vst.msk [vmem:[%s1177_s1 + $0xc] sm:$0x3] %vm40_vm0, %v464_v12  ;;  %v434_v55 = vmul.f32 %v543_v18, %v871_v7  ;;  %552 = vrsqrt.f32 %v375_v14  ;;  %v345_v44 = vmul.f32 0.0625, %v281_v60 }
 0x147   :  { %v346_v10 = vmul.f32 0.0625, %v284_v61  ;;  %v465_v22 = vmax.f32 %v433_v5, 0.0  ;;  %554 = vrsqrt.f32 %v376_v28 }
 0x148   :  { %v545_v23 = vpop.eup %544  ;;  %v466_v0 = vmax.f32 %v434_v55, 0.0  ;;  %v377_v16 = vadd.f32 1e-05, %v345_v44 }
 0x149   :  { %v378_v30 = vadd.f32 1e-05, %v346_v10  ;;  %v547_v32 = vpop.eup %546  ;;  %497 = vst.msk [vmem:[%s1177_s1 + $0xe] sm:$0x3] %vm40_vm0, %v465_v22  ;;  %v435_v9 = vmul.f32 %v545_v23, %v874_v13  ;;  %v287_v34 = vpop.xlane.xlu1 %286 }
 0x14a   :  { %v290_v48 = vpop.xlane.xlu0 %289  ;;  %498 = vst.msk [vmem:[%s1177_s1 + $0x10] sm:$0x3] %vm40_vm0, %v466_v0  ;;  %v436_v7 = vmul.f32 %v547_v32, %v883_v1  ;;  %556 = vrsqrt.f32 %v377_v16  ;;  %v347_v38 = vmul.f32 0.0625, %v287_v34 }
 0x14b   :  { %v348_v26 = vmul.f32 0.0625, %v290_v48  ;;  %v467_v39 = vmax.f32 %v435_v9, 0.0  ;;  %558 = vrsqrt.f32 %v378_v30 }
 0x14c   :  { %v549_v42 = vpop.eup %548  ;;  %v468_v11 = vmax.f32 %v436_v7, 0.0  ;;  %v379_v20 = vadd.f32 1e-05, %v347_v38 }
 0x14d   :  { %v380_v46 = vadd.f32 1e-05, %v348_v26  ;;  %v551_v36 = vpop.eup %550  ;;  %499 = vst.msk [vmem:[%s1177_s1 + $0x12] sm:$0x3] %vm40_vm0, %v467_v39  ;;  %v437_v13 = vmul.f32 %v549_v42, %v886_v17  ;;  %v293_v50 = vpop.xlane.xlu1 %292 }
 0x14e   :  { %v296_v52 = vpop.xlane.xlu0 %295  ;;  %500 = vst.msk [vmem:[%s1177_s1 + $0x14] sm:$0x3] %vm40_vm0, %v468_v11  ;;  %v438_v1 = vmul.f32 %v551_v36, %v895_v43  ;;  %560 = vrsqrt.f32 %v379_v20  ;;  %v349_v54 = vmul.f32 0.0625, %v293_v50 }
 0x14f   :  { %v350_v8 = vmul.f32 0.0625, %v296_v52  ;;  %v469_v58 = vmax.f32 %v437_v13, 0.0  ;;  %562 = vrsqrt.f32 %v380_v46 }
 0x150   :  { %v553_v27 = vpop.eup %552  ;;  %v470_v24 = vmax.f32 %v438_v1, 0.0  ;;  %v381_v62 = vadd.f32 1e-05, %v349_v54 }
 0x151   :  { %v382_v2 = vadd.f32 1e-05, %v350_v8  ;;  %v555_v40 = vpop.eup %554  ;;  %501 = vst.msk [vmem:[%s1177_s1 + $0x16] sm:$0x3] %vm40_vm0, %v469_v58  ;;  %v439_v17 = vmul.f32 %v553_v27, %v898_v21  ;;  %v299_v3 = vpop.xlane.xlu1 %298 }
 0x152   :  { %v302_v56 = vpop.xlane.xlu0 %301  ;;  %502 = vst.msk [vmem:[%s1177_s1 + $0x18] sm:$0x3] %vm40_vm0, %v470_v24  ;;  %v440_v43 = vmul.f32 %v555_v40, %v907_v59  ;;  %564 = vrsqrt.f32 %v381_v62  ;;  %v351_v6 = vmul.f32 0.0625, %v299_v3 }
 0x153   :  { %v352_v12 = vmul.f32 0.0625, %v302_v56  ;;  %v471_v14 = vmax.f32 %v439_v17, 0.0  ;;  %566 = vrsqrt.f32 %v382_v2 }
 0x154   :  { %v557_v28 = vpop.eup %556  ;;  %v472_v18 = vmax.f32 %v440_v43, 0.0  ;;  %v383_v5 = vadd.f32 1e-05, %v351_v6 }
 0x155   :  { %v384_v60 = vadd.f32 1e-05, %v352_v12  ;;  %v559_v61 = vpop.eup %558  ;;  %503 = vst.msk [vmem:[%s1177_s1 + $0x1a] sm:$0x3] %vm40_vm0, %v471_v14  ;;  %v441_v21 = vmul.f32 %v557_v28, %v910_v25  ;;  %v305_v55 = vpop.xlane.xlu1 %304 }
 0x156   :  { %v308_v44 = vpop.xlane.xlu0 %307  ;;  %504 = vst.msk [vmem:[%s1177_s1 + $0x1c] sm:$0x3] %vm40_vm0, %v472_v18  ;;  %v442_v59 = vmul.f32 %v559_v61, %v919_v15  ;;  %568 = vrsqrt.f32 %v383_v5  ;;  %v353_v10 = vmul.f32 0.0625, %v305_v55 }
 0x157   :  { %v354_v22 = vmul.f32 0.0625, %v308_v44  ;;  %v473_v23 = vmax.f32 %v441_v21, 0.0  ;;  %570 = vrsqrt.f32 %v384_v60 }
 0x158   :  { %v561_v0 = vpop.eup %560  ;;  %v474_v16 = vmax.f32 %v442_v59, 0.0  ;;  %v385_v30 = vadd.f32 1e-05, %v353_v10 }
 0x159   :  { %v386_v32 = vadd.f32 1e-05, %v354_v22  ;;  %v563_v9 = vpop.eup %562  ;;  %505 = vst.msk [vmem:[%s1177_s1 + $0x1e] sm:$0x3] %vm40_vm0, %v473_v23  ;;  %v443_v25 = vmul.f32 %v561_v0, %v922_v29  ;;  %v311_v34 = vpop.xlane.xlu1 %310 }
 0x15a   :  { %v314_v48 = vpop.xlane.xlu0 %313  ;;  %506 = vst.msk [vmem:[%s1177_s1 + $0x20] sm:$0x3] %vm40_vm0, %v474_v16  ;;  %v444_v15 = vmul.f32 %v563_v9, %v931_v31  ;;  %572 = vrsqrt.f32 %v385_v30  ;;  %v355_v7 = vmul.f32 0.0625, %v311_v34 }
 0x15b   :  { %v356_v38 = vmul.f32 0.0625, %v314_v48  ;;  %v475_v26 = vmax.f32 %v443_v25, 0.0  ;;  %574 = vrsqrt.f32 %v386_v32 }
 0x15c   :  { %v565_v39 = vpop.eup %564  ;;  %v476_v42 = vmax.f32 %v444_v15, 0.0  ;;  %v387_v11 = vadd.f32 1e-05, %v355_v7 }
 0x15d   :  { %v388_v20 = vadd.f32 1e-05, %v356_v38  ;;  %v567_v46 = vpop.eup %566  ;;  %507 = vst.msk [vmem:[%s1177_s1 + $0x22] sm:$0x3] %vm40_vm0, %v475_v26  ;;  %v445_v29 = vmul.f32 %v565_v39, %v934_v33  ;;  %v317_v36 = vpop.xlane.xlu1 %316 }
 0x15e   :  { %v320_v13 = vpop.xlane.xlu0 %319  ;;  %508 = vst.msk [vmem:[%s1177_s1 + $0x24] sm:$0x3] %vm40_vm0, %v476_v42  ;;  %v446_v31 = vmul.f32 %v567_v46, %v943_v47  ;;  %576 = vrsqrt.f32 %v387_v11  ;;  %v357_v50 = vmul.f32 0.0625, %v317_v36 }
 0x15f   :  { %v358_v52 = vmul.f32 0.0625, %v320_v13  ;;  %v477_v1 = vmax.f32 %v445_v29, 0.0  ;;  %578 = vrsqrt.f32 %v388_v20 }
 0x160   :  { %v569_v54 = vpop.eup %568  ;;  %v478_v8 = vmax.f32 %v446_v31, 0.0  ;;  %v389_v58 = vadd.f32 1e-05, %v357_v50 }
 0x161   :  { %v390_v27 = vadd.f32 1e-05, %v358_v52  ;;  %v571_v24 = vpop.eup %570  ;;  %509 = vst.msk [vmem:[%s1177_s1 + $0x26] sm:$0x3] %vm40_vm0, %v477_v1  ;;  %v447_v33 = vmul.f32 %v569_v54, %v946_v37  ;;  %v323_v62 = vpop.xlane.xlu1 %322 }
 0x162   :  { %v326_v2 = vpop.xlane.xlu0 %325  ;;  %510 = vst.msk [vmem:[%s1177_s1 + $0x28] sm:$0x3] %vm40_vm0, %v478_v8  ;;  %v448_v47 = vmul.f32 %v571_v24, %v955_v63  ;;  %580 = vrsqrt.f32 %v389_v58  ;;  %v359_v40 = vmul.f32 0.0625, %v323_v62 }
 0x163   :  { %v360_v17 = vmul.f32 0.0625, %v326_v2  ;;  %v479_v3 = vmax.f32 %v447_v33, 0.0  ;;  %582 = vrsqrt.f32 %v390_v27 }
 0x164   :  { %v573_v56 = vpop.eup %572  ;;  %v480_v43 = vmax.f32 %v448_v47, 0.0  ;;  %v391_v6 = vadd.f32 1e-05, %v359_v40 }
 0x165   :  { %v392_v12 = vadd.f32 1e-05, %v360_v17  ;;  %v575_v14 = vpop.eup %574  ;;  %511 = vst.msk [vmem:[%s1177_s1 + $0x2a] sm:$0x3] %vm40_vm0, %v479_v3  ;;  %v449_v37 = vmul.f32 %v573_v56, %v958_v41  ;;  %v329_v28 = vpop.xlane.xlu1 %328 }
 0x166   :  { %512 = vst.msk [vmem:[%s1177_s1 + $0x2c] sm:$0x3] %vm40_vm0, %v480_v43  ;;  %v450_v63 = vmul.f32 %v575_v14, %v967_v19  ;;  %584 = vrsqrt.f32 %v391_v6  ;;  %v361_v18 = vmul.f32 0.0625, %v329_v28 }
 0x167   :  { %v481_v5 = vmax.f32 %v449_v37, 0.0  ;;  %586 = vrsqrt.f32 %v392_v12 }
 0x168   :  { %v577_v60 = vpop.eup %576  ;;  %v482_v61 = vmax.f32 %v450_v63, 0.0  ;;  %v393_v21 = vadd.f32 1e-05, %v361_v18 }
 0x169   :  { %v579_v55 = vpop.eup %578  ;;  %513 = vst.msk [vmem:[%s1177_s1 + $0x2e] sm:$0x3] %vm40_vm0, %v481_v5  ;;  %v451_v41 = vmul.f32 %v577_v60, %v970_v45 }
 0x16a   :  { %514 = vst.msk [vmem:[%s1177_s1 + $0x30] sm:$0x3] %vm40_vm0, %v482_v61  ;;  %v452_v19 = vmul.f32 %v579_v55, %v979_v35  ;;  %588 = vrsqrt.f32 %v393_v21 }
 0x16b   :  { %v483_v44 = vmax.f32 %v451_v41, 0.0 }
 0x16c   :  { %v581_v59 = vpop.eup %580  ;;  %v484_v10 = vmax.f32 %v452_v19, 0.0 }
 0x16d   :  { %v583_v22 = vpop.eup %582  ;;  %515 = vst.msk [vmem:[%s1177_s1 + $0x32] sm:$0x3] %vm40_vm0, %v483_v44  ;;  %v453_v23 = vmul.f32 %v581_v59, %v982_v49 }
 0x16e   :  { %516 = vst.msk [vmem:[%s1177_s1 + $0x34] sm:$0x3] %vm40_vm0, %v484_v10  ;;  %v454_v45 = vmul.f32 %v583_v22, %v991_v51 }
 0x16f   :  { %v485_v35 = vmax.f32 %v453_v23, 0.0 }
 0x170   :  { %v585_v0 = vpop.eup %584  ;;  %v486_v16 = vmax.f32 %v454_v45, 0.0 }
 0x171   :  { %v587_v30 = vpop.eup %586  ;;  %517 = vst.msk [vmem:[%s1177_s1 + $0x36] sm:$0x3] %vm40_vm0, %v485_v35  ;;  %v455_v32 = vmul.f32 %v585_v0, %v994_v53 }
 0x172   :  { %518 = vst.msk [vmem:[%s1177_s1 + $0x38] sm:$0x3] %vm40_vm0, %v486_v16  ;;  %v456_v49 = vmul.f32 %v587_v30, %v1003_v4 }
 0x173   :  { %v487_v9 = vmax.f32 %v455_v32, 0.0 }
 0x174   :  { %v589_v51 = vpop.eup %588  ;;  %v488_v25 = vmax.f32 %v456_v49, 0.0 }
 0x175   :  { %519 = vst.msk [vmem:[%s1177_s1 + $0x3a] sm:$0x3] %vm40_vm0, %v487_v9  ;;  %v457_v34 = vmul.f32 %v589_v51, %v1006_v57 }
 0x176   :  { %520 = vst.msk [vmem:[%s1177_s1 + $0x3c] sm:$0x3] %vm40_vm0, %v488_v25 }
 0x177   :  { %v489_v53 = vmax.f32 %v457_v34, 0.0 }
 0x179   :  { %521 = vst.msk [vmem:[%s1177_s1 + $0x3e] sm:$0x3] %vm40_vm0, %v489_v53 }

// kernel: encoder_forward.24
= control target key start
LH: loop header
LB: loop body
LE: loop exit
PB: predicated region body
PF: predicated region fallthrough
CT: control target
= control target key end

     0   :  { %v123_v0 = vmov 0.0   ;;  %vm124_vm0 = vmmov 0   ;;  %v125_v2 = vmov 0   ;;  %vm50_vm1 = vcmask 261120   ;;  %s167_s1 = inlined_call_operand.vmem [shape: bf16[32,128], index: 1, kind: input, shape index: {}]   ;;  %s168_s2 = inlined_call_operand.vmem [shape: f32[16,1], index: 2, kind: input, shape index: {}]   ;;  %s169_s0 = inlined_call_operand.vmem [shape: bf16[16,32], index: 0, kind: input, shape index: {}]   ;;  %s170_s3 = inlined_call_operand.vmem [shape: f32[16,128], index: 3, kind: output, shape index: {}]  }
   0x1   :  { %108 = vmatprep.subr.bf16.mxu0 %v123_v0  ;;  %v120_v1 = vld [vmem:[%s167_s1] sm:$0xff]   ;;  %112 = vmatprep.mubr.msk.bf16.mxu0 %vm124_vm0, %v123_v0  ;;  %v121_v3 = vld [vmem:[%s167_s1 + $0x8] sm:$0xff]  }
   0x2   :  { %119 = vset.pattern.permute.xlu0 %v125_v2  ;;  %109 = vmatpush3.bf16.msra.mxu0 %v120_v1  ;;  %v21_v4 = vld [vmem:[%s168_s2] sm:$0xff]  ;;  %v22_v6 = vld [vmem:[%s168_s2 + $0x8] sm:$0xff] }
   0x3   :  { %110 = vmatprep.subr.bf16.mxu0 %v123_v0  ;;  %25 = vperm.xlu0 %119, %v21_v4   ;;  %v122_v5 = vld [vmem:[%s169_s0] sm:$0xff]  }
   0x6   :  { %111 = vmatpush3.bf16.msra.mxu0 %v121_v3 }
   0x7   :  { %30 = vperm.xlu0 %119, %v22_v6  }
   0x9   :  { %113 = vmatmul.mubr.msk.bf16.vlgmr.msra.gmra.mrb[0].mxu0 %vm50_vm1, %v122_v5 }
  0x82   :  { %v26_v7 = vpop.permute.xlu0 %25 }
  0x86   :  { %v31_v11 = vpop.permute.xlu0 %30 }
  0xdc   :  { %v88_v8 = vpop.f32.mrb[0].mxu0 }
  0xdd   :  { %v89_v9 = vadd.f32 %v88_v8, %v26_v7  ;;  %v114_v10 = vpop.f32.mrb[1].mxu0 }
  0xde   :  { %v91_v12 = vpop.f32.mrb[2].mxu0 }
  0xdf   :  { %95 = vst [vmem:[%s170_s3] sm:$0xff] %v89_v9  ;;  %v92_v13 = vadd.f32 %v91_v12, %v31_v11  ;;  %v115_v14 = vpop.f32.mrb[3].mxu0 }
  0xe1   :  { %96 = vst [vmem:[%s170_s3 + $0x8] sm:$0xff] %v92_v13 }

// kernel: encoder_forward.25
= control target key start
LH: loop header
LB: loop body
LE: loop exit
PB: predicated region body
PF: predicated region fallthrough
CT: control target
= control target key end

     0   :  { %v149_v0 = vmov 0.0   ;;  %vm150_vm0 = vmmov 0   ;;  %v151_v2 = vmov 0   ;;  %vm66_vm1 = vcmask 523264   ;;  %s199_s1 = inlined_call_operand.vmem [shape: bf16[64,128], index: 1, kind: input, shape index: {}]   ;;  %s200_s2 = inlined_call_operand.vmem [shape: f32[16,1], index: 2, kind: input, shape index: {}]   ;;  %s201_s0 = inlined_call_operand.vmem [shape: bf16[16,64], index: 0, kind: input, shape index: {}]   ;;  %s202_s3 = inlined_call_operand.vmem [shape: f32[16,128], index: 3, kind: output, shape index: {}]  }
   0x1   :  { %128 = vmatprep.subr.bf16.mxu0 %v149_v0  ;;  %v144_v1 = vld [vmem:[%s199_s1] sm:$0xff]   ;;  %136 = vmatprep.mubr.msk.bf16.mxu0 %vm150_vm0, %v149_v0  ;;  %v145_v3 = vld [vmem:[%s199_s1 + $0x8] sm:$0xff]   ;;  %v146_v5 = vld [vmem:[%s199_s1 + $0x10] sm:$0xff]  }
   0x2   :  { %143 = vset.pattern.permute.xlu0 %v151_v2  ;;  %129 = vmatpush3.bf16.msra.mxu0 %v144_v1  ;;  %v25_v4 = vld [vmem:[%s200_s2] sm:$0xff]  ;;  %v26_v6 = vld [vmem:[%s200_s2 + $0x8] sm:$0xff]  ;;  %v147_v7 = vld [vmem:[%s199_s1 + $0x18] sm:$0xff]  }
   0x3   :  { %130 = vmatprep.subr.bf16.mxu0 %v149_v0  ;;  %29 = vperm.xlu0 %143, %v25_v4   ;;  %v148_v8 = vld [vmem:[%s201_s0] sm:$0xff]  }
   0x6   :  { %131 = vmatpush3.bf16.msra.mxu0 %v145_v3 }
   0x7   :  { %132 = vmatprep.subr.bf16.mxu0 %v149_v0  ;;  %34 = vperm.xlu0 %143, %v26_v6  }
   0xa   :  { %133 = vmatpush3.bf16.msra.mxu0 %v146_v5 }
   0xb   :  { %134 = vmatprep.subr.bf16.mxu0 %v149_v0 }
   0xe   :  { %135 = vmatpush3.bf16.msra.mxu0 %v147_v7 }
  0x11   :  { %137 = vmatmul.mubr.msk.bf16.vlgmr.msra.gmra.mrb[0].mxu0 %vm66_vm1, %v148_v8 }
  0x82   :  { %v30_v9 = vpop.permute.xlu0 %29 }
  0x86   :  { %v35_v13 = vpop.permute.xlu0 %34 }
  0xe4   :  { %v104_v10 = vpop.f32.mrb[0].mxu0 }
  0xe5   :  { %v105_v11 = vadd.f32 %v104_v10, %v30_v9  ;;  %v138_v12 = vpop.f32.mrb[1].mxu0 }
  0xe6   :  { %v107_v14 = vpop.f32.mrb[2].mxu0 }
  0xe7   :  { %111 = vst [vmem:[%s202_s3] sm:$0xff] %v105_v11  ;;  %v108_v15 = vadd.f32 %v107_v14, %v35_v13  ;;  %v139_v16 = vpop.f32.mrb[3].mxu0 }
  0xe9   :  { %112 = vst [vmem:[%s202_s3 + $0x8] sm:$0xff] %v108_v15 }

// kernel: encoder_forward.27
= control target key start
LH: loop header
LB: loop body
LE: loop exit
PB: predicated region body
PF: predicated region fallthrough
CT: control target
= control target key end

     0   :  { %v197_v0 = vmov 0.0   ;;  %vm198_vm0 = vmmov 0   ;;  %v199_v2 = vmov 0   ;;  %s259_s1 = inlined_call_operand.vmem [shape: bf16[128,128], index: 1, kind: input, shape index: {}]   ;;  %s260_s2 = inlined_call_operand.vmem [shape: f32[16,1], index: 2, kind: input, shape index: {}]   ;;  %s261_s0 = inlined_call_operand.vmem [shape: bf16[16,128], index: 0, kind: input, shape index: {}]   ;;  %s262_s3 = inlined_call_operand.vmem [shape: f32[16,128], index: 3, kind: output, shape index: {}]  }
   0x1   :  { %164 = vmatprep.subr.bf16.mxu0 %v197_v0  ;;  %v188_v1 = vld [vmem:[%s259_s1] sm:$0xff]   ;;  %180 = vmatprep.mubr.msk.bf16.mxu0 %vm198_vm0, %v197_v0  ;;  %v189_v3 = vld [vmem:[%s259_s1 + $0x8] sm:$0xff]   ;;  %v190_v4 = vld [vmem:[%s259_s1 + $0x10] sm:$0xff]  }
   0x2   :  { %187 = vset.pattern.permute.xlu0 %v199_v2  ;;  %165 = vmatpush3.bf16.msra.mxu0 %v188_v1  ;;  %v33_v5 = vld [vmem:[%s260_s2] sm:$0xff]  ;;  %v191_v6 = vld [vmem:[%s259_s1 + $0x18] sm:$0xff]   ;;  %v34_v7 = vld [vmem:[%s260_s2 + $0x8] sm:$0xff] }
   0x3   :  { %166 = vmatprep.subr.bf16.mxu0 %v197_v0  ;;  %37 = vperm.xlu0 %187, %v33_v5   ;;  %v192_v8 = vld [vmem:[%s259_s1 + $0x20] sm:$0xff]   ;;  %v193_v9 = vld [vmem:[%s259_s1 + $0x28] sm:$0xff]   ;;  %v194_v10 = vld [vmem:[%s259_s1 + $0x30] sm:$0xff]  }
   0x4   :  { %v195_v11 = vld [vmem:[%s259_s1 + $0x38] sm:$0xff]   ;;  %v196_v12 = vld [vmem:[%s261_s0] sm:$0xff]  }
   0x6   :  { %167 = vmatpush3.bf16.msra.mxu0 %v189_v3 }
   0x7   :  { %168 = vmatprep.subr.bf16.mxu0 %v197_v0  ;;  %42 = vperm.xlu0 %187, %v34_v7  }
   0xa   :  { %169 = vmatpush3.bf16.msra.mxu0 %v190_v4 }
   0xb   :  { %170 = vmatprep.subr.bf16.mxu0 %v197_v0 }
   0xe   :  { %171 = vmatpush3.bf16.msra.mxu0 %v191_v6 }
   0xf   :  { %172 = vmatprep.subr.bf16.mxu0 %v197_v0 }
  0x12   :  { %173 = vmatpush3.bf16.msra.mxu0 %v192_v8 }
  0x13   :  { %174 = vmatprep.subr.bf16.mxu0 %v197_v0 }
  0x16   :  { %175 = vmatpush3.bf16.msra.mxu0 %v193_v9 }
  0x17   :  { %176 = vmatprep.subr.bf16.mxu0 %v197_v0 }
  0x1a   :  { %177 = vmatpush3.bf16.msra.mxu0 %v194_v10 }
  0x1b   :  { %178 = vmatprep.subr.bf16.mxu0 %v197_v0 }
  0x1e   :  { %179 = vmatpush3.bf16.msra.mxu0 %v195_v11 }
  0x21   :  { %181 = vmatmul.mubr.bf16.vlgmr.msra.gmra.mrb[0].mxu0 %v196_v12 }
  0x82   :  { %v38_v13 = vpop.permute.xlu0 %37 }
  0x86   :  { %v43_v17 = vpop.permute.xlu0 %42 }
  0xf4   :  { %v133_v14 = vpop.f32.mrb[0].mxu0 }
  0xf5   :  { %v134_v15 = vadd.f32 %v133_v14, %v38_v13  ;;  %v182_v16 = vpop.f32.mrb[1].mxu0 }
  0xf6   :  { %v136_v18 = vpop.f32.mrb[2].mxu0 }
  0xf7   :  { %140 = vst [vmem:[%s262_s3] sm:$0xff] %v134_v15  ;;  %v137_v19 = vadd.f32 %v136_v18, %v43_v17  ;;  %v183_v20 = vpop.f32.mrb[3].mxu0 }
  0xf9   :  { %141 = vst [vmem:[%s262_s3 + $0x8] sm:$0xff] %v137_v19 }

// kernel: encoder_forward.30
= control target key start
LH: loop header
LB: loop body
LE: loop exit
PB: predicated region body
PF: predicated region fallthrough
CT: control target
= control target key end

     0   :  { %v107_v0 = vmov 0.0   ;;  %vm108_vm0 = vmmov 0   ;;  %v109_v2 = vmov 0   ;;  %vm38_vm1 = vcmask 261120   ;;  %s145_s1 = inlined_call_operand.vmem [shape: bf16[32,128], index: 1, kind: input, shape index: {}]   ;;  %s146_s2 = inlined_call_operand.vmem [shape: f32[8,1], index: 2, kind: input, shape index: {}]   ;;  %s147_s0 = inlined_call_operand.vmem [shape: bf16[8,32], index: 0, kind: input, shape index: {}]   ;;  %s148_s3 = inlined_call_operand.vmem [shape: f32[8,128], index: 3, kind: output, shape index: {}]  }
   0x1   :  { %93 = vmatprep.subr.bf16.mxu0 %v107_v0  ;;  %v105_v1 = vld [vmem:[%s145_s1] sm:$0xff]   ;;  %97 = vmatprep.mubr.msk.bf16.mxu0 %vm108_vm0, %v107_v0  ;;  %v106_v3 = vld [vmem:[%s145_s1 + $0x8] sm:$0xff]  }
   0x2   :  { %104 = vset.pattern.permute.xlu0 %v109_v2  ;;  %94 = vmatpush3.bf16.msra.mxu0 %v105_v1  ;;  %v20_v4 = vld [vmem:[%s146_s2] sm:$0xff] }
   0x3   :  { %95 = vmatprep.subr.bf16.mxu0 %v107_v0  ;;  %23 = vperm.xlu0 %104, %v20_v4   ;;  %v15_v5 = vld [vmem:[%s147_s0] sm:$0xf] }
   0x6   :  { %96 = vmatpush3.bf16.msra.mxu0 %v106_v3 }
   0x9   :  { %98 = vmatmul.mubr.msk.bf16.vlgmr.msra.gmra.mrb[0].mxu0 %vm38_vm1, %v15_v5 }
  0x82   :  { %v24_v6 = vpop.permute.xlu0 %23 }
  0xdc   :  { %v76_v7 = vpop.f32.mrb[0].mxu0 }
  0xdd   :  { %v77_v8 = vadd.f32 %v76_v7, %v24_v6  ;;  %v99_v9 = vpop.f32.mrb[1].mxu0 }
  0xde   :  { %v79_v10 = vpop.f32.mrb[2].mxu0 }
  0xdf   :  { %82 = vst [vmem:[%s148_s3] sm:$0xff] %v77_v8  ;;  %v100_v11 = vpop.f32.mrb[3].mxu0 }

// kernel: encoder_forward.29
= control target key start
LH: loop header
LB: loop body
LE: loop exit
PB: predicated region body
PF: predicated region fallthrough
CT: control target
= control target key end

     0   :  { %v94_v0 = vmov 0.0   ;;  %vm95_vm0 = vmmov 0   ;;  %v96_v2 = vmov 0   ;;  %vm30_vm1 = vcmask 130048   ;;  %s129_s1 = inlined_call_operand.vmem [shape: bf16[16,128], index: 1, kind: input, shape index: {}]   ;;  %s130_s0 = inlined_call_operand.vmem [shape: bf16[8,16], index: 0, kind: input, shape index: {}]   ;;  %s131_s2 = inlined_call_operand.vmem [shape: f32[8,1], index: 2, kind: input, shape index: {}]   ;;  %s132_s3 = inlined_call_operand.vmem [shape: f32[8,128], index: 3, kind: output, shape index: {}]  }
   0x1   :  { %83 = vmatprep.subr.bf16.mxu0 %v94_v0  ;;  %v93_v1 = vld [vmem:[%s129_s1] sm:$0xff]   ;;  %85 = vmatprep.mubr.msk.bf16.mxu0 %vm95_vm0, %v94_v0 }
   0x2   :  { %92 = vset.pattern.permute.xlu0 %v96_v2  ;;  %v18_v3 = vld [vmem:[%s131_s2] sm:$0xff]  ;;  %84 = vmatpush3.bf16.msra.mxu0 %v93_v1 }
   0x3   :  { %v15_v4 = vld [vmem:[%s130_s0] sm:$0xf]  ;;  %21 = vperm.xlu0 %92, %v18_v3  }
   0x5   :  { %86 = vmatmul.mubr.msk.bf16.vlgmr.msra.gmra.mrb[0].mxu0 %vm30_vm1, %v15_v4 }
  0x82   :  { %v22_v5 = vpop.permute.xlu0 %21 }
  0xd8   :  { %v68_v6 = vpop.f32.mrb[0].mxu0 }
  0xd9   :  { %v69_v7 = vadd.f32 %v68_v6, %v22_v5  ;;  %v87_v8 = vpop.f32.mrb[1].mxu0 }
  0xda   :  { %v71_v9 = vpop.f32.mrb[2].mxu0 }
  0xdb   :  { %74 = vst [vmem:[%s132_s3] sm:$0xff] %v69_v7  ;;  %v88_v10 = vpop.f32.mrb[3].mxu0 }

// kernel: encoder_forward.32
= control target key start
LH: loop header
LB: loop body
LE: loop exit
PB: predicated region body
PF: predicated region fallthrough
CT: control target
= control target key end

     0   :  { %v133_v0 = vmov 0.0   ;;  %vm134_vm0 = vmmov 0   ;;  %v135_v2 = vmov 0   ;;  %vm54_vm1 = vcmask 523264   ;;  %s177_s1 = inlined_call_operand.vmem [shape: bf16[64,128], index: 1, kind: input, shape index: {}]   ;;  %s178_s2 = inlined_call_operand.vmem [shape: f32[8,1], index: 2, kind: input, shape index: {}]   ;;  %s179_s0 = inlined_call_operand.vmem [shape: bf16[8,64], index: 0, kind: input, shape index: {}]   ;;  %s180_s3 = inlined_call_operand.vmem [shape: f32[8,128], index: 3, kind: output, shape index: {}]  }
   0x1   :  { %113 = vmatprep.subr.bf16.mxu0 %v133_v0  ;;  %v129_v1 = vld [vmem:[%s177_s1] sm:$0xff]   ;;  %121 = vmatprep.mubr.msk.bf16.mxu0 %vm134_vm0, %v133_v0  ;;  %v130_v3 = vld [vmem:[%s177_s1 + $0x8] sm:$0xff]   ;;  %v131_v5 = vld [vmem:[%s177_s1 + $0x10] sm:$0xff]  }
   0x2   :  { %128 = vset.pattern.permute.xlu0 %v135_v2  ;;  %114 = vmatpush3.bf16.msra.mxu0 %v129_v1  ;;  %v24_v4 = vld [vmem:[%s178_s2] sm:$0xff]  ;;  %v132_v6 = vld [vmem:[%s177_s1 + $0x18] sm:$0xff]  }
   0x3   :  { %115 = vmatprep.subr.bf16.mxu0 %v133_v0  ;;  %27 = vperm.xlu0 %128, %v24_v4   ;;  %v15_v7 = vld [vmem:[%s179_s0] sm:$0xf] }
   0x6   :  { %116 = vmatpush3.bf16.msra.mxu0 %v130_v3 }
   0x7   :  { %117 = vmatprep.subr.bf16.mxu0 %v133_v0 }
   0xa   :  { %118 = vmatpush3.bf16.msra.mxu0 %v131_v5 }
   0xb   :  { %119 = vmatprep.subr.bf16.mxu0 %v133_v0 }
   0xe   :  { %120 = vmatpush3.bf16.msra.mxu0 %v132_v6 }
  0x11   :  { %122 = vmatmul.mubr.msk.bf16.vlgmr.msra.gmra.mrb[0].mxu0 %vm54_vm1, %v15_v7 }
  0x82   :  { %v28_v8 = vpop.permute.xlu0 %27 }
  0xe4   :  { %v92_v9 = vpop.f32.mrb[0].mxu0 }
  0xe5   :  { %v93_v10 = vadd.f32 %v92_v9, %v28_v8  ;;  %v123_v11 = vpop.f32.mrb[1].mxu0 }
  0xe6   :  { %v95_v12 = vpop.f32.mrb[2].mxu0 }
  0xe7   :  { %98 = vst [vmem:[%s180_s3] sm:$0xff] %v93_v10  ;;  %v124_v13 = vpop.f32.mrb[3].mxu0 }

// kernel: encoder_forward.34
= control target key start
LH: loop header
LB: loop body
LE: loop exit
PB: predicated region body
PF: predicated region fallthrough
CT: control target
= control target key end

     0   :  { %v1106_v2 = vmov 0   ;;  %v1107_v37 = vmov 1983009808   ;;  %v125_v39 = vlaneseq  ;;  %vm631_vm0 = vcmask 64512   ;;  %s1440_s1 = inlined_call_operand.vmem [shape: bf16[392,512], index: 1, kind: input, shape index: {}]   ;;  %s1441_s0 = inlined_call_operand.vmem [shape: bf16[4,392], index: 0, kind: input, shape index: {}]   ;;  %s1442_s2 = inlined_call_operand.vmem [shape: f32[4,1], index: 2, kind: input, shape index: {}]   ;;  %s1443_s3 = inlined_call_operand.vmem [shape: f32[4,512], index: 3, kind: output, shape index: {}]  }
   0x1   :  { %v949_v0 = vld [vmem:[%s1440_s1 + $0x4] ss:$16 sps:$4 sm:$0xff]   ;;  %v951_v1 = vld [vmem:[%s1440_s1 + $0xc] ss:$16 sps:$4 sm:$0xff]   ;;  %948 = vset.pattern.permute.xlu0 %v1106_v2  ;;  %v953_v3 = vld [vmem:[%s1440_s1] ss:$16 sps:$4 sm:$0xff]   ;;  %v123_v38 = vunpack.c.l.s4 %v1107_v37 }
   0x2   :  { %648 = vmatprep.subr.bf16.mxu0 %v949_v0  ;;  %v954_v4 = vld [vmem:[%s1440_s1 + $0x8] ss:$16 sps:$4 sm:$0xff]   ;;  %730 = vmatprep.subr.bf16.mxu1 %v951_v1  ;;  %v955_v5 = vld [vmem:[%s1440_s1 + $0x24] ss:$16 sps:$4 sm:$0xff]   ;;  %v957_v6 = vld [vmem:[%s1440_s1 + $0x2c] ss:$16 sps:$4 sm:$0xff]  }
   0x3   :  { %649 = vmatpush1.bf16.msra.mxu0 %v953_v3  ;;  %731 = vmatpush1.bf16.msra.mxu1 %v954_v4  ;;  %v959_v7 = vld [vmem:[%s1440_s1 + $0x20] ss:$16 sps:$4 sm:$0xff]   ;;  %v960_v8 = vld [vmem:[%s1440_s1 + $0x28] ss:$16 sps:$4 sm:$0xff]   ;;  %v961_v9 = vld [vmem:[%s1440_s1 + $0x44] ss:$16 sps:$4 sm:$0xff]   ;;  %v124_v43 = vunpack.c.0.s8 %v123_v38 }
   0x4   :  { %650 = vmatprep.subr.bf16.mxu0 %v955_v5  ;;  %732 = vmatprep.subr.bf16.mxu1 %v957_v6  ;;  %v963_v10 = vld [vmem:[%s1440_s1 + $0x4c] ss:$16 sps:$4 sm:$0xff]   ;;  %v965_v11 = vld [vmem:[%s1440_s1 + $0x40] ss:$16 sps:$4 sm:$0xff]   ;;  %v966_v12 = vld [vmem:[%s1440_s1 + $0x48] ss:$16 sps:$4 sm:$0xff]  }
   0x5   :  { %v967_v13 = vld [vmem:[%s1440_s1 + $0x64] ss:$16 sps:$4 sm:$0xff]   ;;  %v969_v14 = vld [vmem:[%s1440_s1 + $0x6c] ss:$16 sps:$4 sm:$0xff]   ;;  %v971_v15 = vld [vmem:[%s1440_s1 + $0x60] ss:$16 sps:$4 sm:$0xff]  }
   0x6   :  { %v972_v16 = vld [vmem:[%s1440_s1 + $0x68] ss:$16 sps:$4 sm:$0xff]   ;;  %v973_v17 = vld [vmem:[%s1440_s1 + $0x84] ss:$16 sps:$4 sm:$0xff]   ;;  %v975_v18 = vld [vmem:[%s1440_s1 + $0x8c] ss:$16 sps:$4 sm:$0xff]  }
   0x7   :  { %651 = vmatpush1.bf16.msra.mxu0 %v959_v7  ;;  %733 = vmatpush1.bf16.msra.mxu1 %v960_v8  ;;  %v977_v19 = vld [vmem:[%s1440_s1 + $0x80] ss:$16 sps:$4 sm:$0xff]   ;;  %v978_v20 = vld [vmem:[%s1440_s1 + $0x88] ss:$16 sps:$4 sm:$0xff]   ;;  %v979_v21 = vld [vmem:[%s1440_s1 + $0xa4] ss:$16 sps:$4 sm:$0xff]  }
   0x8   :  { %652 = vmatprep.subr.bf16.mxu0 %v961_v9  ;;  %734 = vmatprep.subr.bf16.mxu1 %v963_v10  ;;  %v981_v22 = vld [vmem:[%s1440_s1 + $0xac] ss:$16 sps:$4 sm:$0xff]   ;;  %v983_v23 = vld [vmem:[%s1440_s1 + $0xa0] ss:$16 sps:$4 sm:$0xff]   ;;  %v984_v24 = vld [vmem:[%s1440_s1 + $0xa8] ss:$16 sps:$4 sm:$0xff]  }
   0x9   :  { %v985_v25 = vld [vmem:[%s1440_s1 + $0xc4] ss:$16 sps:$4 sm:$0xff]   ;;  %v987_v26 = vld [vmem:[%s1440_s1 + $0xcc] ss:$16 sps:$4 sm:$0xff]   ;;  %v989_v27 = vld [vmem:[%s1440_s1 + $0xc0] ss:$16 sps:$4 sm:$0xff]  }
   0xa   :  { %v990_v28 = vld [vmem:[%s1440_s1 + $0xc8] ss:$16 sps:$4 sm:$0xff]   ;;  %v991_v29 = vld [vmem:[%s1440_s1 + $0xe4] ss:$16 sps:$4 sm:$0xff]   ;;  %v993_v30 = vld [vmem:[%s1440_s1 + $0xec] ss:$16 sps:$4 sm:$0xff]  }
   0xb   :  { %653 = vmatpush1.bf16.msra.mxu0 %v965_v11  ;;  %735 = vmatpush1.bf16.msra.mxu1 %v966_v12  ;;  %v995_v31 = vld [vmem:[%s1440_s1 + $0xe0] ss:$16 sps:$4 sm:$0xff]   ;;  %v996_v32 = vld [vmem:[%s1440_s1 + $0xe8] ss:$16 sps:$4 sm:$0xff]   ;;  %v997_v33 = vld [vmem:[%s1440_s1 + $0x104] ss:$16 sps:$4 sm:$0xff]  }
   0xc   :  { %654 = vmatprep.subr.bf16.mxu0 %v967_v13  ;;  %736 = vmatprep.subr.bf16.mxu1 %v969_v14  ;;  %v999_v34 = vld [vmem:[%s1440_s1 + $0x10c] ss:$16 sps:$4 sm:$0xff]   ;;  %v1001_v35 = vld [vmem:[%s1440_s1 + $0x100] ss:$16 sps:$4 sm:$0xff]   ;;  %v1002_v36 = vld [vmem:[%s1440_s1 + $0x108] ss:$16 sps:$4 sm:$0xff]  }
   0xd   :  { %v1003_v40 = vld [vmem:[%s1440_s1 + $0x124] ss:$16 sps:$4 sm:$0xff]   ;;  %v1005_v41 = vld [vmem:[%s1440_s1 + $0x12c] ss:$16 sps:$4 sm:$0xff]   ;;  %v1007_v42 = vld [vmem:[%s1440_s1 + $0x120] ss:$16 sps:$4 sm:$0xff]  }
   0xe   :  { %v126_v44 = vshrl.u32 %v125_v39, 7  ;;  %v1008_v45 = vld [vmem:[%s1440_s1 + $0x128] ss:$16 sps:$4 sm:$0xff]   ;;  %v1009_v46 = vld [vmem:[%s1440_s1 + $0x144] ss:$16 sps:$4 sm:$0xff]   ;;  %vm635_vm1 = vcmask 1043456  }
   0xf   :  { %655 = vmatpush1.bf16.msra.mxu0 %v971_v15  ;;  %737 = vmatpush1.bf16.msra.mxu1 %v972_v16  ;;  %v1011_v47 = vld [vmem:[%s1440_s1 + $0x14c] ss:$16 sps:$4 sm:$0xff]   ;;  %v1013_v48 = vld [vmem:[%s1440_s1 + $0x140] ss:$16 sps:$4 sm:$0xff]   ;;  %v1014_v49 = vld [vmem:[%s1440_s1 + $0x148] ss:$16 sps:$4 sm:$0xff]  }
  0x10   :  { %656 = vmatprep.subr.bf16.mxu0 %v973_v17  ;;  %738 = vmatprep.subr.bf16.mxu1 %v975_v18  ;;  %v127_v50 = vsub.s32 %v124_v43, %v126_v44  ;;  %v1015_v51 = vld [vmem:[%s1440_s1 + $0x164] ss:$16 sps:$4 sm:$0xff]   ;;  %v1017_v52 = vld [vmem:[%s1440_s1 + $0x16c] ss:$16 sps:$4 sm:$0xff]   ;;  %v1019_v54 = vld [vmem:[%s1440_s1 + $0x160] ss:$16 sps:$4 sm:$0xff]  }
  0x11   :  { %v15_v53 = vld [vmem:[%s1441_s0] sm:$0xff]  ;;  %v1020_v56 = vld [vmem:[%s1440_s1 + $0x168] ss:$16 sps:$4 sm:$0xff]   ;;  %v1023_v58 = vld [vmem:[%s1440_s1 + $0x18c] ss:$16 sps:$4 sm:$0xff]  }
  0x12   :  { %v128_v55 = vrot.slane %v15_v53, %v127_v50  ;;  %v1021_v57 = vld [vmem:[%s1440_s1 + $0x184] ss:$16 sps:$4 sm:$0xff]   ;;  %v1025_v60 = vld [vmem:[%s1440_s1 + $0x180] ss:$16 sps:$4 sm:$0xff]   ;;  %v1026_v61 = vld [vmem:[%s1440_s1 + $0x188] ss:$16 sps:$4 sm:$0xff]   ;;  %v121_v8 = vcombine.high %v15_v53, %v15_v53 }
  0x13   :  { %657 = vmatpush1.bf16.msra.mxu0 %v977_v19  ;;  %739 = vmatpush1.bf16.msra.mxu1 %v978_v20  ;;  %v1027_v62 = vld [vmem:[%s1440_s1 + $0x1a4] ss:$16 sps:$4 sm:$0xff]   ;;  %v1029_v63 = vld [vmem:[%s1440_s1 + $0x1ac] ss:$16 sps:$4 sm:$0xff]   ;;  %v1031_v0 = vld [vmem:[%s1440_s1 + $0x1a0] ss:$16 sps:$4 sm:$0xff]  }
  0x14   :  { %658 = vmatprep.subr.bf16.mxu0 %v979_v21  ;;  %740 = vmatprep.subr.bf16.mxu1 %v981_v22  ;;  %v136_v59 = vcombine.high %v128_v55, %v128_v55  ;;  %v1032_v1 = vld [vmem:[%s1440_s1 + $0x1a8] ss:$16 sps:$4 sm:$0xff]   ;;  %v1033_v2 = vld [vmem:[%s1440_s1 + $0x1c4] ss:$16 sps:$4 sm:$0xff]   ;;  %v1035_v3 = vld [vmem:[%s1440_s1 + $0x1cc] ss:$16 sps:$4 sm:$0xff]   ;;  %v1329_v13 = vrot.slane %v121_v8, %v127_v50 }
  0x15   :  { %v1037_v4 = vld [vmem:[%s1440_s1 + $0x1c0] ss:$16 sps:$4 sm:$0xff]   ;;  %v1038_v5 = vld [vmem:[%s1440_s1 + $0x1c8] ss:$16 sps:$4 sm:$0xff]   ;;  %v1039_v6 = vld [vmem:[%s1440_s1 + $0x1e4] ss:$16 sps:$4 sm:$0xff]  }
  0x16   :  { %680 = vmatprep.mubr.bf16.mxu0 %v136_v59  ;;  %762 = vmatprep.mubr.bf16.mxu1 %v136_v59  ;;  %v1041_v7 = vld [vmem:[%s1440_s1 + $0x1ec] ss:$16 sps:$4 sm:$0xff]   ;;  %v1043_v9 = vld [vmem:[%s1440_s1 + $0x1e0] ss:$16 sps:$4 sm:$0xff]   ;;  %v1044_v10 = vld [vmem:[%s1440_s1 + $0x1e8] ss:$16 sps:$4 sm:$0xff]   ;;  %v137_v19 = vcombine.high %v1329_v13, %v1329_v13 }
  0x17   :  { %659 = vmatpush1.bf16.msra.mxu0 %v983_v23  ;;  %741 = vmatpush1.bf16.msra.mxu1 %v984_v24  ;;  %v1048_v11 = vld [vmem:[%s1440_s1 + $0x204] ss:$16 sps:$4 sm:$0xff]   ;;  %v1051_v12 = vld [vmem:[%s1440_s1 + $0x20c] ss:$16 sps:$4 sm:$0xff]   ;;  %v1046_v14 = vld [vmem:[%s1440_s1 + $0x200] ss:$16 sps:$4 sm:$0xff]  }
  0x18   :  { %660 = vmatprep.subr.bf16.mxu0 %v985_v25  ;;  %742 = vmatprep.subr.bf16.mxu1 %v987_v26  ;;  %v1049_v15 = vld [vmem:[%s1440_s1 + $0x208] ss:$16 sps:$4 sm:$0xff]   ;;  %v1054_v16 = vld [vmem:[%s1440_s1 + $0x224] ss:$16 sps:$4 sm:$0xff]   ;;  %v1057_v17 = vld [vmem:[%s1440_s1 + $0x22c] ss:$16 sps:$4 sm:$0xff]  }
  0x19   :  { %v114_v18 = vld [vmem:[%s1442_s2] sm:$0xf]  ;;  %v1055_v21 = vld [vmem:[%s1440_s1 + $0x228] ss:$16 sps:$4 sm:$0xff]   ;;  %v1060_v22 = vld [vmem:[%s1440_s1 + $0x244] ss:$16 sps:$4 sm:$0xff]  }
  0x1a   :  { %117 = vperm.xlu0 %948, %v114_v18   ;;  %v1052_v20 = vld [vmem:[%s1440_s1 + $0x220] ss:$16 sps:$4 sm:$0xff]   ;;  %v1063_v23 = vld [vmem:[%s1440_s1 + $0x24c] ss:$16 sps:$4 sm:$0xff]   ;;  %v1061_v25 = vld [vmem:[%s1440_s1 + $0x248] ss:$16 sps:$4 sm:$0xff]  }
  0x1b   :  { %661 = vmatpush1.bf16.msra.mxu0 %v989_v27  ;;  %743 = vmatpush1.bf16.msra.mxu1 %v990_v28  ;;  %v1058_v24 = vld [vmem:[%s1440_s1 + $0x240] ss:$16 sps:$4 sm:$0xff]   ;;  %v1066_v26 = vld [vmem:[%s1440_s1 + $0x264] ss:$16 sps:$4 sm:$0xff]   ;;  %v1069_v27 = vld [vmem:[%s1440_s1 + $0x26c] ss:$16 sps:$4 sm:$0xff]  }
  0x1c   :  { %662 = vmatprep.subr.bf16.mxu0 %v991_v29  ;;  %744 = vmatprep.subr.bf16.mxu1 %v993_v30  ;;  %v1064_v28 = vld [vmem:[%s1440_s1 + $0x260] ss:$16 sps:$4 sm:$0xff]   ;;  %v1067_v29 = vld [vmem:[%s1440_s1 + $0x268] ss:$16 sps:$4 sm:$0xff]   ;;  %v1072_v30 = vld [vmem:[%s1440_s1 + $0x284] ss:$16 sps:$4 sm:$0xff]  }
  0x1d   :  { %v1079_v37 = vld [vmem:[%s1440_s1 + $0x2a8] ss:$16 sps:$4 sm:$0xff]   ;;  %v1084_v38 = vld [vmem:[%s1440_s1 + $0x2c4] ss:$16 sps:$4 sm:$0xff]   ;;  %v1087_v39 = vld [vmem:[%s1440_s1 + $0x2cc] ss:$16 sps:$4 sm:$0xff]  }
  0x1e   :  { %v1093_v43 = vld [vmem:[%s1440_s1 + $0x2ec] ss:$16 sps:$4 sm:$0xff]   ;;  %v112_v44 = vld [vmem:[%s1440_s1 + $0x300] sm:$0xff] }
  0x1f   :  { %663 = vmatpush1.bf16.msra.mxu0 %v995_v31  ;;  %745 = vmatpush1.bf16.msra.mxu1 %v996_v32  ;;  %v1075_v31 = vld [vmem:[%s1440_s1 + $0x28c] ss:$16 sps:$4 sm:$0xff]   ;;  %v1070_v32 = vld [vmem:[%s1440_s1 + $0x280] ss:$16 sps:$4 sm:$0xff]   ;;  %v926_v50 = vcombine.low %v112_v44, %v112_v44 }
  0x20   :  { %664 = vmatprep.subr.bf16.mxu0 %v997_v33  ;;  %746 = vmatprep.subr.bf16.mxu1 %v999_v34  ;;  %v1073_v33 = vld [vmem:[%s1440_s1 + $0x288] ss:$16 sps:$4 sm:$0xff]   ;;  %v1078_v34 = vld [vmem:[%s1440_s1 + $0x2a4] ss:$16 sps:$4 sm:$0xff]  }
  0x23   :  { %665 = vmatpush1.bf16.msra.mxu0 %v1001_v35  ;;  %747 = vmatpush1.bf16.msra.mxu1 %v1002_v36  ;;  %v1081_v35 = vld [vmem:[%s1440_s1 + $0x2ac] ss:$16 sps:$4 sm:$0xff]   ;;  %v1076_v36 = vld [vmem:[%s1440_s1 + $0x2a0] ss:$16 sps:$4 sm:$0xff]  }
  0x24   :  { %666 = vmatprep.subr.bf16.mxu0 %v1003_v40  ;;  %748 = vmatprep.subr.bf16.mxu1 %v1005_v41  ;;  %v1082_v40 = vld [vmem:[%s1440_s1 + $0x2c0] ss:$16 sps:$4 sm:$0xff]   ;;  %v1085_v41 = vld [vmem:[%s1440_s1 + $0x2c8] ss:$16 sps:$4 sm:$0xff]  }
  0x27   :  { %667 = vmatpush1.bf16.msra.mxu0 %v1007_v42  ;;  %749 = vmatpush1.bf16.msra.mxu1 %v1008_v45  ;;  %v1090_v42 = vld [vmem:[%s1440_s1 + $0x2e4] ss:$16 sps:$4 sm:$0xff]   ;;  %v113_v45 = vld [vmem:[%s1440_s1 + $0x308] sm:$0xff] }
  0x28   :  { %668 = vmatprep.subr.bf16.mxu0 %v1009_v46  ;;  %750 = vmatprep.subr.bf16.mxu1 %v1011_v47  ;;  %v1088_v46 = vld [vmem:[%s1440_s1 + $0x2e0] ss:$16 sps:$4 sm:$0xff]   ;;  %v1091_v47 = vld [vmem:[%s1440_s1 + $0x2e8] ss:$16 sps:$4 sm:$0xff]  }
  0x2b   :  { %669 = vmatpush1.bf16.msra.mxu0 %v1013_v48  ;;  %751 = vmatpush1.bf16.msra.mxu1 %v1014_v49  ;;  %v927_v48 = vcombine.high %v112_v44, %v112_v44  ;;  %v929_v49 = vcombine.high %v113_v45, %v113_v45 }
  0x2c   :  { %670 = vmatprep.subr.bf16.mxu0 %v1015_v51  ;;  %752 = vmatprep.subr.bf16.mxu1 %v1017_v52  ;;  %v928_v51 = vcombine.low %v113_v45, %v113_v45  ;;  %v637_v52 = vsel %vm635_vm1, %v926_v50, 0 }
  0x2e   :  { %v643_v53 = vsel %vm635_vm1, %v928_v51, 0 }
  0x2f   :  { %671 = vmatpush1.bf16.msra.mxu0 %v1019_v54  ;;  %753 = vmatpush1.bf16.msra.mxu1 %v1020_v56 }
  0x30   :  { %672 = vmatprep.subr.bf16.mxu0 %v1021_v57  ;;  %754 = vmatprep.subr.bf16.mxu1 %v1023_v58 }
  0x33   :  { %673 = vmatpush1.bf16.msra.mxu0 %v1025_v60  ;;  %755 = vmatpush1.bf16.msra.mxu1 %v1026_v61 }
  0x34   :  { %674 = vmatprep.subr.bf16.mxu0 %v1027_v62  ;;  %756 = vmatprep.subr.bf16.mxu1 %v1029_v63 }
  0x37   :  { %675 = vmatpush1.bf16.msra.mxu0 %v1031_v0  ;;  %757 = vmatpush1.bf16.msra.mxu1 %v1032_v1 }
  0x38   :  { %676 = vmatprep.subr.bf16.mxu0 %v1033_v2  ;;  %758 = vmatprep.subr.bf16.mxu1 %v1035_v3 }
  0x3b   :  { %677 = vmatpush1.bf16.msra.mxu0 %v1037_v4  ;;  %759 = vmatpush1.bf16.msra.mxu1 %v1038_v5 }
  0x3c   :  { %678 = vmatprep.subr.bf16.mxu0 %v1039_v6  ;;  %760 = vmatprep.subr.bf16.mxu1 %v1041_v7 }
  0x3f   :  { %679 = vmatpush1.bf16.msra.mxu0 %v1043_v9  ;;  %761 = vmatpush1.bf16.msra.mxu1 %v1044_v10 }
  0x40   :  { %689 = vmatprep.subr.bf16.mxu0 %v1048_v11  ;;  %771 = vmatprep.subr.bf16.mxu1 %v1051_v12 }
  0x42   :  { %681 = vmatmul.mubr.bf16.vlgmr.msra.gmra.mrb[0].mxu0 %v128_v55  ;;  %763 = vmatmul.mubr.bf16.vlgmr.msra.gmra.mrb[0].mxu1 %v128_v55 }
  0x43   :  { %690 = vmatpush1.bf16.msra.mxu0 %v1046_v14  ;;  %772 = vmatpush1.bf16.msra.mxu1 %v1049_v15 }
  0x44   :  { %691 = vmatprep.subr.bf16.mxu0 %v1054_v16  ;;  %773 = vmatprep.subr.bf16.mxu1 %v1057_v17 }
  0x45   :  { %931 = vmatprep.mubr.msk.bf16.mxu0 %vm631_vm0, %v137_v19  ;;  %933 = vmatprep.mubr.msk.bf16.mxu1 %vm631_vm0, %v137_v19 }
  0x47   :  { %692 = vmatpush1.bf16.msra.mxu0 %v1052_v20  ;;  %774 = vmatpush1.bf16.msra.mxu1 %v1055_v21 }
  0x48   :  { %693 = vmatprep.subr.bf16.mxu0 %v1060_v22  ;;  %775 = vmatprep.subr.bf16.mxu1 %v1063_v23 }
  0x4b   :  { %694 = vmatpush1.bf16.msra.mxu0 %v1058_v24  ;;  %776 = vmatpush1.bf16.msra.mxu1 %v1061_v25 }
  0x4c   :  { %695 = vmatprep.subr.bf16.mxu0 %v1066_v26  ;;  %777 = vmatprep.subr.bf16.mxu1 %v1069_v27 }
  0x4f   :  { %696 = vmatpush1.bf16.msra.mxu0 %v1064_v28  ;;  %778 = vmatpush1.bf16.msra.mxu1 %v1067_v29 }
  0x50   :  { %697 = vmatprep.subr.bf16.mxu0 %v1072_v30  ;;  %779 = vmatprep.subr.bf16.mxu1 %v1075_v31 }
  0x53   :  { %698 = vmatpush1.bf16.msra.mxu0 %v1070_v32  ;;  %780 = vmatpush1.bf16.msra.mxu1 %v1073_v33 }
  0x54   :  { %699 = vmatprep.subr.bf16.mxu0 %v1078_v34  ;;  %781 = vmatprep.subr.bf16.mxu1 %v1081_v35 }
  0x57   :  { %700 = vmatpush1.bf16.msra.mxu0 %v1076_v36  ;;  %782 = vmatpush1.bf16.msra.mxu1 %v1079_v37 }
  0x58   :  { %701 = vmatprep.subr.bf16.mxu0 %v1084_v38  ;;  %783 = vmatprep.subr.bf16.mxu1 %v1087_v39 }
  0x5b   :  { %702 = vmatpush1.bf16.msra.mxu0 %v1082_v40  ;;  %784 = vmatpush1.bf16.msra.mxu1 %v1085_v41 }
  0x5c   :  { %703 = vmatprep.subr.bf16.mxu0 %v1090_v42  ;;  %785 = vmatprep.subr.bf16.mxu1 %v1093_v43 }
  0x5f   :  { %704 = vmatpush1.bf16.msra.mxu0 %v1088_v46  ;;  %786 = vmatpush1.bf16.msra.mxu1 %v1091_v47 }
  0x60   :  { %930 = vmatprep.subr.msk.bf16.mxu0 %vm635_vm1, %v927_v48  ;;  %932 = vmatprep.subr.msk.bf16.mxu1 %vm635_vm1, %v929_v49 }
  0x63   :  { %706 = vmatpush1.bf16.msra.mxu0 %v637_v52  ;;  %788 = vmatpush1.bf16.msra.mxu1 %v643_v53 }
  0x66   :  { %722 = vmatmul.mubr.bf16.vlgmr.msra.gmra.mrb[0].mxu0 %v1329_v13  ;;  %804 = vmatmul.mubr.bf16.vlgmr.msra.gmra.mrb[0].mxu1 %v1329_v13 }
  0x99   :  { %v118_v54 = vpop.permute.xlu0 %117 }
 0x139   :  { %v723_v55 = vpop.f32.mrb[0].mxu0  ;;  %v805_v56 = vpop.f32.mrb[0].mxu1 }
 0x13a   :  { %v934_v57 = vadd.f32 %v723_v55, %v118_v54  ;;  %v936_v58 = vadd.f32 %v805_v56, %v118_v54  ;;  %v725_v59 = vpop.f32.mrb[1].mxu0  ;;  %v807_v60 = vpop.f32.mrb[1].mxu1 }
 0x13b   :  { %v935_v61 = vadd.f32 %v725_v59, %v118_v54  ;;  %v937_v62 = vadd.f32 %v807_v60, %v118_v54  ;;  %v727_v63 = vpop.f32.mrb[2].mxu0  ;;  %v809_v0 = vpop.f32.mrb[2].mxu1 }
 0x13c   :  { %1098 = vtanh.f32 %v934_v57  ;;  %v728_v1 = vpop.f32.mrb[3].mxu0  ;;  %v810_v2 = vpop.f32.mrb[3].mxu1 }
 0x13d   :  { %1100 = vtanh.f32 %v936_v58 }
 0x13e   :  { %1102 = vtanh.f32 %v935_v61 }
 0x13f   :  { %1104 = vtanh.f32 %v937_v62 }
 0x146   :  { %v1099_v3 = vpop.eup %1098 }
 0x147   :  { %v1101_v4 = vpop.eup %1100 }
 0x148   :  { %v1103_v5 = vpop.eup %1102 }
 0x149   :  { %v1105_v6 = vpop.eup %1104  ;;  %v820_v7 = vcombine.low %v1099_v3, %v1103_v5 }
 0x14a   :  { %v821_v8 = vcombine.low %v1101_v4, %v1105_v6 }
 0x14b   :  { %824 = vst [vmem:[%s1443_s3] sm:$0xff] %v820_v7 }
 0x14c   :  { %825 = vst [vmem:[%s1443_s3 + $0x8] sm:$0xff] %v821_v8 }

// kernel: encoder_forward.35
= control target key start
LH: loop header
LB: loop body
LE: loop exit
PB: predicated region body
PF: predicated region fallthrough
CT: control target
= control target key end

     0   :  { %s326_s9 = smov 0   ;;  %s354_s0 = inlined_call_operand.vmem [shape: f32[2,4,256], index: 0, kind: input, shape index: {}]   ;;  %s355_s1 = inlined_call_operand.vmem [shape: s32[2,1,256], index: 1, kind: input, shape index: {}]   ;;  %s356_s2 = inlined_call_operand.vmem [shape: f32[2,4,256], index: 2, kind: output, shape index: {}]  }
   0x1 LB: > { %s276_s10 = sadd.s32 4294967295, %s308_s9   ;;  %p280_p0 = scmp.ge.s32.totalorder %s308_s9, 1  ;;  %s308_s9 = sphi %s326_s9, %s12_s9  }
   0x2   : > { %p121_p1 = scmp.lt.s32.totalorder %s308_s9, 3 }
   0x4   : > { %p122_p2 = pnand %p280_p0, %p121_p1 }
   0x5   : > { %p147_p3 = scmp.lt.s32.totalorder (!%p122_p2), %s276_s10, 1  ;;  %v167_v0 = vlaneseq (!%p122_p2)  ;;  %v310_v5 = vmov (!%p122_p2), 0.0   ;;  %vm177_vm1 = vcmask (!%p122_p2), 1040384   ;;  %vm189_vm2 = vcmask (!%p122_p2), 1043456  }
   0x6   : > { %125 = sbr.rel (%p122_p2) target bundleno = 188 (0xbc), region = 28 }
   0x7   : > { %v168_v1 = vshrl.u32 (!%p122_p2), %v167_v0, 7 }
   0x9   : > { %v169_v2 = vsub.s32 (!%p122_p2), 0, %v168_v1  ;;  %v173_v3 = vsub.s32 (!%p122_p2), 1, %v168_v1 }
   0xd   : > { %s358_s10 = smov (!%p147_p3, %s276_s10), 1 }
   0xe   : > { %s283_s11 = sshll.u32 %s358_s10, 1  ;;  %s289_s12 = sshll.u32 %s358_s10, 3 }
   0xf   : > { %s155_s15 = scalar_lea.vmem %s355_s1, %s283_s11  ;;  %s151_s18 = scalar_lea.vmem %s354_s0, %s289_s12 }
  0x10   : > { %v162_v4 = vld [vmem:[%s155_s15] sm:$0x3]  ;;  %s160_s21 = scalar_lea.vmem %s356_s2, %s289_s12 }
  0x11   : > { %vm163_vm0 = vcmp.eq.s32.totalorder %v162_v4, 1  ;;  %v161_v9 = vld [vmem:[%s151_s18] sm:$0xff] }
  0x12   : > { %v286_v6 = vsel %vm163_vm0, 1.0, %v310_v5 }
  0x13   : > { %v170_v7 = vrot.slane %v286_v6, %v169_v2  ;;  %v174_v8 = vrot.slane %v286_v6, %v173_v3 }
  0x15   : > { %v178_v10 = vsel %vm177_vm1, %v170_v7, 0.0  ;;  %v179_v11 = vsel %vm177_vm1, %v174_v8, 0.0  ;;  %v183_v12 = vcombine.low %v170_v7, %v174_v8 }
  0x16   : > { %v180_v13 = vadd.f32 %v179_v11, %v178_v10 }
  0x17   : > { %v185_v14 = vmul.f32 %v183_v12, %v161_v9 }
  0x18   : > { %181 = vadd.xlane.f32.xlu0 %v180_v13 }
  0x19   : > { %v187_v15 = vcombine.high %v185_v14, %v185_v14  ;;  %v190_v16 = vsel %vm189_vm2, %v185_v14, 0.0 }
  0x1b   : > { %v191_v17 = vsel %vm189_vm2, %v187_v15, 0.0 }
  0x1c   : > { %v192_v18 = vadd.f32 %v191_v17, %v190_v16 }
  0x1e   : > { %193 = vadd.xlane.f32.xlu0 %v192_v18 }
  0xa5   : > { %v182_v19 = vpop.xlane.xlu0 %181 }
  0xa6   : > { %v195_v20 = vmax.f32 %v182_v19, 1.0 }
  0xa8   : > { %v199_v21 = vrot.slane %v195_v20, %v169_v2 }
  0xaa   : > { %300 = vrcp.f32 %v199_v21 }
  0xab   : > { %v194_v22 = vpop.xlane.xlu0 %193 }
  0xb4   : > { %v301_v23 = vpop.eup %300 }
  0xb5   : > { %v201_v24 = vmul.f32 %v301_v23, %v194_v22 }
  0xb7   : > { %v202_v25 = vmul.f32 %v201_v24, %v170_v7  ;;  %v203_v26 = vmul.f32 %v201_v24, %v174_v8 }
  0xb9   : > { %v206_v27 = vcombine.low %v202_v25, %v203_v26 }
  0xbb   : > { %208 = vst [vmem:[%s160_s21] sm:$0xff] %v206_v27 }
  0xbc PF: > { %s12_s9 = sadd.s32 1, %s308_s9  }
  0xbd   : > { %p9_p4 = scmp.ge.s32.totalorder %s12_s9, 4  }
  0xbf   :  { %11 = sbr.rel (!%p9_p4) target bundleno = 1 (0x1), region = 61 }

</bundles_post_ra>
